<compile_context>
chip_gen: v7x
topology: tpu7x:2x2x1
jax: 0.10.0
libtpu: 0.0.40
codegen_flags: <defaults>
</compile_context>

<pallas_src>
import functools

import jax
import jax.numpy as jnp
from jax.experimental import pallas as pl
from jax.experimental.pallas import tpu as pltpu

NEG_BIG = -1e30   # acts as -inf but keeps max/exp paths NaN-free
MASK_BIG = 1e30


def _leaky_relu(x, slope):
    return jnp.where(x > 0, x, slope * x)


def _round_up(x, m):
    return (x + m - 1) // m * m


# ---------------------------------------------------------------------------
# Kernel 1: node projection  h = x @ W  and per-node attention scalars
#   e_src[j] = <h_j, att_src>,  e_dst[i] = <h_i, att_dst>
# ---------------------------------------------------------------------------
def project_kernel(x_ref, w_ref, asrc_ref, adst_ref,
                   h_ref, edst_ref, esrc_ref):
    h = jnp.dot(x_ref[...], w_ref[...], preferred_element_type=jnp.float32)  # (Tn, C)
    edst_ref[...] = jnp.sum(h * adst_ref[...], axis=-1, keepdims=True)       # (Tn, 1)
    es = jnp.sum(h * asrc_ref[...], axis=-1, keepdims=True)                  # (Tn, 1)
    esrc_ref[...] = jnp.transpose(es)                                        # (1, Tn)
    h_ref[...] = h.astype(jnp.bfloat16)


# ---------------------------------------------------------------------------
# Kernel 2: flash-style masked attention + aggregation + bias + LayerNorm +
#           LeakyReLU(0.1), with online softmax over src tiles.
# ---------------------------------------------------------------------------
def gat_attention_kernel(nnz_ref, e_dst_ref, e_src_ref, h_ref, adj_ref,
                         bias_ref, gamma_ref, beta_ref,
                         out_ref, lse_ref,
                         m_sc, l_sc, acc_sc, *, tile_src):
    i = pl.program_id(0)
    j = pl.program_id(1)

    @pl.when(j == 0)
    def _():
        m_sc[...] = jnp.full_like(m_sc, NEG_BIG)
        l_sc[...] = jnp.zeros_like(l_sc)
        acc_sc[...] = jnp.zeros_like(acc_sc)

    # skip softmax/matmul work for tiles with no edges (self loops guarantee
    # every dst row hits at least one non-empty tile).
    @pl.when(nnz_ref[i, j] > 0)
    def _():
        raw = e_dst_ref[...] + e_src_ref[...]                    # (Tdst, Tsrc)
        logits = _leaky_relu(raw, 0.2)
        # additive mask: adj==1 -> +0, adj==0 -> -1e30 (one add vs two cmp/sel)
        logits = logits + (adj_ref[...].astype(jnp.float32) - 1.0) * MASK_BIG

        m_tile = jnp.max(logits, axis=-1, keepdims=True)
        m_new = jnp.maximum(m_sc[...], m_tile)
        corr = jnp.exp(m_sc[...] - m_new)
        p = jnp.exp(logits - m_new)
        l_sc[...] = corr * l_sc[...] + jnp.sum(p, axis=-1, keepdims=True)

        src0 = pl.multiple_of(j * tile_src, tile_src)
        h_tile = h_ref[pl.ds(src0, tile_src), :]                 # bf16, VMEM-resident
        acc_sc[...] = corr * acc_sc[...] + jnp.dot(
            p.astype(jnp.bfloat16), h_tile, preferred_element_type=jnp.float32)
        m_sc[...] = m_new

    @pl.when(j == pl.num_programs(1) - 1)
    def _():
        l = l_sc[...]
        agg = acc_sc[...] / l + bias_ref[...]                    # GATConv bias
        # shared LayerNorm (eps=1e-5) + LeakyReLU(0.1), all f32
        mu = jnp.mean(agg, axis=-1, keepdims=True)
        var = jnp.mean(jnp.square(agg - mu), axis=-1, keepdims=True)
        y = (agg - mu) * jax.lax.rsqrt(var + 1e-5)
        y = y * gamma_ref[...] + beta_ref[...]
        out_ref[...] = _leaky_relu(y, 0.1)
        lse_ref[...] = m_sc[...] + jnp.log(l)


# ---------------------------------------------------------------------------
# Kernel 3: per-graph global_max_pool + ReLU + Linear (grid over graphs)
# ---------------------------------------------------------------------------
def pool_fc_kernel(x_ref, mask_ref, fcw_ref, fcb_ref, out_ref):
    x = x_ref[...]                                  # (N_pad, C)
    mask = mask_ref[0]                              # (N_pad, 1) membership of graph g
    pooled = jnp.max(jnp.where(mask > 0, x, NEG_BIG), axis=0, keepdims=True)  # (1, C)
    pooled = jnp.maximum(pooled, 0.0)               # ReLU
    out_ref[0] = (jnp.dot(pooled, fcw_ref[...], preferred_element_type=jnp.float32)
                  + fcb_ref[...])


# ---------------------------------------------------------------------------
# Python wrappers
# ---------------------------------------------------------------------------
def gat_layer(x, adj_i8, nnz, w, att_src, att_dst, bias, gamma, beta,
              *, tile_dst, tile_src):
    n_pad, f_in = x.shape
    c = w.shape[1]
    n_dst_t = n_pad // tile_dst
    n_src_t = n_pad // tile_src

    h_bf16, e_dst, e_src = pl.pallas_call(
        project_kernel,
        grid=(n_dst_t,),
        in_specs=[
            pl.BlockSpec((tile_dst, f_in), lambda i: (i, 0)),
            pl.BlockSpec((f_in, c), lambda i: (0, 0)),
            pl.BlockSpec((1, c), lambda i: (0, 0)),
            pl.BlockSpec((1, c), lambda i: (0, 0)),
        ],
        out_specs=[
            pl.BlockSpec((tile_dst, c), lambda i: (i, 0)),
            pl.BlockSpec((tile_dst, 1), lambda i: (i, 0)),
            pl.BlockSpec((1, tile_dst), lambda i: (0, i)),
        ],
        out_shape=[
            jax.ShapeDtypeStruct((n_pad, c), jnp.bfloat16),
            jax.ShapeDtypeStruct((n_pad, 1), jnp.float32),
            jax.ShapeDtypeStruct((1, n_pad), jnp.float32),
        ],
        compiler_params=pltpu.CompilerParams(dimension_semantics=("parallel",)),
    )(x, w, att_src, att_dst)

    grid_spec = pltpu.PrefetchScalarGridSpec(
        num_scalar_prefetch=1,
        grid=(n_dst_t, n_src_t),
        in_specs=[
            pl.BlockSpec((tile_dst, 1), lambda i, j, nz: (i, 0)),          # e_dst
            pl.BlockSpec((1, tile_src), lambda i, j, nz: (0, j)),          # e_src
            pl.BlockSpec((n_pad, c), lambda i, j, nz: (0, 0)),             # h (VMEM-resident)
            pl.BlockSpec((tile_dst, tile_src), lambda i, j, nz: (i, j)),   # adj (int8)
            pl.BlockSpec((1, c), lambda i, j, nz: (0, 0)),                 # bias
            pl.BlockSpec((1, c), lambda i, j, nz: (0, 0)),                 # ln gamma
            pl.BlockSpec((1, c), lambda i, j, nz: (0, 0)),                 # ln beta
        ],
        out_specs=[
            pl.BlockSpec((tile_dst, c), lambda i, j, nz: (i, 0)),          # out
            pl.BlockSpec((tile_dst, 1), lambda i, j, nz: (i, 0)),          # lse
        ],
        scratch_shapes=[
            pltpu.VMEM((tile_dst, 1), jnp.float32),   # running max m
            pltpu.VMEM((tile_dst, 1), jnp.float32),   # running denom l
            pltpu.VMEM((tile_dst, c), jnp.float32),   # running numerator acc
        ],
    )
    out, lse = pl.pallas_call(
        functools.partial(gat_attention_kernel, tile_src=tile_src),
        grid_spec=grid_spec,
        out_shape=(
            jax.ShapeDtypeStruct((n_pad, c), jnp.float32),
            jax.ShapeDtypeStruct((n_pad, 1), jnp.float32),
        ),
        compiler_params=pltpu.CompilerParams(
            dimension_semantics=("parallel", "arbitrary"),
            vmem_limit_bytes=32 * 1024 * 1024),
    )(nnz, e_dst, e_src, h_bf16, adj_i8, bias, gamma, beta)
    return out, e_src, e_dst, lse


def pool_fc(h, pool_mask, fcw, fcb):
    b = pool_mask.shape[0]
    n_pad, c = h.shape
    o = fcw.shape[1]
    out = pl.pallas_call(
        pool_fc_kernel,
        grid=(b,),
        in_specs=[
            pl.BlockSpec((n_pad, c), lambda g: (0, 0)),
            pl.BlockSpec((1, n_pad, 1), lambda g: (g, 0, 0)),
            pl.BlockSpec((c, o), lambda g: (0, 0)),
            pl.BlockSpec((1, o), lambda g: (0, 0)),
        ],
        out_specs=pl.BlockSpec((1, 1, o), lambda g: (g, 0, 0)),
        out_shape=jax.ShapeDtypeStruct((b, 1, o), jnp.float32),
        compiler_params=pltpu.CompilerParams(dimension_semantics=("parallel",)),
    )(h, pool_mask, fcw, fcb)
    return out.reshape(b, o)


@functools.partial(jax.jit, static_argnames=("num_graphs",))
def gat_forward(params, x, edge_index, edge_attr, batch, num_graphs):
    del edge_attr  # ignored (no edge_dim in GATConv)
    n, f_in = x.shape
    src, dst = edge_index[0], edge_index[1]

    # tile sizes: lane (src) axis tiles must be multiples of 128
    tile_src = 512 if n > 512 else 128
    tile_dst = 128
    n_pad = _round_up(n, tile_src)

    x_p = jnp.zeros((n_pad, f_in), jnp.float32).at[:n].set(x)

    # int8 dense adjacency with self loops: adj[i, j] = 1 iff edge j -> i
    # (4x less HBM traffic than f32; built once, reused by both layers)
    adj = jnp.zeros((n_pad, n_pad), jnp.int8)
    adj = adj.at[dst, src].set(1)
    diag = jnp.arange(n_pad)
    adj = adj.at[diag, diag].set(1)

    # per-(dst,src)-tile nonzero counts, scalar-prefetched to skip empty tiles
    n_dst_t = n_pad // tile_dst
    n_src_t = n_pad // tile_src
    nnz = adj.astype(jnp.int32).reshape(
        n_dst_t, tile_dst, n_src_t, tile_src).sum(axis=(1, 3))

    h1, es1, ed1, lse1 = gat_layer(
        x_p, adj, nnz, params["w1"], params["att_src1"], params["att_dst1"],
        params["bias1"], params["ln_gamma"], params["ln_beta"],
        tile_dst=tile_dst, tile_src=tile_src)
    h2, es2, ed2, lse2 = gat_layer(
        h1, adj, nnz, params["w2"], params["att_src2"], params["att_dst2"],
        params["bias2"], params["ln_gamma"], params["ln_beta"],
        tile_dst=tile_dst, tile_src=tile_src)

    pool_mask = (batch[None, :] == jnp.arange(num_graphs)[:, None]).astype(jnp.float32)
    pool_mask_p = jnp.zeros((num_graphs, n_pad, 1), jnp.float32).at[:, :n, 0].set(pool_mask)
    out = pool_fc(h2, pool_mask_p, params["fc_w"], params["fc_b"]).reshape(-1)

    # per-edge attention weights (original edges + appended self loops), heads=1.
    # Recomputed O(E) from per-node scalars + per-dst logsumexp (no dense alpha).
    sl = jnp.arange(n)
    e_src_idx = jnp.concatenate([src, sl])
    e_dst_idx = jnp.concatenate([dst, sl])
    ei_full = jnp.stack([e_src_idx, e_dst_idx])

    def edge_alpha(es_row, ed_col, lse):
        raw = ed_col[e_dst_idx, 0] + es_row[0, e_src_idx]
        return jnp.exp(_leaky_relu(raw, 0.2) - lse[e_dst_idx, 0])[:, None]

    w1 = (ei_full, edge_alpha(es1, ed1, lse1))
    w2 = (ei_full, edge_alpha(es2, ed2, lse2))
    return out, w1, w2


# ---------------------------------------------------------------------------
# Deterministic parameter init
# ---------------------------------------------------------------------------
def glorot(key, shape):
    fan_in, fan_out = shape[0], shape[-1]
    limit = (6.0 / (fan_in + fan_out)) ** 0.5
    return jax.random.uniform(key, shape, jnp.float32, -limit, limit)


def init_params(key, atom_feature_dim, hidden, out_channels):
    ks = jax.random.split(key, 8)
    return {
        "w1": glorot(ks[0], (atom_feature_dim, hidden)),
        "att_src1": glorot(ks[1], (1, hidden)),
        "att_dst1": glorot(ks[2], (1, hidden)),
        "bias1": jnp.zeros((1, hidden), jnp.float32),
        "w2": glorot(ks[3], (hidden, hidden)),
        "att_src2": glorot(ks[4], (1, hidden)),
        "att_dst2": glorot(ks[5], (1, hidden)),
        "bias2": jnp.zeros((1, hidden), jnp.float32),
        "ln_gamma": jnp.ones((1, hidden), jnp.float32),
        "ln_beta": jnp.zeros((1, hidden), jnp.float32),
        "fc_w": glorot(ks[6], (hidden, out_channels)),
        "fc_b": jnp.zeros((1, out_channels), jnp.float32),
    }


if __name__ == "__main__":
    ATOM_F = 8      # atom_feature_dim
    HIDDEN = 32     # hidden_channels
    OUT = 4         # out_channels
    N = 16          # total nodes (2 graphs x 8 nodes)
    B = 2           # number of graphs

    key = jax.random.PRNGKey(0)
    k_x, k_p = jax.random.split(key)

    x = jax.random.normal(k_x, (N, ATOM_F), jnp.float32)

    # simple deterministic bidirectional chain edges within each graph
    srcs, dsts = [], []
    for g in range(B):
        base = g * (N // B)
        for i in range(N // B - 1):
            srcs += [base + i, base + i + 1]
            dsts += [base + i + 1, base + i]
    edge_index = jnp.array([srcs, dsts], dtype=jnp.int32)
    edge_attr = jnp.ones((edge_index.shape[1], 3), jnp.float32)  # unused (no edge_dim)
    batch = jnp.array([g for g in range(B) for _ in range(N // B)], dtype=jnp.int32)

    params = init_params(k_p, ATOM_F, HIDDEN, OUT)

    out, (ei1, w1), (ei2, w2) = gat_forward(params, x, edge_index, edge_attr,
                                            batch, num_graphs=B)
    jax.block_until_ready(out)
    jax.block_until_ready(w1)
    jax.block_until_ready(w2)

    assert out.shape == (B * OUT,)
    assert w1.shape == (edge_index.shape[1] + N, 1)
    assert w2.shape == (edge_index.shape[1] + N, 1)
    assert bool(jnp.all(jnp.isfinite(out)))
    assert bool(jnp.all(jnp.isfinite(w1))) and bool(jnp.all(jnp.isfinite(w2)))

    print("KERNEL_OK")
</pallas_src>

<mosaic_0001>
module attributes {stable_mosaic.version = 11 : i64} {
  func.func @project_kernel(%arg0: i32, %arg1: memref<128x8xf32, #tpu.memory_space<vmem>>, %arg2: memref<8x32xf32, #tpu.memory_space<vmem>>, %arg3: memref<1x32xf32, #tpu.memory_space<vmem>>, %arg4: memref<1x32xf32, #tpu.memory_space<vmem>>, %arg5: memref<128x32xbf16, #tpu.memory_space<vmem>>, %arg6: memref<128x1xf32, #tpu.memory_space<vmem>>, %arg7: memref<1x128xf32, #tpu.memory_space<vmem>>) attributes {dimension_semantics = [#tpu.dimension_semantics<parallel>], iteration_bounds = array<i64: 1>, scalar_prefetch = 0 : i64, scratch_operands = 0 : i64, tpu.core_type = #tpu.core_type<tc>, window_params = [{transform_indices = @transform_0, window_bounds = array<i64: 128, 8>}, {pipeline_mode = #tpu.pipeline_mode<synchronous>, transform_indices = @transform_1, window_bounds = array<i64: 8, 32>}, {pipeline_mode = #tpu.pipeline_mode<synchronous>, transform_indices = @transform_2, window_bounds = array<i64: 1, 32>}, {pipeline_mode = #tpu.pipeline_mode<synchronous>, transform_indices = @transform_3, window_bounds = array<i64: 1, 32>}, {transform_indices = @transform_4, window_bounds = array<i64: 128, 32>}, {transform_indices = @transform_5, window_bounds = array<i64: 128, 1>}, {transform_indices = @transform_6, window_bounds = array<i64: 1, 128>}]} {
    %c0 = arith.constant 0 : index
    %c0_0 = arith.constant 0 : index
    %0 = vector.load %arg1[%c0, %c0_0] : memref<128x8xf32, #tpu.memory_space<vmem>>, vector<128x8xf32>
    %c0_1 = arith.constant 0 : index
    %c0_2 = arith.constant 0 : index
    %1 = vector.load %arg2[%c0_1, %c0_2] : memref<8x32xf32, #tpu.memory_space<vmem>>, vector<8x32xf32>
    %cst = arith.constant dense<0.000000e+00> : vector<128x32xf32>
    %2 = tpu.matmul %0, %1, %cst {dimension_numbers = #tpu.dot_dimension_numbers<[1], [0], [0], [1], [0, 0, 1, 1], [], []>} : vector<128x8xf32>, vector<8x32xf32>, vector<128x32xf32> -> vector<128x32xf32>
    %c0_3 = arith.constant 0 : index
    %c0_4 = arith.constant 0 : index
    %3 = vector.load %arg4[%c0_3, %c0_4] : memref<1x32xf32, #tpu.memory_space<vmem>>, vector<1x32xf32>
    %4 = vector.broadcast %3 : vector<1x32xf32> to vector<128x32xf32>
    %5 = arith.mulf %2, %4 : vector<128x32xf32>
    %cst_5 = arith.constant dense<0.000000e+00> : vector<128xf32>
    %6 = vector.multi_reduction <add>, %5, %cst_5 [1] : vector<128x32xf32> to vector<128xf32>
    %7 = vector.shape_cast %6 : vector<128xf32> to vector<128x1xf32>
    %c0_6 = arith.constant 0 : index
    %c0_7 = arith.constant 0 : index
    %8 = vector.load %arg6[%c0_6, %c0_7] : memref<128x1xf32, #tpu.memory_space<vmem>>, vector<128x1xf32>
    tpu.vector_store %arg6[%c0_6, %c0_7], %7 {strides = array<i32>} : memref<128x1xf32, #tpu.memory_space<vmem>>, vector<128x1xf32>,
    %c0_8 = arith.constant 0 : index
    %c0_9 = arith.constant 0 : index
    %9 = vector.load %arg3[%c0_8, %c0_9] : memref<1x32xf32, #tpu.memory_space<vmem>>, vector<1x32xf32>
    %10 = vector.broadcast %9 : vector<1x32xf32> to vector<128x32xf32>
    %11 = arith.mulf %2, %10 : vector<128x32xf32>
    %cst_10 = arith.constant dense<0.000000e+00> : vector<128xf32>
    %12 = vector.multi_reduction <add>, %11, %cst_10 [1] : vector<128x32xf32> to vector<128xf32>
    %13 = vector.shape_cast %12 : vector<128xf32> to vector<128x1xf32>
    %14 = tpu.transpose %13, [1, 0] : vector<128x1xf32> -> vector<1x128xf32>
    %c0_11 = arith.constant 0 : index
    %c0_12 = arith.constant 0 : index
    %15 = vector.load %arg7[%c0_11, %c0_12] : memref<1x128xf32, #tpu.memory_space<vmem>>, vector<1x128xf32>
    tpu.vector_store %arg7[%c0_11, %c0_12], %14 {strides = array<i32>} : memref<1x128xf32, #tpu.memory_space<vmem>>, vector<1x128xf32>,
    %16 = arith.truncf %2 : vector<128x32xf32> to vector<128x32xbf16>
    %c0_13 = arith.constant 0 : index
    %c0_14 = arith.constant 0 : index
    %17 = vector.load %arg5[%c0_13, %c0_14] : memref<128x32xbf16, #tpu.memory_space<vmem>>, vector<128x32xbf16>
    tpu.vector_store %arg5[%c0_13, %c0_14], %16 {strides = array<i32>} : memref<128x32xbf16, #tpu.memory_space<vmem>>, vector<128x32xbf16>,
    return
  }
  func.func @transform_0(%arg0: i32) -> (i32, i32) {
    %c0_i32 = arith.constant 0 : i32
    %c0_i32_0 = arith.constant 0 : i32
    return %arg0, %c0_i32 : i32, i32
  }
  func.func @transform_1(%arg0: i32) -> (i32, i32) {
    %c0_i32 = arith.constant 0 : i32
    %c0_i32_0 = arith.constant 0 : i32
    %c0_i32_1 = arith.constant 0 : i32
    return %c0_i32, %c0_i32_0 : i32, i32
  }
  func.func @transform_2(%arg0: i32) -> (i32, i32) {
    %c0_i32 = arith.constant 0 : i32
    %c0_i32_0 = arith.constant 0 : i32
    %c0_i32_1 = arith.constant 0 : i32
    return %c0_i32, %c0_i32_0 : i32, i32
  }
  func.func @transform_3(%arg0: i32) -> (i32, i32) {
    %c0_i32 = arith.constant 0 : i32
    %c0_i32_0 = arith.constant 0 : i32
    %c0_i32_1 = arith.constant 0 : i32
    return %c0_i32, %c0_i32_0 : i32, i32
  }
  func.func @transform_4(%arg0: i32) -> (i32, i32) {
    %c0_i32 = arith.constant 0 : i32
    %c0_i32_0 = arith.constant 0 : i32
    return %arg0, %c0_i32 : i32, i32
  }
  func.func @transform_5(%arg0: i32) -> (i32, i32) {
    %c0_i32 = arith.constant 0 : i32
    %c0_i32_0 = arith.constant 0 : i32
    return %arg0, %c0_i32 : i32, i32
  }
  func.func @transform_6(%arg0: i32) -> (i32, i32) {
    %c0_i32 = arith.constant 0 : i32
    %c0_i32_0 = arith.constant 0 : i32
    return %c0_i32, %arg0 : i32, i32
  }
}

module attributes {stable_mosaic.version = 11 : i64} {
  func.func @gat_attention_kernel(%arg0: i32, %arg1: i32, %arg2: memref<1x1xi32, #tpu.memory_space<smem>>, %arg3: memref<128x1xf32, #tpu.memory_space<vmem>>, %arg4: memref<1x128xf32, #tpu.memory_space<vmem>>, %arg5: memref<128x32xbf16, #tpu.memory_space<vmem>>, %arg6: memref<128x128xi8, #tpu.memory_space<vmem>>, %arg7: memref<1x32xf32, #tpu.memory_space<vmem>>, %arg8: memref<1x32xf32, #tpu.memory_space<vmem>>, %arg9: memref<1x32xf32, #tpu.memory_space<vmem>>, %arg10: memref<128x32xf32, #tpu.memory_space<vmem>>, %arg11: memref<128x1xf32, #tpu.memory_space<vmem>>, %arg12: memref<128x1xf32, #tpu.memory_space<vmem>>, %arg13: memref<128x1xf32, #tpu.memory_space<vmem>>, %arg14: memref<128x32xf32, #tpu.memory_space<vmem>>) attributes {dimension_semantics = [#tpu.dimension_semantics<parallel>, #tpu.dimension_semantics<arbitrary>], iteration_bounds = array<i64: 1, 1>, scalar_prefetch = 1 : i64, scratch_operands = 3 : i64, tpu.core_type = #tpu.core_type<tc>, window_params = [{transform_indices = @transform_0, window_bounds = array<i64: 128, 1>}, {transform_indices = @transform_1, window_bounds = array<i64: 1, 128>}, {pipeline_mode = #tpu.pipeline_mode<synchronous>, transform_indices = @transform_2, window_bounds = array<i64: 128, 32>}, {transform_indices = @transform_3, window_bounds = array<i64: 128, 128>}, {pipeline_mode = #tpu.pipeline_mode<synchronous>, transform_indices = @transform_4, window_bounds = array<i64: 1, 32>}, {pipeline_mode = #tpu.pipeline_mode<synchronous>, transform_indices = @transform_5, window_bounds = array<i64: 1, 32>}, {pipeline_mode = #tpu.pipeline_mode<synchronous>, transform_indices = @transform_6, window_bounds = array<i64: 1, 32>}, {transform_indices = @transform_7, window_bounds = array<i64: 128, 32>}, {transform_indices = @transform_8, window_bounds = array<i64: 128, 1>}]} {
    %c0_i32 = arith.constant 0 : i32
    %0 = arith.cmpi eq, %arg1, %c0_i32 : i32
    %1 = arith.extui %0 : i1 to i32
    %c0_i32_0 = arith.constant 0 : i32
    %2 = arith.cmpi ne, %1, %c0_i32_0 : i32
    scf.if %2 {
      %cst = arith.constant -1.000000e+30 : f32
      %12 = vector.broadcast %cst : f32 to vector<128x1xf32>
      %c0 = arith.constant 0 : index
      %c0_5 = arith.constant 0 : index
      %13 = vector.load %arg12[%c0, %c0_5] : memref<128x1xf32, #tpu.memory_space<vmem>>, vector<128x1xf32>
      tpu.vector_store %arg12[%c0, %c0_5], %12 {strides = array<i32>} : memref<128x1xf32, #tpu.memory_space<vmem>>, vector<128x1xf32>,
      %cst_6 = arith.constant 0.000000e+00 : f32
      %14 = vector.broadcast %cst_6 : f32 to vector<128x1xf32>
      %c0_7 = arith.constant 0 : index
      %c0_8 = arith.constant 0 : index
      %15 = vector.load %arg13[%c0_7, %c0_8] : memref<128x1xf32, #tpu.memory_space<vmem>>, vector<128x1xf32>
      tpu.vector_store %arg13[%c0_7, %c0_8], %14 {strides = array<i32>} : memref<128x1xf32, #tpu.memory_space<vmem>>, vector<128x1xf32>,
      %cst_9 = arith.constant 0.000000e+00 : f32
      %16 = vector.broadcast %cst_9 : f32 to vector<128x32xf32>
      %c0_10 = arith.constant 0 : index
      %c0_11 = arith.constant 0 : index
      %17 = vector.load %arg14[%c0_10, %c0_11] : memref<128x32xf32, #tpu.memory_space<vmem>>, vector<128x32xf32>
      tpu.vector_store %arg14[%c0_10, %c0_11], %16 {strides = array<i32>} : memref<128x32xf32, #tpu.memory_space<vmem>>, vector<128x32xf32>,
    } else {
    }
    %3 = arith.index_cast %arg0 : i32 to index
    %4 = arith.index_cast %arg1 : i32 to index
    %5 = memref.load %arg2[%3, %4] : memref<1x1xi32, #tpu.memory_space<smem>>
    %c0_i32_1 = arith.constant 0 : i32
    %6 = arith.cmpi sgt, %5, %c0_i32_1 : i32
    %7 = arith.extui %6 : i1 to i32
    %c0_i32_2 = arith.constant 0 : i32
    %8 = arith.cmpi ne, %7, %c0_i32_2 : i32
    scf.if %8 {
      %c0 = arith.constant 0 : index
      %c0_5 = arith.constant 0 : index
      %12 = vector.load %arg3[%c0, %c0_5] : memref<128x1xf32, #tpu.memory_space<vmem>>, vector<128x1xf32>
      %c0_6 = arith.constant 0 : index
      %c0_7 = arith.constant 0 : index
      %13 = vector.load %arg4[%c0_6, %c0_7] : memref<1x128xf32, #tpu.memory_space<vmem>>, vector<1x128xf32>
      %14 = vector.broadcast %12 : vector<128x1xf32> to vector<128x128xf32>
      %15 = vector.broadcast %13 : vector<1x128xf32> to vector<128x128xf32>
      %16 = arith.addf %14, %15 : vector<128x128xf32>
      %cst = arith.constant 0.000000e+00 : f32
      %17 = vector.broadcast %cst : f32 to vector<128x128xf32>
      %18 = arith.cmpf ogt, %16, %17 : vector<128x128xf32>
      %cst_8 = arith.constant 2.000000e-01 : f32
      %19 = vector.broadcast %cst_8 : f32 to vector<128x128xf32>
      %20 = arith.mulf %19, %16 : vector<128x128xf32>
      %21 = arith.select %18, %16, %20 : vector<128x128xi1>, vector<128x128xf32>
      %c0_9 = arith.constant 0 : index
      %c0_10 = arith.constant 0 : index
      %22 = vector.load %arg6[%c0_9, %c0_10] : memref<128x128xi8, #tpu.memory_space<vmem>>, vector<128x128xi8>
      %23 = arith.sitofp %22 : vector<128x128xi8> to vector<128x128xf32>
      %cst_11 = arith.constant 1.000000e+00 : f32
      %24 = vector.broadcast %cst_11 : f32 to vector<128x128xf32>
      %25 = arith.subf %23, %24 : vector<128x128xf32>
      %cst_12 = arith.constant 1.000000e+30 : f32
      %26 = vector.broadcast %cst_12 : f32 to vector<128x128xf32>
      %27 = arith.mulf %25, %26 : vector<128x128xf32>
      %28 = arith.addf %21, %27 : vector<128x128xf32>
      %cst_13 = arith.constant dense<0xFF800000> : vector<128xf32>
      %29 = vector.multi_reduction <maximumf>, %28, %cst_13 [1] : vector<128x128xf32> to vector<128xf32>
      %30 = vector.shape_cast %29 : vector<128xf32> to vector<128x1xf32>
      %c0_14 = arith.constant 0 : index
      %c0_15 = arith.constant 0 : index
      %31 = vector.load %arg12[%c0_14, %c0_15] : memref<128x1xf32, #tpu.memory_space<vmem>>, vector<128x1xf32>
      %32 = arith.maximumf %31, %30 : vector<128x1xf32>
      %c0_16 = arith.constant 0 : index
      %c0_17 = arith.constant 0 : index
      %33 = vector.load %arg12[%c0_16, %c0_17] : memref<128x1xf32, #tpu.memory_space<vmem>>, vector<128x1xf32>
      %34 = arith.subf %33, %32 : vector<128x1xf32>
      %35 = math.exp %34 : vector<128x1xf32>
      %36 = vector.broadcast %32 : vector<128x1xf32> to vector<128x128xf32>
      %37 = arith.subf %28, %36 : vector<128x128xf32>
      %38 = math.exp %37 : vector<128x128xf32>
      %c0_18 = arith.constant 0 : index
      %c0_19 = arith.constant 0 : index
      %39 = vector.load %arg13[%c0_18, %c0_19] : memref<128x1xf32, #tpu.memory_space<vmem>>, vector<128x1xf32>
      %40 = arith.mulf %35, %39 : vector<128x1xf32>
      %cst_20 = arith.constant dense<0.000000e+00> : vector<128xf32>
      %41 = vector.multi_reduction <add>, %38, %cst_20 [1] : vector<128x128xf32> to vector<128xf32>
      %42 = vector.shape_cast %41 : vector<128xf32> to vector<128x1xf32>
      %43 = arith.addf %40, %42 : vector<128x1xf32>
      %c0_21 = arith.constant 0 : index
      %c0_22 = arith.constant 0 : index
      %44 = vector.load %arg13[%c0_21, %c0_22] : memref<128x1xf32, #tpu.memory_space<vmem>>, vector<128x1xf32>
      tpu.vector_store %arg13[%c0_21, %c0_22], %43 {strides = array<i32>} : memref<128x1xf32, #tpu.memory_space<vmem>>, vector<128x1xf32>,
      %c128_i32 = arith.constant 128 : i32
      %45 = arith.muli %arg1, %c128_i32 : i32
      %46 = tpu.assume_multiple %45, 128 : i32
      %47 = arith.index_cast %46 : i32 to index
      %c0_23 = arith.constant 0 : index
      %48 = vector.load %arg5[%47, %c0_23] : memref<128x32xbf16, #tpu.memory_space<vmem>>, vector<128x32xbf16>
      %c0_24 = arith.constant 0 : index
      %c0_25 = arith.constant 0 : index
      %49 = vector.load %arg14[%c0_24, %c0_25] : memref<128x32xf32, #tpu.memory_space<vmem>>, vector<128x32xf32>
      %50 = vector.broadcast %35 : vector<128x1xf32> to vector<128x32xf32>
      %51 = arith.mulf %50, %49 : vector<128x32xf32>
      %52 = arith.truncf %38 : vector<128x128xf32> to vector<128x128xbf16>
      %cst_26 = arith.constant dense<0.000000e+00> : vector<128x32xf32>
      %53 = tpu.matmul %52, %48, %cst_26 {dimension_numbers = #tpu.dot_dimension_numbers<[1], [0], [0], [1], [0, 0, 1, 1], [], []>} : vector<128x128xbf16>, vector<128x32xbf16>, vector<128x32xf32> -> vector<128x32xf32>
      %54 = arith.addf %51, %53 : vector<128x32xf32>
      %c0_27 = arith.constant 0 : index
      %c0_28 = arith.constant 0 : index
      %55 = vector.load %arg14[%c0_27, %c0_28] : memref<128x32xf32, #tpu.memory_space<vmem>>, vector<128x32xf32>
      tpu.vector_store %arg14[%c0_27, %c0_28], %54 {strides = array<i32>} : memref<128x32xf32, #tpu.memory_space<vmem>>, vector<128x32xf32>,
      %c0_29 = arith.constant 0 : index
      %c0_30 = arith.constant 0 : index
      %56 = vector.load %arg12[%c0_29, %c0_30] : memref<128x1xf32, #tpu.memory_space<vmem>>, vector<128x1xf32>
      tpu.vector_store %arg12[%c0_29, %c0_30], %32 {strides = array<i32>} : memref<128x1xf32, #tpu.memory_space<vmem>>, vector<128x1xf32>,
    } else {
    }
    %c0_i32_3 = arith.constant 0 : i32
    %9 = arith.cmpi eq, %arg1, %c0_i32_3 : i32
    %10 = arith.extui %9 : i1 to i32
    %c0_i32_4 = arith.constant 0 : i32
    %11 = arith.cmpi ne, %10, %c0_i32_4 : i32
    scf.if %11 {
      %c0 = arith.constant 0 : index
      %c0_5 = arith.constant 0 : index
      %12 = vector.load %arg13[%c0, %c0_5] : memref<128x1xf32, #tpu.memory_space<vmem>>, vector<128x1xf32>
      %c0_6 = arith.constant 0 : index
      %c0_7 = arith.constant 0 : index
      %13 = vector.load %arg14[%c0_6, %c0_7] : memref<128x32xf32, #tpu.memory_space<vmem>>, vector<128x32xf32>
      %14 = vector.broadcast %12 : vector<128x1xf32> to vector<128x32xf32>
      %15 = arith.divf %13, %14 : vector<128x32xf32>
      %c0_8 = arith.constant 0 : index
      %c0_9 = arith.constant 0 : index
      %16 = vector.load %arg7[%c0_8, %c0_9] : memref<1x32xf32, #tpu.memory_space<vmem>>, vector<1x32xf32>
      %17 = vector.broadcast %16 : vector<1x32xf32> to vector<128x32xf32>
      %18 = arith.addf %15, %17 : vector<128x32xf32>
      %cst = arith.constant dense<0.000000e+00> : vector<128xf32>
      %19 = vector.multi_reduction <add>, %18, %cst [1] : vector<128x32xf32> to vector<128xf32>
      %20 = vector.shape_cast %19 : vector<128xf32> to vector<128x1xf32>
      %cst_10 = arith.constant 3.200000e+01 : f32
      %21 = vector.broadcast %cst_10 : f32 to vector<128x1xf32>
      %22 = arith.divf %20, %21 : vector<128x1xf32>
      %23 = vector.broadcast %22 : vector<128x1xf32> to vector<128x32xf32>
      %24 = arith.subf %18, %23 : vector<128x32xf32>
      %25 = arith.mulf %24, %24 : vector<128x32xf32>
      %cst_11 = arith.constant dense<0.000000e+00> : vector<128xf32>
      %26 = vector.multi_reduction <add>, %25, %cst_11 [1] : vector<128x32xf32> to vector<128xf32>
      %27 = vector.shape_cast %26 : vector<128xf32> to vector<128x1xf32>
      %cst_12 = arith.constant 3.200000e+01 : f32
      %28 = vector.broadcast %cst_12 : f32 to vector<128x1xf32>
      %29 = arith.divf %27, %28 : vector<128x1xf32>
      %30 = vector.broadcast %22 : vector<128x1xf32> to vector<128x32xf32>
      %31 = arith.subf %18, %30 : vector<128x32xf32>
      %cst_13 = arith.constant 9.99999974E-6 : f32
      %32 = vector.broadcast %cst_13 : f32 to vector<128x1xf32>
      %33 = arith.addf %29, %32 : vector<128x1xf32>
      %34 = math.rsqrt %33 : vector<128x1xf32>
      %35 = vector.broadcast %34 : vector<128x1xf32> to vector<128x32xf32>
      %36 = arith.mulf %31, %35 : vector<128x32xf32>
      %c0_14 = arith.constant 0 : index
      %c0_15 = arith.constant 0 : index
      %37 = vector.load %arg8[%c0_14, %c0_15] : memref<1x32xf32, #tpu.memory_space<vmem>>, vector<1x32xf32>
      %38 = vector.broadcast %37 : vector<1x32xf32> to vector<128x32xf32>
      %39 = arith.mulf %36, %38 : vector<128x32xf32>
      %c0_16 = arith.constant 0 : index
      %c0_17 = arith.constant 0 : index
      %40 = vector.load %arg9[%c0_16, %c0_17] : memref<1x32xf32, #tpu.memory_space<vmem>>, vector<1x32xf32>
      %41 = vector.broadcast %40 : vector<1x32xf32> to vector<128x32xf32>
      %42 = arith.addf %39, %41 : vector<128x32xf32>
      %cst_18 = arith.constant 0.000000e+00 : f32
      %43 = vector.broadcast %cst_18 : f32 to vector<128x32xf32>
      %44 = arith.cmpf ogt, %42, %43 : vector<128x32xf32>
      %cst_19 = arith.constant 1.000000e-01 : f32
      %45 = vector.broadcast %cst_19 : f32 to vector<128x32xf32>
      %46 = arith.mulf %45, %42 : vector<128x32xf32>
      %47 = arith.select %44, %42, %46 : vector<128x32xi1>, vector<128x32xf32>
      %c0_20 = arith.constant 0 : index
      %c0_21 = arith.constant 0 : index
      %48 = vector.load %arg10[%c0_20, %c0_21] : memref<128x32xf32, #tpu.memory_space<vmem>>, vector<128x32xf32>
      tpu.vector_store %arg10[%c0_20, %c0_21], %47 {strides = array<i32>} : memref<128x32xf32, #tpu.memory_space<vmem>>, vector<128x32xf32>,
      %c0_22 = arith.constant 0 : index
      %c0_23 = arith.constant 0 : index
      %49 = vector.load %arg12[%c0_22, %c0_23] : memref<128x1xf32, #tpu.memory_space<vmem>>, vector<128x1xf32>
      %50 = math.log %12 : vector<128x1xf32>
      %51 = arith.addf %49, %50 : vector<128x1xf32>
      %c0_24 = arith.constant 0 : index
      %c0_25 = arith.constant 0 : index
      %52 = vector.load %arg11[%c0_24, %c0_25] : memref<128x1xf32, #tpu.memory_space<vmem>>, vector<128x1xf32>
      tpu.vector_store %arg11[%c0_24, %c0_25], %51 {strides = array<i32>} : memref<128x1xf32, #tpu.memory_space<vmem>>, vector<128x1xf32>,
    } else {
    }
    return
  }
  func.func @transform_0(%arg0: i32, %arg1: i32, %arg2: memref<1x1xi32, #tpu.memory_space<smem>>) -> (i32, i32) {
    %c0_i32 = arith.constant 0 : i32
    %c0_i32_0 = arith.constant 0 : i32
    return %arg0, %c0_i32 : i32, i32
  }
  func.func @transform_1(%arg0: i32, %arg1: i32, %arg2: memref<1x1xi32, #tpu.memory_space<smem>>) -> (i32, i32) {
    %c0_i32 = arith.constant 0 : i32
    %c0_i32_0 = arith.constant 0 : i32
    return %c0_i32, %arg1 : i32, i32
  }
  func.func @transform_2(%arg0: i32, %arg1: i32, %arg2: memref<1x1xi32, #tpu.memory_space<smem>>) -> (i32, i32) {
    %c0_i32 = arith.constant 0 : i32
    %c0_i32_0 = arith.constant 0 : i32
    %c0_i32_1 = arith.constant 0 : i32
    return %c0_i32, %c0_i32_0 : i32, i32
  }
  func.func @transform_3(%arg0: i32, %arg1: i32, %arg2: memref<1x1xi32, #tpu.memory_space<smem>>) -> (i32, i32) {
    %c0_i32 = arith.constant 0 : i32
    return %arg0, %arg1 : i32, i32
  }
  func.func @transform_4(%arg0: i32, %arg1: i32, %arg2: memref<1x1xi32, #tpu.memory_space<smem>>) -> (i32, i32) {
    %c0_i32 = arith.constant 0 : i32
    %c0_i32_0 = arith.constant 0 : i32
    %c0_i32_1 = arith.constant 0 : i32
    return %c0_i32, %c0_i32_0 : i32, i32
  }
  func.func @transform_5(%arg0: i32, %arg1: i32, %arg2: memref<1x1xi32, #tpu.memory_space<smem>>) -> (i32, i32) {
    %c0_i32 = arith.constant 0 : i32
    %c0_i32_0 = arith.constant 0 : i32
    %c0_i32_1 = arith.constant 0 : i32
    return %c0_i32, %c0_i32_0 : i32, i32
  }
  func.func @transform_6(%arg0: i32, %arg1: i32, %arg2: memref<1x1xi32, #tpu.memory_space<smem>>) -> (i32, i32) {
    %c0_i32 = arith.constant 0 : i32
    %c0_i32_0 = arith.constant 0 : i32
    %c0_i32_1 = arith.constant 0 : i32
    return %c0_i32, %c0_i32_0 : i32, i32
  }
  func.func @transform_7(%arg0: i32, %arg1: i32, %arg2: memref<1x1xi32, #tpu.memory_space<smem>>) -> (i32, i32) {
    %c0_i32 = arith.constant 0 : i32
    %c0_i32_0 = arith.constant 0 : i32
    return %arg0, %c0_i32 : i32, i32
  }
  func.func @transform_8(%arg0: i32, %arg1: i32, %arg2: memref<1x1xi32, #tpu.memory_space<smem>>) -> (i32, i32) {
    %c0_i32 = arith.constant 0 : i32
    %c0_i32_0 = arith.constant 0 : i32
    return %arg0, %c0_i32 : i32, i32
  }
}

module attributes {stable_mosaic.version = 11 : i64} {
  func.func @project_kernel(%arg0: i32, %arg1: memref<128x32xf32, #tpu.memory_space<vmem>>, %arg2: memref<32x32xf32, #tpu.memory_space<vmem>>, %arg3: memref<1x32xf32, #tpu.memory_space<vmem>>, %arg4: memref<1x32xf32, #tpu.memory_space<vmem>>, %arg5: memref<128x32xbf16, #tpu.memory_space<vmem>>, %arg6: memref<128x1xf32, #tpu.memory_space<vmem>>, %arg7: memref<1x128xf32, #tpu.memory_space<vmem>>) attributes {dimension_semantics = [#tpu.dimension_semantics<parallel>], iteration_bounds = array<i64: 1>, scalar_prefetch = 0 : i64, scratch_operands = 0 : i64, tpu.core_type = #tpu.core_type<tc>, window_params = [{transform_indices = @transform_0, window_bounds = array<i64: 128, 32>}, {pipeline_mode = #tpu.pipeline_mode<synchronous>, transform_indices = @transform_1, window_bounds = array<i64: 32, 32>}, {pipeline_mode = #tpu.pipeline_mode<synchronous>, transform_indices = @transform_2, window_bounds = array<i64: 1, 32>}, {pipeline_mode = #tpu.pipeline_mode<synchronous>, transform_indices = @transform_3, window_bounds = array<i64: 1, 32>}, {transform_indices = @transform_4, window_bounds = array<i64: 128, 32>}, {transform_indices = @transform_5, window_bounds = array<i64: 128, 1>}, {transform_indices = @transform_6, window_bounds = array<i64: 1, 128>}]} {
    %c0 = arith.constant 0 : index
    %c0_0 = arith.constant 0 : index
    %0 = vector.load %arg1[%c0, %c0_0] : memref<128x32xf32, #tpu.memory_space<vmem>>, vector<128x32xf32>
    %c0_1 = arith.constant 0 : index
    %c0_2 = arith.constant 0 : index
    %1 = vector.load %arg2[%c0_1, %c0_2] : memref<32x32xf32, #tpu.memory_space<vmem>>, vector<32x32xf32>
    %cst = arith.constant dense<0.000000e+00> : vector<128x32xf32>
    %2 = tpu.matmul %0, %1, %cst {dimension_numbers = #tpu.dot_dimension_numbers<[1], [0], [0], [1], [0, 0, 1, 1], [], []>} : vector<128x32xf32>, vector<32x32xf32>, vector<128x32xf32> -> vector<128x32xf32>
    %c0_3 = arith.constant 0 : index
    %c0_4 = arith.constant 0 : index
    %3 = vector.load %arg4[%c0_3, %c0_4] : memref<1x32xf32, #tpu.memory_space<vmem>>, vector<1x32xf32>
    %4 = vector.broadcast %3 : vector<1x32xf32> to vector<128x32xf32>
    %5 = arith.mulf %2, %4 : vector<128x32xf32>
    %cst_5 = arith.constant dense<0.000000e+00> : vector<128xf32>
    %6 = vector.multi_reduction <add>, %5, %cst_5 [1] : vector<128x32xf32> to vector<128xf32>
    %7 = vector.shape_cast %6 : vector<128xf32> to vector<128x1xf32>
    %c0_6 = arith.constant 0 : index
    %c0_7 = arith.constant 0 : index
    %8 = vector.load %arg6[%c0_6, %c0_7] : memref<128x1xf32, #tpu.memory_space<vmem>>, vector<128x1xf32>
    tpu.vector_store %arg6[%c0_6, %c0_7], %7 {strides = array<i32>} : memref<128x1xf32, #tpu.memory_space<vmem>>, vector<128x1xf32>,
    %c0_8 = arith.constant 0 : index
    %c0_9 = arith.constant 0 : index
    %9 = vector.load %arg3[%c0_8, %c0_9] : memref<1x32xf32, #tpu.memory_space<vmem>>, vector<1x32xf32>
    %10 = vector.broadcast %9 : vector<1x32xf32> to vector<128x32xf32>
    %11 = arith.mulf %2, %10 : vector<128x32xf32>
    %cst_10 = arith.constant dense<0.000000e+00> : vector<128xf32>
    %12 = vector.multi_reduction <add>, %11, %cst_10 [1] : vector<128x32xf32> to vector<128xf32>
    %13 = vector.shape_cast %12 : vector<128xf32> to vector<128x1xf32>
    %14 = tpu.transpose %13, [1, 0] : vector<128x1xf32> -> vector<1x128xf32>
    %c0_11 = arith.constant 0 : index
    %c0_12 = arith.constant 0 : index
    %15 = vector.load %arg7[%c0_11, %c0_12] : memref<1x128xf32, #tpu.memory_space<vmem>>, vector<1x128xf32>
    tpu.vector_store %arg7[%c0_11, %c0_12], %14 {strides = array<i32>} : memref<1x128xf32, #tpu.memory_space<vmem>>, vector<1x128xf32>,
    %16 = arith.truncf %2 : vector<128x32xf32> to vector<128x32xbf16>
    %c0_13 = arith.constant 0 : index
    %c0_14 = arith.constant 0 : index
    %17 = vector.load %arg5[%c0_13, %c0_14] : memref<128x32xbf16, #tpu.memory_space<vmem>>, vector<128x32xbf16>
    tpu.vector_store %arg5[%c0_13, %c0_14], %16 {strides = array<i32>} : memref<128x32xbf16, #tpu.memory_space<vmem>>, vector<128x32xbf16>,
    return
  }
  func.func @transform_0(%arg0: i32) -> (i32, i32) {
    %c0_i32 = arith.constant 0 : i32
    %c0_i32_0 = arith.constant 0 : i32
    return %arg0, %c0_i32 : i32, i32
  }
  func.func @transform_1(%arg0: i32) -> (i32, i32) {
    %c0_i32 = arith.constant 0 : i32
    %c0_i32_0 = arith.constant 0 : i32
    %c0_i32_1 = arith.constant 0 : i32
    return %c0_i32, %c0_i32_0 : i32, i32
  }
  func.func @transform_2(%arg0: i32) -> (i32, i32) {
    %c0_i32 = arith.constant 0 : i32
    %c0_i32_0 = arith.constant 0 : i32
    %c0_i32_1 = arith.constant 0 : i32
    return %c0_i32, %c0_i32_0 : i32, i32
  }
  func.func @transform_3(%arg0: i32) -> (i32, i32) {
    %c0_i32 = arith.constant 0 : i32
    %c0_i32_0 = arith.constant 0 : i32
    %c0_i32_1 = arith.constant 0 : i32
    return %c0_i32, %c0_i32_0 : i32, i32
  }
  func.func @transform_4(%arg0: i32) -> (i32, i32) {
    %c0_i32 = arith.constant 0 : i32
    %c0_i32_0 = arith.constant 0 : i32
    return %arg0, %c0_i32 : i32, i32
  }
  func.func @transform_5(%arg0: i32) -> (i32, i32) {
    %c0_i32 = arith.constant 0 : i32
    %c0_i32_0 = arith.constant 0 : i32
    return %arg0, %c0_i32 : i32, i32
  }
  func.func @transform_6(%arg0: i32) -> (i32, i32) {
    %c0_i32 = arith.constant 0 : i32
    %c0_i32_0 = arith.constant 0 : i32
    return %c0_i32, %arg0 : i32, i32
  }
}

module attributes {stable_mosaic.version = 11 : i64} {
  func.func @pool_fc_kernel(%arg0: i32, %arg1: memref<128x32xf32, #tpu.memory_space<vmem>>, %arg2: memref<1x128x1xf32, #tpu.memory_space<vmem>>, %arg3: memref<32x4xf32, #tpu.memory_space<vmem>>, %arg4: memref<1x4xf32, #tpu.memory_space<vmem>>, %arg5: memref<1x1x4xf32, #tpu.memory_space<vmem>>) attributes {dimension_semantics = [#tpu.dimension_semantics<parallel>], iteration_bounds = array<i64: 2>, scalar_prefetch = 0 : i64, scratch_operands = 0 : i64, tpu.core_type = #tpu.core_type<tc>, window_params = [{pipeline_mode = #tpu.pipeline_mode<synchronous>, transform_indices = @transform_0, window_bounds = array<i64: 128, 32>}, {transform_indices = @transform_1, window_bounds = array<i64: 1, 128, 1>}, {pipeline_mode = #tpu.pipeline_mode<synchronous>, transform_indices = @transform_2, window_bounds = array<i64: 32, 4>}, {pipeline_mode = #tpu.pipeline_mode<synchronous>, transform_indices = @transform_3, window_bounds = array<i64: 1, 4>}, {transform_indices = @transform_4, window_bounds = array<i64: 1, 1, 4>}]} {
    %c0 = arith.constant 0 : index
    %c0_0 = arith.constant 0 : index
    %0 = vector.load %arg1[%c0, %c0_0] : memref<128x32xf32, #tpu.memory_space<vmem>>, vector<128x32xf32>
    %c0_1 = arith.constant 0 : index
    %c0_2 = arith.constant 0 : index
    %c0_3 = arith.constant 0 : index
    %1 = vector.load %arg2[%c0_1, %c0_2, %c0_3] : memref<1x128x1xf32, #tpu.memory_space<vmem>>, vector<1x128x1xf32>
    %2 = vector.shape_cast %1 : vector<1x128x1xf32> to vector<128x1xf32>
    %cst = arith.constant 0.000000e+00 : f32
    %3 = vector.broadcast %cst : f32 to vector<128x1xf32>
    %4 = arith.cmpf ogt, %2, %3 : vector<128x1xf32>
    %cst_4 = arith.constant -1.000000e+30 : f32
    %5 = vector.shape_cast %4 : vector<128x1xi1> to vector<128x1xi1>
    %6 = vector.broadcast %5 : vector<128x1xi1> to vector<128x32xi1>
    %7 = vector.broadcast %cst_4 : f32 to vector<128x32xf32>
    %8 = arith.select %6, %0, %7 : vector<128x32xi1>, vector<128x32xf32>
    %cst_5 = arith.constant dense<0xFF800000> : vector<32xf32>
    %9 = vector.multi_reduction <maximumf>, %8, %cst_5 [0] : vector<128x32xf32> to vector<32xf32>
    %10 = vector.shape_cast %9 : vector<32xf32> to vector<1x32xf32>
    %cst_6 = arith.constant 0.000000e+00 : f32
    %11 = vector.broadcast %cst_6 : f32 to vector<1x32xf32>
    %12 = arith.maximumf %10, %11 : vector<1x32xf32>
    %c0_7 = arith.constant 0 : index
    %c0_8 = arith.constant 0 : index
    %13 = vector.load %arg3[%c0_7, %c0_8] : memref<32x4xf32, #tpu.memory_space<vmem>>, vector<32x4xf32>
    %cst_9 = arith.constant dense<0.000000e+00> : vector<1x4xf32>
    %14 = tpu.matmul %12, %13, %cst_9 {dimension_numbers = #tpu.dot_dimension_numbers<[1], [0], [0], [1], [0, 0, 1, 1], [], []>} : vector<1x32xf32>, vector<32x4xf32>, vector<1x4xf32> -> vector<1x4xf32>
    %c0_10 = arith.constant 0 : index
    %c0_11 = arith.constant 0 : index
    %15 = vector.load %arg4[%c0_10, %c0_11] : memref<1x4xf32, #tpu.memory_space<vmem>>, vector<1x4xf32>
    %16 = arith.addf %14, %15 : vector<1x4xf32>
    %c0_12 = arith.constant 0 : index
    %c0_13 = arith.constant 0 : index
    %c0_14 = arith.constant 0 : index
    %17 = vector.load %arg5[%c0_12, %c0_13, %c0_14] : memref<1x1x4xf32, #tpu.memory_space<vmem>>, vector<1x1x4xf32>
    %18 = vector.shape_cast %17 : vector<1x1x4xf32> to vector<1x4xf32>
    %19 = vector.shape_cast %16 : vector<1x4xf32> to vector<1x1x4xf32>
    tpu.vector_store %arg5[%c0_12, %c0_13, %c0_14], %19 {strides = array<i32>} : memref<1x1x4xf32, #tpu.memory_space<vmem>>, vector<1x1x4xf32>,
    return
  }
  func.func @transform_0(%arg0: i32) -> (i32, i32) {
    %c0_i32 = arith.constant 0 : i32
    %c0_i32_0 = arith.constant 0 : i32
    %c0_i32_1 = arith.constant 0 : i32
    return %c0_i32, %c0_i32_0 : i32, i32
  }
  func.func @transform_1(%arg0: i32) -> (i32, i32, i32) {
    %c0_i32 = arith.constant 0 : i32
    %c0_i32_0 = arith.constant 0 : i32
    %c0_i32_1 = arith.constant 0 : i32
    return %arg0, %c0_i32, %c0_i32_0 : i32, i32, i32
  }
  func.func @transform_2(%arg0: i32) -> (i32, i32) {
    %c0_i32 = arith.constant 0 : i32
    %c0_i32_0 = arith.constant 0 : i32
    %c0_i32_1 = arith.constant 0 : i32
    return %c0_i32, %c0_i32_0 : i32, i32
  }
  func.func @transform_3(%arg0: i32) -> (i32, i32) {
    %c0_i32 = arith.constant 0 : i32
    %c0_i32_0 = arith.constant 0 : i32
    %c0_i32_1 = arith.constant 0 : i32
    return %c0_i32, %c0_i32_0 : i32, i32
  }
  func.func @transform_4(%arg0: i32) -> (i32, i32, i32) {
    %c0_i32 = arith.constant 0 : i32
    %c0_i32_0 = arith.constant 0 : i32
    %c0_i32_1 = arith.constant 0 : i32
    return %arg0, %c0_i32, %c0_i32_0 : i32, i32, i32
  }
}

</mosaic_0001>

<bundles_post_ra>
// kernel: gat_forward.5
= control target key start
LH: loop header
LB: loop body
LE: loop exit
PB: predicated region body
PF: predicated region fallthrough
CT: control target
= control target key end

     0   :  { %vm37_vm0 = vcmask 64512   ;;  %vm488_vm1 = vcmask 257024   ;;  %vm254_vm2 = vcmask 261120   ;;  %vm303_vm3 = vcmask 7168   ;;  %s1006_s1 = inlined_call_operand.vmem [shape: f32[8,32], index: 1, kind: input, shape index: {}]   ;;  %s1007_s0 = inlined_call_operand.vmem [shape: f32[128,8], index: 0, kind: input, shape index: {}]   ;;  %s1008_s2 = inlined_call_operand.vmem [shape: f32[1,32], index: 2, kind: input, shape index: {}]   ;;  %s1009_s4 = inlined_call_operand.vmem [shape: bf16[128,32], index: 4, kind: output, shape index: {0}]   ;;  %s1010_s3 = inlined_call_operand.vmem [shape: f32[1,32], index: 3, kind: input, shape index: {}]   ;;  %s1011_s5 = inlined_call_operand.vmem [shape: f32[128,1], index: 5, kind: output, shape index: {1}]   ;;  %s1012_s6 = inlined_call_operand.vmem [shape: f32[1,128], index: 6, kind: output, shape index: {2}]  }
   0x1   :  { %v36_v0 = vld [vmem:[%s1006_s1] sm:$0xff]  ;;  %v21_v2 = vld [vmem:[%s1007_s0 + $0x8] sm:$0xff]  ;;  %v22_v3 = vld [vmem:[%s1007_s0 + $0x10] sm:$0xff] }
   0x2   :  { %v20_v1 = vld [vmem:[%s1007_s0] sm:$0xff]  ;;  %584 = vmatprep.subr.mxu0 %v36_v0  ;;  %610 = vmatprep.subr.mxu1 %v36_v0  ;;  %v29_v5 = vld [vmem:[%s1007_s0 + $0x48] sm:$0xff]  ;;  %v30_v6 = vld [vmem:[%s1007_s0 + $0x50] sm:$0xff] }
   0x3   :  { %586 = vmatprep.mubr.msk.f32.mxu0 %vm37_vm0, %v20_v1  ;;  %v28_v4 = vld [vmem:[%s1007_s0 + $0x40] sm:$0xff]  ;;  %585 = vmatpush3.msra.mxu0 %v36_v0  ;;  %v23_v7 = vld [vmem:[%s1007_s0 + $0x18] sm:$0xff]  ;;  %v25_v11 = vld [vmem:[%s1007_s0 + $0x28] sm:$0xff] }
   0x4   :  { %587 = vmatmul.mubr.msk.f32.vlgmr.msra.gmra.mrb[0].mxu0 %vm37_vm0, %v21_v2  ;;  %611 = vmatpush3.msra.mxu1 %v36_v0  ;;  %v24_v8 = vld [vmem:[%s1007_s0 + $0x20] sm:$0xff]  ;;  %v31_v9 = vld [vmem:[%s1007_s0 + $0x58] sm:$0xff]  ;;  %v26_v12 = vld [vmem:[%s1007_s0 + $0x30] sm:$0xff] }
   0x5   :  { %589 = vmatprep.mubr.msk.f32.mxu0 %vm37_vm0, %v22_v3  ;;  %598 = vmatprep.mubr.msk.f32.mxu1 %vm37_vm0, %v28_v4  ;;  %v32_v10 = vld [vmem:[%s1007_s0 + $0x60] sm:$0xff]  ;;  %v33_v13 = vld [vmem:[%s1007_s0 + $0x68] sm:$0xff]  ;;  %v34_v14 = vld [vmem:[%s1007_s0 + $0x70] sm:$0xff] }
   0x6   :  { %599 = vmatmul.mubr.msk.f32.vlgmr.msra.gmra.mrb[0].mxu1 %vm37_vm0, %v29_v5  ;;  %v27_v15 = vld [vmem:[%s1007_s0 + $0x38] sm:$0xff]  ;;  %v717_v17 = vld [vmem:[%s1008_s2] ss:$0 sm:$0xff] }
   0x7   :  { %601 = vmatprep.mubr.msk.f32.mxu1 %vm37_vm0, %v30_v6  ;;  %v35_v16 = vld [vmem:[%s1007_s0 + $0x78] sm:$0xff]  ;;  %v866_v5 = vld [vmem:[%s1010_s3] ss:$0 sm:$0xff] }
   0x8   :  { %590 = vmatmul.mubr.msk.f32.gmra.mrb[2].mxu0 %vm37_vm0, %v23_v7 }
   0x9   :  { %592 = vmatprep.mubr.msk.f32.mxu0 %vm37_vm0, %v24_v8 }
   0xa   :  { %602 = vmatmul.mubr.msk.f32.gmra.mrb[2].mxu1 %vm37_vm0, %v31_v9 }
   0xb   :  { %604 = vmatprep.mubr.msk.f32.mxu1 %vm37_vm0, %v32_v10 }
   0xc   :  { %593 = vmatmul.mubr.msk.f32.gmra.mrb[4].mxu0 %vm37_vm0, %v25_v11 }
   0xd   :  { %595 = vmatprep.mubr.msk.f32.mxu0 %vm37_vm0, %v26_v12 }
   0xe   :  { %605 = vmatmul.mubr.msk.f32.gmra.mrb[4].mxu1 %vm37_vm0, %v33_v13 }
   0xf   :  { %607 = vmatprep.mubr.msk.f32.mxu1 %vm37_vm0, %v34_v14 }
  0x10   :  { %596 = vmatmul.mubr.msk.f32.gmra.mrb[6].mxu0 %vm37_vm0, %v27_v15 }
  0x12   :  { %608 = vmatmul.mubr.msk.f32.gmra.mrb[6].mxu1 %vm37_vm0, %v35_v16 }
  0xd7   :  { %v719_v18 = vpop.f32.mrb[0].mxu0 }
  0xd8   :  { %v552_v19 = vpack.c.bf16 %v719_v18, %v719_v18  ;;  %v723_v20 = vpop.f32.mrb[1].mxu0  ;;  %v328_v21 = vmul.f32 %v719_v18, %v717_v17 }
  0xd9   :  { %v551_v22 = vpack.c.bf16 %v723_v20, %v723_v20  ;;  %v729_v23 = vpop.f32.mrb[0].mxu1  ;;  %v327_v27 = vmul.f32 %v717_v17, %v723_v20  ;;  %v238_v10 = vmul.f32 %v866_v5, %v723_v20 }
  0xda   :  { %490 = vst.msk [vmem:[%s1009_s4 + $0x4] sm:$0xf] %vm488_vm1, %v552_v19  ;;  %v346_v24 = vsel %vm254_vm2, %v328_v21, 0.0  ;;  %v560_v25 = vpack.c.bf16 %v729_v23, %v729_v23  ;;  %v738_v26 = vpop.f32.mrb[1].mxu1  ;;  %v336_v6 = vmul.f32 %v729_v23, %v717_v17 }
  0xdb   :  { %489 = vst.msk [vmem:[%s1009_s4] sm:$0xf] %vm488_vm1, %v551_v22  ;;  %347 = vadd.xlane.f32.xlu0 %v346_v24  ;;  %v746_v28 = vpop.f32.mrb[2].mxu0  ;;  %v559_v29 = vpack.c.bf16 %v738_v26, %v738_v26  ;;  %v335_v32 = vmul.f32 %v717_v17, %v738_v26  ;;  %v343_v36 = vsel %vm254_vm2, %v327_v27, 0.0  ;;  %v255_v13 = vsel %vm254_vm2, %v238_v10, 0.0 }
  0xdc   :  { %v554_v30 = vpack.c.bf16 %v746_v28, %v746_v28  ;;  %v752_v31 = vpop.f32.mrb[3].mxu0  ;;  %498 = vst.msk [vmem:[%s1009_s4 + $0x24] sm:$0xf] %vm488_vm1, %v560_v25  ;;  %v330_v41 = vmul.f32 %v746_v28, %v717_v17  ;;  %v370_v11 = vsel %vm254_vm2, %v336_v6, 0.0  ;;  %v246_v27 = vmul.f32 %v866_v5, %v738_v26 }
  0xdd   :  { %v553_v33 = vpack.c.bf16 %v752_v31, %v752_v31  ;;  %497 = vst.msk [vmem:[%s1009_s4 + $0x20] sm:$0xf] %vm488_vm1, %v559_v29  ;;  %v329_v34 = vmul.f32 %v717_v17, %v752_v31  ;;  %v768_v35 = vpop.f32.mrb[2].mxu1  ;;  %v367_v45 = vsel %vm254_vm2, %v335_v32, 0.0  ;;  %v240_v14 = vmul.f32 %v866_v5, %v752_v31 }
  0xde   :  { %492 = vst.msk [vmem:[%s1009_s4 + $0xc] sm:$0xf] %vm488_vm1, %v554_v30  ;;  %v562_v37 = vpack.c.bf16 %v768_v35, %v768_v35  ;;  %v777_v38 = vpop.f32.mrb[3].mxu1  ;;  %v352_v51 = vsel %vm254_vm2, %v330_v41, 0.0  ;;  %v338_v12 = vmul.f32 %v768_v35, %v717_v17  ;;  %v239_v29 = vmul.f32 %v719_v18, %v866_v5 }
  0xdf   :  { %491 = vst.msk [vmem:[%s1009_s4 + $0x8] sm:$0xf] %vm488_vm1, %v553_v33  ;;  %344 = vadd.xlane.f32.xlu0 %v343_v36  ;;  %v349_v39 = vsel %vm254_vm2, %v329_v34, 0.0  ;;  %v784_v40 = vpop.f32.mrb[4].mxu0  ;;  %v561_v42 = vpack.c.bf16 %v777_v38, %v777_v38  ;;  %v337_v57 = vmul.f32 %v717_v17, %v777_v38  ;;  %v261_v20 = vsel %vm254_vm2, %v240_v14, 0.0 }
  0xe0   :  { %350 = vadd.xlane.f32.xlu1 %v349_v39  ;;  %v556_v43 = vpack.c.bf16 %v784_v40, %v784_v40  ;;  %v172_v44 = vpop.f32.mrb[5].mxu0  ;;  %500 = vst.msk [vmem:[%s1009_s4 + $0x2c] sm:$0xf] %vm488_vm1, %v562_v37  ;;  %v332_v52 = vmul.f32 %v784_v40, %v717_v17  ;;  %v376_v15 = vsel %vm254_vm2, %v338_v12, 0.0  ;;  %v279_v30 = vsel %vm254_vm2, %v246_v27, 0.0 }
  0xe1   :  { %v555_v46 = vpack.c.bf16 %v172_v44, %v172_v44  ;;  %499 = vst.msk [vmem:[%s1009_s4 + $0x28] sm:$0xf] %vm488_vm1, %v561_v42  ;;  %v331_v47 = vmul.f32 %v717_v17, %v172_v44  ;;  %v802_v48 = vpop.f32.mrb[4].mxu1  ;;  %v373_v1 = vsel %vm254_vm2, %v337_v57, 0.0  ;;  %v242_v21 = vmul.f32 %v866_v5, %v172_v44 }
  0xe2   :  { %494 = vst.msk [vmem:[%s1009_s4 + $0x14] sm:$0xf] %vm488_vm1, %v556_v43  ;;  %v564_v49 = vpack.c.bf16 %v802_v48, %v802_v48  ;;  %v810_v50 = vpop.f32.mrb[5].mxu1  ;;  %v358_v0 = vsel %vm254_vm2, %v332_v52, 0.0  ;;  %v340_v16 = vmul.f32 %v802_v48, %v717_v17  ;;  %v248_v31 = vmul.f32 %v866_v5, %v777_v38 }
  0xe3   :  { %493 = vst.msk [vmem:[%s1009_s4 + $0x10] sm:$0xf] %vm488_vm1, %v555_v46  ;;  %368 = vadd.xlane.f32.xlu0 %v367_v45  ;;  %v819_v53 = vpop.f32.mrb[6].mxu0  ;;  %v563_v54 = vpack.c.bf16 %v810_v50, %v810_v50  ;;  %v355_v55 = vsel %vm254_vm2, %v331_v47, 0.0  ;;  %v339_v2 = vmul.f32 %v717_v17, %v810_v50  ;;  %v267_v25 = vsel %vm254_vm2, %v242_v21, 0.0 }
  0xe4   :  { %353 = vadd.xlane.f32.xlu1 %v352_v51  ;;  %v558_v56 = vpack.c.bf16 %v819_v53, %v819_v53  ;;  %502 = vst.msk [vmem:[%s1009_s4 + $0x34] sm:$0xf] %vm488_vm1, %v564_v49  ;;  %v832_v58 = vpop.f32.mrb[7].mxu0  ;;  %v334_v59 = vmul.f32 %v819_v53, %v717_v17  ;;  %v382_v22 = vsel %vm254_vm2, %v340_v16, 0.0  ;;  %v258_v32 = vsel %vm254_vm2, %v239_v29, 0.0 }
  0xe5   :  { %501 = vst.msk [vmem:[%s1009_s4 + $0x30] sm:$0xf] %vm488_vm1, %v563_v54  ;;  %v609_v60 = vpop.f32.mrb[6].mxu1  ;;  %v557_v61 = vpack.c.bf16 %v832_v58, %v832_v58  ;;  %v379_v8 = vsel %vm254_vm2, %v339_v2, 0.0  ;;  %v241_v33 = vmul.f32 %v746_v28, %v866_v5  ;;  %v285_v34 = vsel %vm254_vm2, %v248_v31, 0.0 }
  0xe6   :  { %496 = vst.msk [vmem:[%s1009_s4 + $0x1c] sm:$0xf] %vm488_vm1, %v558_v56  ;;  %v566_v62 = vpack.c.bf16 %v609_v60, %v609_v60  ;;  %v846_v63 = vpop.f32.mrb[7].mxu1  ;;  %v364_v4 = vsel %vm254_vm2, %v334_v59, 0.0  ;;  %v253_v7 = vmul.f32 %v609_v60, %v866_v5  ;;  %v342_v19 = vmul.f32 %v609_v60, %v717_v17 }
  0xe7   :  { %356 = vadd.xlane.f32.xlu0 %v355_v55  ;;  %495 = vst.msk [vmem:[%s1009_s4 + $0x18] sm:$0xf] %vm488_vm1, %v557_v61  ;;  %v565_v3 = vpack.c.bf16 %v846_v63, %v846_v63  ;;  %v250_v26 = vmul.f32 %v866_v5, %v810_v50  ;;  %v264_v18 = vsel %vm254_vm2, %v241_v33, 0.0  ;;  %v243_v36 = vmul.f32 %v784_v40, %v866_v5 }
  0xe8   :  { %359 = vadd.xlane.f32.xlu1 %v358_v0  ;;  %504 = vst.msk [vmem:[%s1009_s4 + $0x3c] sm:$0xf] %vm488_vm1, %v566_v62  ;;  %v877_v9 = vsel %vm254_vm2, %v253_v7, 0.0  ;;  %v388_v24 = vsel %vm254_vm2, %v342_v19, 0.0  ;;  %v333_v37 = vmul.f32 %v717_v17, %v832_v58  ;;  %v247_v39 = vmul.f32 %v729_v23, %v866_v5 }
  0xe9   :  { %503 = vst.msk [vmem:[%s1009_s4 + $0x38] sm:$0xf] %vm488_vm1, %v565_v3  ;;  %v291_v38 = vsel %vm254_vm2, %v250_v26, 0.0  ;;  %v270_v28 = vsel %vm254_vm2, %v243_v36, 0.0  ;;  %v341_v41 = vmul.f32 %v717_v17, %v846_v63  ;;  %v249_v43 = vmul.f32 %v768_v35, %v866_v5 }
  0xea   :  { %v361_v42 = vsel %vm254_vm2, %v333_v37, 0.0  ;;  %v282_v40 = vsel %vm254_vm2, %v247_v39, 0.0  ;;  %v244_v45 = vmul.f32 %v866_v5, %v832_v58  ;;  %v251_v17 = vmul.f32 %v802_v48, %v866_v5 }
  0xeb   :  { %374 = vadd.xlane.f32.xlu0 %v373_v1  ;;  %v385_v44 = vsel %vm254_vm2, %v341_v41, 0.0  ;;  %v288_v23 = vsel %vm254_vm2, %v249_v43, 0.0  ;;  %v252_v46 = vmul.f32 %v866_v5, %v846_v63  ;;  %v245_v49 = vmul.f32 %v819_v53, %v866_v5 }
  0xec   :  { %365 = vadd.xlane.f32.xlu1 %v364_v4  ;;  %v273_v47 = vsel %vm254_vm2, %v244_v45, 0.0  ;;  %v294_v35 = vsel %vm254_vm2, %v251_v17, 0.0 }
  0xed   :  { %v297_v50 = vsel %vm254_vm2, %v252_v46, 0.0  ;;  %v276_v51 = vsel %vm254_vm2, %v245_v49, 0.0 }
  0xef   :  { %380 = vadd.xlane.f32.xlu0 %v379_v8 }
  0xf0   :  { %371 = vadd.xlane.f32.xlu1 %v370_v11 }
  0xf3   :  { %256 = vadd.xlane.f32.xlu0 %v255_v13 }
  0xf4   :  { %377 = vadd.xlane.f32.xlu1 %v376_v15 }
  0xf7   :  { %262 = vadd.xlane.f32.xlu0 %v261_v20 }
  0xf8   :  { %383 = vadd.xlane.f32.xlu1 %v382_v22 }
  0xfb   :  { %268 = vadd.xlane.f32.xlu0 %v267_v25 }
  0xfc   :  { %389 = vadd.xlane.f32.xlu1 %v388_v24 }
  0xff   :  { %280 = vadd.xlane.f32.xlu0 %v279_v30 }
 0x100   :  { %259 = vadd.xlane.f32.xlu1 %v258_v32 }
 0x103   :  { %286 = vadd.xlane.f32.xlu0 %v285_v34 }
 0x104   :  { %265 = vadd.xlane.f32.xlu1 %v264_v18 }
 0x107   :  { %292 = vadd.xlane.f32.xlu0 %v291_v38 }
 0x108   :  { %271 = vadd.xlane.f32.xlu1 %v270_v28 }
 0x10b   :  { %362 = vadd.xlane.f32.xlu0 %v361_v42 }
 0x10c   :  { %283 = vadd.xlane.f32.xlu1 %v282_v40 }
 0x10f   :  { %386 = vadd.xlane.f32.xlu0 %v385_v44 }
 0x110   :  { %289 = vadd.xlane.f32.xlu1 %v288_v23 }
 0x113   :  { %274 = vadd.xlane.f32.xlu0 %v273_v47 }
 0x114   :  { %295 = vadd.xlane.f32.xlu1 %v294_v35 }
 0x117   :  { %298 = vadd.xlane.f32.xlu0 %v297_v50 }
 0x118   :  { %277 = vadd.xlane.f32.xlu1 %v276_v51 }
 0x11c   :  { %301 = vadd.xlane.f32.xlu1 %v877_v9 }
 0x168   :  { %v348_v48 = vpop.xlane.xlu0 %347 }
 0x16c   :  { %v345_v52 = vpop.xlane.xlu0 %344 }
 0x16d   :  { %v351_v54 = vpop.xlane.xlu1 %350  ;;  %391 = vxpose.xlu0.b32.start [1/16] (narrow) %v345_v52, 8 }
 0x170   :  { %v369_v55 = vpop.xlane.xlu0 %368 }
 0x171   :  { %v354_v56 = vpop.xlane.xlu1 %353  ;;  %392 = vxpose.xlu0.b32.cont [2/16] (narrow) %v348_v48, 8 }
 0x174   :  { %v357_v57 = vpop.xlane.xlu0 %356 }
 0x175   :  { %v360_v58 = vpop.xlane.xlu1 %359  ;;  %393 = vxpose.xlu0.b32.cont [3/16] (narrow) %v351_v54, 8 }
 0x178   :  { %v375_v53 = vpop.xlane.xlu0 %374 }
 0x179   :  { %v366_v59 = vpop.xlane.xlu1 %365  ;;  %394 = vxpose.xlu0.b32.cont [4/16] (narrow) %v354_v56, 8 }
 0x17c   :  { %v381_v60 = vpop.xlane.xlu0 %380 }
 0x17d   :  { %v372_v61 = vpop.xlane.xlu1 %371  ;;  %395 = vxpose.xlu0.b32.cont [5/16] (narrow) %v357_v57, 8 }
 0x180   :  { %v257_v62 = vpop.xlane.xlu0 %256 }
 0x181   :  { %304 = vst.msk [vmem:[%s1011_s5] sm:$0xff] %vm303_vm3, %v257_v62  ;;  %v378_v63 = vpop.xlane.xlu1 %377  ;;  %396 = vxpose.xlu0.b32.cont [6/16] (narrow) %v360_v58, 8 }
 0x184   :  { %v263_v0 = vpop.xlane.xlu0 %262 }
 0x185   :  { %306 = vst.msk [vmem:[%s1011_s5 + $0x10] sm:$0xff] %vm303_vm3, %v263_v0  ;;  %v384_v1 = vpop.xlane.xlu1 %383 }
 0x188   :  { %v269_v2 = vpop.xlane.xlu0 %268 }
 0x189   :  { %308 = vst.msk [vmem:[%s1011_s5 + $0x20] sm:$0xff] %vm303_vm3, %v269_v2  ;;  %v390_v3 = vpop.xlane.xlu1 %389 }
 0x18c   :  { %v281_v4 = vpop.xlane.xlu0 %280 }
 0x18d   :  { %312 = vst.msk [vmem:[%s1011_s5 + $0x40] sm:$0xff] %vm303_vm3, %v281_v4  ;;  %v260_v5 = vpop.xlane.xlu1 %259 }
 0x18e   :  { %305 = vst.msk [vmem:[%s1011_s5 + $0x8] sm:$0xff] %vm303_vm3, %v260_v5 }
 0x190   :  { %v287_v6 = vpop.xlane.xlu0 %286 }
 0x191   :  { %314 = vst.msk [vmem:[%s1011_s5 + $0x50] sm:$0xff] %vm303_vm3, %v287_v6  ;;  %v266_v7 = vpop.xlane.xlu1 %265 }
 0x192   :  { %307 = vst.msk [vmem:[%s1011_s5 + $0x18] sm:$0xff] %vm303_vm3, %v266_v7 }
 0x194   :  { %v293_v8 = vpop.xlane.xlu0 %292 }
 0x195   :  { %316 = vst.msk [vmem:[%s1011_s5 + $0x60] sm:$0xff] %vm303_vm3, %v293_v8  ;;  %v272_v9 = vpop.xlane.xlu1 %271 }
 0x196   :  { %309 = vst.msk [vmem:[%s1011_s5 + $0x28] sm:$0xff] %vm303_vm3, %v272_v9 }
 0x198   :  { %v363_v10 = vpop.xlane.xlu0 %362 }
 0x199   :  { %v284_v11 = vpop.xlane.xlu1 %283  ;;  %397 = vxpose.xlu0.b32.cont [7/16] (narrow) %v363_v10, 8 }
 0x19a   :  { %313 = vst.msk [vmem:[%s1011_s5 + $0x48] sm:$0xff] %vm303_vm3, %v284_v11 }
 0x19c   :  { %v387_v12 = vpop.xlane.xlu0 %386 }
 0x19d   :  { %v290_v13 = vpop.xlane.xlu1 %289  ;;  %398 = vxpose.xlu0.b32.cont [8/16] (narrow) %v366_v59, 8 }
 0x19e   :  { %315 = vst.msk [vmem:[%s1011_s5 + $0x58] sm:$0xff] %vm303_vm3, %v290_v13 }
 0x1a0   :  { %v275_v14 = vpop.xlane.xlu0 %274 }
 0x1a1   :  { %310 = vst.msk [vmem:[%s1011_s5 + $0x30] sm:$0xff] %vm303_vm3, %v275_v14  ;;  %v296_v15 = vpop.xlane.xlu1 %295  ;;  %399 = vxpose.xlu0.b32.cont [9/16] (narrow) %v369_v55, 8 }
 0x1a2   :  { %317 = vst.msk [vmem:[%s1011_s5 + $0x68] sm:$0xff] %vm303_vm3, %v296_v15 }
 0x1a4   :  { %v299_v16 = vpop.xlane.xlu0 %298 }
 0x1a5   :  { %v278_v19 = vpop.xlane.xlu1 %277  ;;  %400 = vxpose.xlu0.b32.cont [10/16] (narrow) %v372_v61, 8  ;;  %318 = vst.msk [vmem:[%s1011_s5 + $0x70] sm:$0xff] %vm303_vm3, %v299_v16 }
 0x1a6   :  { %311 = vst.msk [vmem:[%s1011_s5 + $0x38] sm:$0xff] %vm303_vm3, %v278_v19 }
 0x1a9   :  { %401 = vxpose.xlu0.b32.cont [11/16] (narrow) %v375_v53, 8  ;;  %v302_v20 = vpop.xlane.xlu1 %301 }
 0x1aa   :  { %319 = vst.msk [vmem:[%s1011_s5 + $0x78] sm:$0xff] %vm303_vm3, %v302_v20 }
 0x1ad   :  { %402 = vxpose.xlu0.b32.cont [12/16] (narrow) %v378_v63, 8 }
 0x1b1   :  { %403 = vxpose.xlu0.b32.cont [13/16] (narrow) %v381_v60, 8 }
 0x1b5   :  { %404 = vxpose.xlu0.b32.cont [14/16] (narrow) %v384_v1, 8 }
 0x1b9   :  { %405 = vxpose.xlu0.b32.cont [15/16] (narrow) %v387_v12, 8 }
 0x1bd   :  { %406 = vxpose.xlu0.b32.end [16/16] (narrow) %v390_v3, 8 }
 0x201   :  { %v407_v21 = vpop.trf.xlu0 }
 0x202   :  { %423 = vst [vmem:[%s1012_s6] sm:$0x1] %v407_v21 }

// kernel: gat_forward.9
= control target key start
LH: loop header
LB: loop body
LE: loop exit
PB: predicated region body
PF: predicated region fallthrough
CT: control target
= control target key end

     0   :  { %s588_s15 = smov 0   ;;  %s729_s0 = inlined_call_operand.vmem [shape: f32[128,32], index: 0, kind: input, shape index: {}]   ;;  %s730_s1 = inlined_call_operand.vmem [shape: f32[2,128,1], index: 1, kind: input, shape index: {}]   ;;  %s731_s2 = inlined_call_operand.vmem [shape: f32[32,4], index: 2, kind: input, shape index: {}]   ;;  %s732_s3 = inlined_call_operand.vmem [shape: f32[1,4], index: 3, kind: input, shape index: {}]   ;;  %s733_s4 = inlined_call_operand.vmem [shape: f32[2,1,4], index: 4, kind: output, shape index: {}]  }
   0x1 LB: > { %s504_s16 = sadd.s32 4294967295, %s557_s15   ;;  %p508_p0 = scmp.ge.s32.totalorder %s557_s15, 1  ;;  %s557_s15 = sphi %s588_s15, %s14_s15  }
   0x2   : > { %p162_p1 = scmp.lt.s32.totalorder %s557_s15, 3 }
   0x4   : > { %p163_p2 = pnand %p508_p0, %p162_p1 }
   0x5   : > { %p186_p3 = scmp.lt.s32.totalorder (!%p163_p2), %s504_s16, 1  ;;  %v559_v0 = vmov (!%p163_p2), 0   ;;  %v377_v33 = vld [vmem:[%s731_s2] sm:$0xff] (!%p163_p2)  ;;  %v378_v34 = vld [vmem:[%s731_s2 + $0x8] sm:$0xff] (!%p163_p2)  ;;  %v379_v35 = vld [vmem:[%s731_s2 + $0x10] sm:$0xff] (!%p163_p2)  ;;  %v560_v36 = vmov (!%p163_p2), 0.0|0.0  }
   0x6   : > { %166 = sbr.rel (%p163_p2) target bundleno = 413 (0x19d), region = 36  ;;  %550 = vset.pattern.permute.xlu1 (!%p163_p2), %v559_v0  ;;  %549 = vset.pattern.permute.xlu0 (!%p163_p2), %v559_v0  ;;  %v532_v37 = vpack.c.bf16 (!%p163_p2), %v378_v34, %v377_v33  ;;  %v380_v38 = vld [vmem:[%s731_s2 + $0x18] sm:$0xff] (!%p163_p2)  ;;  %v562_v39 = vmov (!%p163_p2), 0.0   ;;  %v199_v49 = vld [vmem:[%s729_s0 + $0x28] sm:$0xff] (!%p163_p2)  ;;  %v198_v50 = vld [vmem:[%s729_s0 + $0x20] sm:$0xff] (!%p163_p2) }
   0x7   : > { %531 = vmatprep.subr.bf16.mxu0 (!%p163_p2), %v560_v36  ;;  %v535_v40 = vpack.c.bf16 (!%p163_p2), %v380_v38, %v379_v35  ;;  %v196_v51 = vld [vmem:[%s729_s0 + $0x10] sm:$0xff] (!%p163_p2)  ;;  %v194_v52 = vld [vmem:[%s729_s0] sm:$0xff] (!%p163_p2)  ;;  %v197_v53 = vld [vmem:[%s729_s0 + $0x18] sm:$0xff] (!%p163_p2) }
   0x8   : > { %533 = vmatpush3.bf16.msra.mxu0 (!%p163_p2), %v532_v37  ;;  %v195_v54 = vld [vmem:[%s729_s0 + $0x8] sm:$0xff] (!%p163_p2)  ;;  %v201_v55 = vld [vmem:[%s729_s0 + $0x38] sm:$0xff] (!%p163_p2)  ;;  %v200_v56 = vld [vmem:[%s729_s0 + $0x30] sm:$0xff] (!%p163_p2) }
   0x9   : > { %534 = vmatprep.subr.bf16.mxu0 (!%p163_p2), %v560_v36  ;;  %v203_v61 = vld [vmem:[%s729_s0 + $0x48] sm:$0xff] (!%p163_p2)  ;;  %v202_v62 = vld [vmem:[%s729_s0 + $0x40] sm:$0xff] (!%p163_p2)  ;;  %v205_v63 = vld [vmem:[%s729_s0 + $0x58] sm:$0xff] (!%p163_p2) }
   0xa   : > { %v209_v37 = vld [vmem:[%s729_s0 + $0x78] sm:$0xff] (!%p163_p2)  ;;  %v208_v38 = vld [vmem:[%s729_s0 + $0x70] sm:$0xff] (!%p163_p2) }
   0xc   : > { %536 = vmatpush3.bf16.msra.mxu0 (!%p163_p2), %v535_v40 }
   0xd   : > { %s735_s16 = smov (!%p186_p3, %s504_s16), 1 }
   0xe   : > { %s514_s17 = sshll.u32 %s735_s16, 7 }
   0xf   : > { %s604_s20 = scalar_lea.vmem %s730_s1, %s514_s17  ;;  %s193_s17 = scalar_lea.vmem %s733_s4, %s735_s16 }
  0x10   : > { %v212_v1 = vld [vmem:[%s604_s20 + $0x10] sm:$0xff]  ;;  %v210_v2 = vld [vmem:[%s604_s20] sm:$0xff]  ;;  %v213_v3 = vld [vmem:[%s604_s20 + $0x18] sm:$0xff] }
  0x11   : > { %vm228_vm0 = vcmp.gt.f32.partialorder %v212_v1, 0.0  ;;  %vm226_vm1 = vcmp.gt.f32.partialorder %v210_v2, 0.0  ;;  %vm229_vm2 = vcmp.gt.f32.partialorder %v213_v3, 0.0  ;;  %v211_v4 = vld [vmem:[%s604_s20 + $0x8] sm:$0xff]  ;;  %v214_v8 = vld [vmem:[%s604_s20 + $0x20] sm:$0xff]  ;;  %v217_v11 = vld [vmem:[%s604_s20 + $0x38] sm:$0xff] }
  0x12   : > { %v244_v5 = vsel %vm228_vm0, 1, %v559_v0  ;;  %v242_v6 = vsel %vm226_vm1, 1, %v559_v0  ;;  %vm227_vm3 = vcmp.gt.f32.partialorder %v211_v4, 0.0  ;;  %v215_v7 = vld [vmem:[%s604_s20 + $0x28] sm:$0xff]  ;;  %v245_v9 = vsel %vm229_vm2, 1, %v559_v0  ;;  %v216_v12 = vld [vmem:[%s604_s20 + $0x30] sm:$0xff] }
  0x13   : > { %265 = vperm.xlu1 %550, %v244_v5   ;;  %259 = vperm.xlu0 %549, %v242_v6   ;;  %v243_v10 = vsel %vm227_vm3, 1, %v559_v0  ;;  %vm231_vm4 = vcmp.gt.f32.partialorder %v215_v7, 0.0  ;;  %vm230_vm5 = vcmp.gt.f32.partialorder %v214_v8, 0.0  ;;  %vm233_vm6 = vcmp.gt.f32.partialorder %v217_v11, 0.0  ;;  %v219_v15 = vld [vmem:[%s604_s20 + $0x48] sm:$0xff]  ;;  %v218_v16 = vld [vmem:[%s604_s20 + $0x40] sm:$0xff] }
  0x14   : > { %v247_v13 = vsel %vm231_vm4, 1, %v559_v0  ;;  %v246_v14 = vsel %vm230_vm5, 1, %v559_v0  ;;  %vm232_vm7 = vcmp.gt.f32.partialorder %v216_v12, 0.0  ;;  %v249_v17 = vsel %vm233_vm6, 1, %v559_v0  ;;  %v221_v19 = vld [vmem:[%s604_s20 + $0x58] sm:$0xff]  ;;  %v220_v20 = vld [vmem:[%s604_s20 + $0x50] sm:$0xff] }
  0x15   : > { %v248_v18 = vsel %vm232_vm7, 1, %v559_v0  ;;  %vm235_vm8 = vcmp.gt.f32.partialorder %v219_v15, 0.0  ;;  %vm234_vm9 = vcmp.gt.f32.partialorder %v218_v16, 0.0  ;;  %vm237_vm10 = vcmp.gt.f32.partialorder %v221_v19, 0.0  ;;  %v223_v23 = vld [vmem:[%s604_s20 + $0x68] sm:$0xff]  ;;  %v222_v24 = vld [vmem:[%s604_s20 + $0x60] sm:$0xff] }
  0x16   : > { %v251_v21 = vsel %vm235_vm8, 1, %v559_v0  ;;  %v250_v22 = vsel %vm234_vm9, 1, %v559_v0  ;;  %vm236_vm11 = vcmp.gt.f32.partialorder %v220_v20, 0.0  ;;  %v253_v25 = vsel %vm237_vm10, 1, %v559_v0  ;;  %v225_v27 = vld [vmem:[%s604_s20 + $0x78] sm:$0xff]  ;;  %v224_v28 = vld [vmem:[%s604_s20 + $0x70] sm:$0xff] }
  0x17   : > { %268 = vperm.xlu1 %550, %v245_v9   ;;  %262 = vperm.xlu0 %549, %v243_v10   ;;  %v252_v26 = vsel %vm236_vm11, 1, %v559_v0  ;;  %vm239_vm12 = vcmp.gt.f32.partialorder %v223_v23, 0.0  ;;  %vm238_vm13 = vcmp.gt.f32.partialorder %v222_v24, 0.0  ;;  %vm241_vm14 = vcmp.gt.f32.partialorder %v225_v27, 0.0  ;;  %v207_v11 = vld [vmem:[%s729_s0 + $0x68] sm:$0xff]  ;;  %v206_v12 = vld [vmem:[%s729_s0 + $0x60] sm:$0xff] }
  0x18   : > { %v255_v29 = vsel %vm239_vm12, 1, %v559_v0  ;;  %v254_v30 = vsel %vm238_vm13, 1, %v559_v0  ;;  %vm240_vm15 = vcmp.gt.f32.partialorder %v224_v28, 0.0  ;;  %v257_v31 = vsel %vm241_vm14, 1, %v559_v0 }
  0x19   : > { %v256_v32 = vsel %vm240_vm15, 1, %v559_v0  ;;  %vm561_vm0 = vmmov 0   ;;  %vm338_vm7 = vcmask 261120   ;;  %v204_v0 = vld [vmem:[%s729_s0 + $0x50] sm:$0xff] }
  0x1a   : > { %528 = vmatprep.mubr.msk.f32.mxu0 %vm561_vm0, %v562_v39 }
  0x1b   : > { %274 = vperm.xlu1 %550, %v247_v13   ;;  %271 = vperm.xlu0 %549, %v246_v14  }
  0x1f   : > { %280 = vperm.xlu1 %550, %v249_v17   ;;  %277 = vperm.xlu0 %549, %v248_v18  }
  0x23   : > { %286 = vperm.xlu1 %550, %v251_v21   ;;  %283 = vperm.xlu0 %549, %v250_v22  }
  0x27   : > { %292 = vperm.xlu1 %550, %v253_v25   ;;  %289 = vperm.xlu0 %549, %v252_v26  }
  0x2b   : > { %298 = vperm.xlu1 %550, %v255_v29   ;;  %295 = vperm.xlu0 %549, %v254_v30  }
  0x2f   : > { %304 = vperm.xlu1 %550, %v257_v31   ;;  %301 = vperm.xlu0 %549, %v256_v32  }
  0x92   : > { %v266_v41 = vpop.permute.xlu1 %265  ;;  %v260_v42 = vpop.permute.xlu0 %259 }
  0x93   : > { %vm308_vm3 = vcmp.eq.s32.totalorder %v266_v41, 1  ;;  %vm306_vm4 = vcmp.eq.s32.totalorder %v260_v42, 1 }
  0x94   : > { %v324_v1 = vsel %vm308_vm3, %v196_v51, -1e+30  ;;  %v322_v2 = vsel %vm306_vm4, %v194_v52, -1e+30 }
  0x95   : > { %v341_v13 = vsel %vm338_vm7, %v324_v1, -inf  ;;  %v339_v14 = vsel %vm338_vm7, %v322_v2, -inf }
  0x96   : > { %v269_v43 = vpop.permute.xlu1 %268  ;;  %v263_v44 = vpop.permute.xlu0 %262 }
  0x97   : > { %vm309_vm5 = vcmp.eq.s32.totalorder %v269_v43, 1  ;;  %vm307_vm6 = vcmp.eq.s32.totalorder %v263_v44, 1 }
  0x98   : > { %v325_v3 = vsel %vm309_vm5, %v197_v53, -1e+30  ;;  %v323_v4 = vsel %vm307_vm6, %v195_v54, -1e+30 }
  0x99   : > { %v342_v17 = vsel %vm338_vm7, %v325_v3, -inf  ;;  %v340_v18 = vsel %vm338_vm7, %v323_v4, -inf }
  0x9a   : > { %v275_v45 = vpop.permute.xlu1 %274  ;;  %v272_v46 = vpop.permute.xlu0 %271 }
  0x9b   : > { %vm311_vm1 = vcmp.eq.s32.totalorder %v275_v45, 1  ;;  %vm310_vm2 = vcmp.eq.s32.totalorder %v272_v46, 1 }
  0x9c   : > { %v327_v59 = vsel %vm311_vm1, %v199_v49, -1e+30  ;;  %v326_v60 = vsel %vm310_vm2, %v198_v50, -1e+30  ;;  %vm455_vm2 = vcmask 24576  }
  0x9d   : > { %v345_v5 = vsel %vm338_vm7, %v327_v59, -inf  ;;  %v343_v6 = vsel %vm338_vm7, %v326_v60, -inf }
  0x9e   : > { %v281_v47 = vpop.permute.xlu1 %280  ;;  %v278_v48 = vpop.permute.xlu0 %277  ;;  %v346_v21 = vmax.f32 %v340_v18, %v345_v5  ;;  %v344_v22 = vmax.f32 %v339_v14, %v343_v6 }
  0x9f   : > { %vm313_vm8 = vcmp.eq.s32.totalorder %v281_v47, 1  ;;  %vm312_vm9 = vcmp.eq.s32.totalorder %v278_v48, 1 }
  0xa0   : > { %v329_v9 = vsel %vm313_vm8, %v201_v55, -1e+30  ;;  %v328_v10 = vsel %vm312_vm9, %v200_v56, -1e+30 }
  0xa1   : > { %v349_v23 = vsel %vm338_vm7, %v329_v9, -inf  ;;  %v347_v24 = vsel %vm338_vm7, %v328_v10, -inf }
  0xa2   : > { %v287_v57 = vpop.permute.xlu1 %286  ;;  %v284_v58 = vpop.permute.xlu0 %283  ;;  %v350_v33 = vmax.f32 %v342_v17, %v349_v23  ;;  %v348_v34 = vmax.f32 %v341_v13, %v347_v24 }
  0xa3   : > { %vm315_vm10 = vcmp.eq.s32.totalorder %v287_v57, 1  ;;  %vm314_vm11 = vcmp.eq.s32.totalorder %v284_v58, 1 }
  0xa4   : > { %v331_v15 = vsel %vm315_vm10, %v203_v61, -1e+30  ;;  %v330_v16 = vsel %vm314_vm11, %v202_v62, -1e+30 }
  0xa5   : > { %v353_v27 = vsel %vm338_vm7, %v331_v15, -inf  ;;  %v351_v28 = vsel %vm338_vm7, %v330_v16, -inf }
  0xa6   : > { %v293_v7 = vpop.permute.xlu1 %292  ;;  %v290_v8 = vpop.permute.xlu0 %289  ;;  %v354_v39 = vmax.f32 %v346_v21, %v353_v27  ;;  %v352_v40 = vmax.f32 %v344_v22, %v351_v28 }
  0xa7   : > { %vm317_vm12 = vcmp.eq.s32.totalorder %v293_v7, 1  ;;  %vm316_vm13 = vcmp.eq.s32.totalorder %v290_v8, 1 }
  0xa8   : > { %v333_v19 = vsel %vm317_vm12, %v205_v63, -1e+30  ;;  %v332_v20 = vsel %vm316_vm13, %v204_v0, -1e+30  ;;  %v381_v63 = vld [vmem:[%s732_s3] sm:$0x1] }
  0xa9   : > { %v357_v29 = vsel %vm338_vm7, %v333_v19, -inf  ;;  %v355_v30 = vsel %vm338_vm7, %v332_v20, -inf }
  0xaa   : > { %v299_v25 = vpop.permute.xlu1 %298  ;;  %v296_v26 = vpop.permute.xlu0 %295  ;;  %v358_v43 = vmax.f32 %v350_v33, %v357_v29  ;;  %v356_v44 = vmax.f32 %v348_v34, %v355_v30 }
  0xab   : > { %vm319_vm14 = vcmp.eq.s32.totalorder %v299_v25, 1  ;;  %vm318_vm15 = vcmp.eq.s32.totalorder %v296_v26, 1 }
  0xac   : > { %v335_v31 = vsel %vm319_vm14, %v207_v11, -1e+30  ;;  %v334_v32 = vsel %vm318_vm15, %v206_v12, -1e+30 }
  0xad   : > { %v361_v35 = vsel %vm338_vm7, %v335_v31, -inf  ;;  %v359_v36 = vsel %vm338_vm7, %v334_v32, -inf }
  0xae   : > { %v305_v41 = vpop.permute.xlu1 %304  ;;  %v302_v42 = vpop.permute.xlu0 %301  ;;  %v362_v45 = vmax.f32 %v354_v39, %v361_v35  ;;  %v360_v46 = vmax.f32 %v352_v40, %v359_v36 }
  0xaf   : > { %vm321_vm0 = vcmp.eq.s32.totalorder %v305_v41, 1  ;;  %vm320_vm1 = vcmp.eq.s32.totalorder %v302_v42, 1 }
  0xb0   : > { %v337_v47 = vsel %vm321_vm0, %v209_v37, -1e+30  ;;  %v336_v48 = vsel %vm320_vm1, %v208_v38, -1e+30  ;;  %v367_v53 = vmax.f32 %v360_v46, %v362_v45 }
  0xb1   : > { %v365_v49 = vsel %vm338_vm7, %v337_v47, -inf  ;;  %v363_v50 = vsel %vm338_vm7, %v336_v48, -inf }
  0xb2   : > { %v366_v51 = vmax.f32 %v358_v43, %v365_v49  ;;  %v364_v52 = vmax.f32 %v356_v44, %v363_v50 }
  0xb4   : > { %v368_v54 = vmax.f32 %v364_v52, %v366_v51 }
  0xb6   : > { %v369_v55 = vmax.f32 %v367_v53, %v368_v54 }
  0xb8   : > { %v370_v56 = vrot.slane %v369_v55, 4 }
  0xba   : > { %v371_v57 = vmax.f32 %v369_v55, %v370_v56 }
  0xbc   : > { %v372_v58 = vrot.slane %v371_v57, 2 }
  0xbe   : > { %v373_v59 = vmax.f32 %v371_v57, %v372_v58 }
  0xc0   : > { %v374_v60 = vrot.slane %v373_v59, 1 }
  0xc2   : > { %v375_v61 = vmax.f32 %v373_v59, %v374_v60 }
  0xc4   : > { %v376_v62 = vmax.f32 %v375_v61, 0.0 }
  0xc6   : > { %529 = vmatmul.mubr.msk.f32.vlgmr.msra.gmra.mrb[0].mxu0 %vm338_vm7, %v376_v62 }
 0x199   : > { %v451_v0 = vpop.f32.mrb[0].mxu0 }
 0x19a   : > { %v452_v1 = vadd.f32 %v451_v0, %v381_v63  ;;  %v530_v2 = vpop.f32.mrb[1].mxu0 }
 0x19c   : > { %456 = vst.msk [vmem:[%s193_s17] sm:$0x1] %vm455_vm2, %v452_v1 }
 0x19d PF: > { %s14_s15 = sadd.s32 1, %s557_s15  }
 0x19e   : > { %p11_p4 = scmp.ge.s32.totalorder %s14_s15, 4  }
 0x1a0   :  { %13 = sbr.rel (!%p11_p4) target bundleno = 1 (0x1), region = 66 }

// kernel: gat_forward.7
= control target key start
LH: loop header
LB: loop body
LE: loop exit
PB: predicated region body
PF: predicated region fallthrough
CT: control target
= control target key end

     0   :  { %vm40_vm0 = vcmask 261120   ;;  %vm490_vm1 = vcmask 257024   ;;  %vm305_vm2 = vcmask 7168   ;;  %s1039_s1 = inlined_call_operand.vmem [shape: f32[32,32], index: 1, kind: input, shape index: {}]   ;;  %s1040_s0 = inlined_call_operand.vmem [shape: f32[128,32], index: 0, kind: input, shape index: {}]   ;;  %s1041_s2 = inlined_call_operand.vmem [shape: f32[1,32], index: 2, kind: input, shape index: {}]   ;;  %s1042_s4 = inlined_call_operand.vmem [shape: bf16[128,32], index: 4, kind: output, shape index: {0}]   ;;  %s1043_s3 = inlined_call_operand.vmem [shape: f32[1,32], index: 3, kind: input, shape index: {}]   ;;  %s1044_s5 = inlined_call_operand.vmem [shape: f32[128,1], index: 5, kind: output, shape index: {1}]   ;;  %s1045_s6 = inlined_call_operand.vmem [shape: f32[1,128], index: 6, kind: output, shape index: {2}]  }
   0x1   :  { %v36_v0 = vld [vmem:[%s1039_s1] sm:$0xff]  ;;  %v37_v1 = vld [vmem:[%s1039_s1 + $0x8] sm:$0xff]  ;;  %v38_v2 = vld [vmem:[%s1039_s1 + $0x10] sm:$0xff] }
   0x2   :  { %v621_v3 = vpack.c.bf16 %v37_v1, %v36_v0  ;;  %v39_v4 = vld [vmem:[%s1039_s1 + $0x18] sm:$0xff]  ;;  %v20_v5 = vld [vmem:[%s1040_s0] sm:$0xff]  ;;  %v21_v8 = vld [vmem:[%s1040_s0 + $0x8] sm:$0xff] }
   0x3   :  { %v625_v6 = vpack.c.bf16 %v39_v4, %v38_v2  ;;  %597 = vmatprep.mubr.msk.f32.mxu0 %vm40_vm0, %v20_v5  ;;  %v28_v7 = vld [vmem:[%s1040_s0 + $0x40] sm:$0xff]  ;;  %v29_v9 = vld [vmem:[%s1040_s0 + $0x48] sm:$0xff]  ;;  %v22_v10 = vld [vmem:[%s1040_s0 + $0x10] sm:$0xff] }
   0x4   :  { %622 = vmatprep.subr.bf16.mxu0 %v621_v3  ;;  %629 = vmatprep.subr.bf16.mxu1 %v621_v3  ;;  %v30_v11 = vld [vmem:[%s1040_s0 + $0x50] sm:$0xff]  ;;  %v23_v12 = vld [vmem:[%s1040_s0 + $0x18] sm:$0xff]  ;;  %v24_v14 = vld [vmem:[%s1040_s0 + $0x20] sm:$0xff] }
   0x5   :  { %624 = vmatpush3.bf16.msra.mxu0 %v621_v3  ;;  %631 = vmatpush3.bf16.msra.mxu1 %v621_v3  ;;  %v31_v13 = vld [vmem:[%s1040_s0 + $0x58] sm:$0xff]  ;;  %v32_v15 = vld [vmem:[%s1040_s0 + $0x60] sm:$0xff]  ;;  %v25_v16 = vld [vmem:[%s1040_s0 + $0x28] sm:$0xff] }
   0x6   :  { %626 = vmatprep.subr.bf16.mxu0 %v625_v6  ;;  %630 = vmatprep.subr.bf16.mxu1 %v625_v6  ;;  %v33_v17 = vld [vmem:[%s1040_s0 + $0x68] sm:$0xff]  ;;  %v26_v18 = vld [vmem:[%s1040_s0 + $0x30] sm:$0xff]  ;;  %v27_v20 = vld [vmem:[%s1040_s0 + $0x38] sm:$0xff] }
   0x7   :  { %609 = vmatprep.mubr.msk.f32.mxu1 %vm40_vm0, %v28_v7  ;;  %v34_v19 = vld [vmem:[%s1040_s0 + $0x70] sm:$0xff]  ;;  %v35_v21 = vld [vmem:[%s1040_s0 + $0x78] sm:$0xff]  ;;  %v747_v22 = vld [vmem:[%s1041_s2] ss:$0 sm:$0xff] }
   0x9   :  { %628 = vmatpush3.bf16.msra.mxu0 %v625_v6  ;;  %632 = vmatpush3.bf16.msra.mxu1 %v625_v6 }
   0xc   :  { %598 = vmatmul.mubr.msk.f32.vlgmr.msra.gmra.mrb[0].mxu0 %vm40_vm0, %v21_v8  ;;  %610 = vmatmul.mubr.msk.f32.vlgmr.msra.gmra.mrb[0].mxu1 %vm40_vm0, %v29_v9 }
   0xd   :  { %600 = vmatprep.mubr.msk.f32.mxu0 %vm40_vm0, %v22_v10  ;;  %612 = vmatprep.mubr.msk.f32.mxu1 %vm40_vm0, %v30_v11  ;;  %v906_v11 = vld [vmem:[%s1043_s3] ss:$0 sm:$0xff] }
  0x10   :  { %601 = vmatmul.mubr.msk.f32.gmra.mrb[2].mxu0 %vm40_vm0, %v23_v12  ;;  %613 = vmatmul.mubr.msk.f32.gmra.mrb[2].mxu1 %vm40_vm0, %v31_v13 }
  0x11   :  { %603 = vmatprep.mubr.msk.f32.mxu0 %vm40_vm0, %v24_v14  ;;  %615 = vmatprep.mubr.msk.f32.mxu1 %vm40_vm0, %v32_v15 }
  0x14   :  { %604 = vmatmul.mubr.msk.f32.gmra.mrb[4].mxu0 %vm40_vm0, %v25_v16  ;;  %616 = vmatmul.mubr.msk.f32.gmra.mrb[4].mxu1 %vm40_vm0, %v33_v17 }
  0x15   :  { %606 = vmatprep.mubr.msk.f32.mxu0 %vm40_vm0, %v26_v18  ;;  %618 = vmatprep.mubr.msk.f32.mxu1 %vm40_vm0, %v34_v19 }
  0x18   :  { %607 = vmatmul.mubr.msk.f32.gmra.mrb[6].mxu0 %vm40_vm0, %v27_v20  ;;  %619 = vmatmul.mubr.msk.f32.gmra.mrb[6].mxu1 %vm40_vm0, %v35_v21 }
  0xdf   :  { %v749_v23 = vpop.f32.mrb[0].mxu0  ;;  %v751_v24 = vpop.f32.mrb[0].mxu1 }
  0xe0   :  { %v554_v25 = vpack.c.bf16 %v749_v23, %v749_v23  ;;  %v755_v26 = vpop.f32.mrb[1].mxu0  ;;  %v330_v27 = vmul.f32 %v749_v23, %v747_v22  ;;  %v562_v28 = vpack.c.bf16 %v751_v24, %v751_v24  ;;  %v761_v29 = vpop.f32.mrb[1].mxu1  ;;  %v338_v10 = vmul.f32 %v751_v24, %v747_v22 }
  0xe1   :  { %v553_v30 = vpack.c.bf16 %v755_v26, %v755_v26  ;;  %v561_v31 = vpack.c.bf16 %v761_v29, %v761_v29  ;;  %v329_v33 = vmul.f32 %v747_v22, %v755_v26  ;;  %v337_v38 = vmul.f32 %v747_v22, %v761_v29 }
  0xe2   :  { %492 = vst.msk [vmem:[%s1042_s4 + $0x4] sm:$0xf] %vm490_vm1, %v554_v25  ;;  %v348_v32 = vsel %vm40_vm0, %v330_v27, 0.0  ;;  %500 = vst.msk [vmem:[%s1042_s4 + $0x24] sm:$0xf] %vm490_vm1, %v562_v28  ;;  %v241_v13 = vmul.f32 %v906_v11, %v755_v26  ;;  %v372_v14 = vsel %vm40_vm0, %v338_v10, 0.0 }
  0xe3   :  { %491 = vst.msk [vmem:[%s1042_s4] sm:$0xf] %vm490_vm1, %v553_v30  ;;  %349 = vadd.xlane.f32.xlu0 %v348_v32  ;;  %v782_v34 = vpop.f32.mrb[2].mxu0  ;;  %499 = vst.msk [vmem:[%s1042_s4 + $0x20] sm:$0xf] %vm490_vm1, %v561_v31  ;;  %v788_v35 = vpop.f32.mrb[2].mxu1  ;;  %v249_v30 = vmul.f32 %v906_v11, %v761_v29  ;;  %v242_v31 = vmul.f32 %v749_v23, %v906_v11 }
  0xe4   :  { %v556_v36 = vpack.c.bf16 %v782_v34, %v782_v34  ;;  %v792_v37 = vpop.f32.mrb[3].mxu0  ;;  %v564_v39 = vpack.c.bf16 %v788_v35, %v788_v35  ;;  %v798_v40 = vpop.f32.mrb[3].mxu1  ;;  %v345_v44 = vsel %vm40_vm0, %v329_v33, 0.0  ;;  %v332_v47 = vmul.f32 %v782_v34, %v747_v22 }
  0xe5   :  { %v555_v41 = vpack.c.bf16 %v792_v37, %v792_v37  ;;  %v331_v42 = vmul.f32 %v747_v22, %v792_v37  ;;  %v563_v43 = vpack.c.bf16 %v798_v40, %v798_v40  ;;  %v369_v51 = vsel %vm40_vm0, %v337_v38, 0.0 }
  0xe6   :  { %494 = vst.msk [vmem:[%s1042_s4 + $0xc] sm:$0xf] %vm490_vm1, %v556_v36  ;;  %502 = vst.msk [vmem:[%s1042_s4 + $0x2c] sm:$0xf] %vm490_vm1, %v564_v39  ;;  %v354_v57 = vsel %vm40_vm0, %v332_v47, 0.0  ;;  %v339_v63 = vmul.f32 %v747_v22, %v798_v40  ;;  %v340_v15 = vmul.f32 %v788_v35, %v747_v22  ;;  %v257_v16 = vsel %vm40_vm0, %v241_v13, 0.0 }
  0xe7   :  { %493 = vst.msk [vmem:[%s1042_s4 + $0x8] sm:$0xf] %vm490_vm1, %v555_v41  ;;  %346 = vadd.xlane.f32.xlu0 %v345_v44  ;;  %v351_v45 = vsel %vm40_vm0, %v331_v42, 0.0  ;;  %v820_v46 = vpop.f32.mrb[4].mxu0  ;;  %501 = vst.msk [vmem:[%s1042_s4 + $0x28] sm:$0xf] %vm490_vm1, %v563_v43  ;;  %v243_v17 = vmul.f32 %v906_v11, %v792_v37  ;;  %v251_v33 = vmul.f32 %v906_v11, %v798_v40 }
  0xe8   :  { %v828_v48 = vpop.f32.mrb[4].mxu1  ;;  %352 = vadd.xlane.f32.xlu1 %v351_v45  ;;  %v558_v49 = vpack.c.bf16 %v820_v46, %v820_v46  ;;  %v175_v50 = vpop.f32.mrb[5].mxu0  ;;  %v334_v58 = vmul.f32 %v820_v46, %v747_v22  ;;  %v375_v6 = vsel %vm40_vm0, %v339_v63, 0.0  ;;  %v378_v18 = vsel %vm40_vm0, %v340_v15, 0.0 }
  0xe9   :  { %v566_v52 = vpack.c.bf16 %v828_v48, %v828_v48  ;;  %v835_v53 = vpop.f32.mrb[5].mxu1  ;;  %v557_v54 = vpack.c.bf16 %v175_v50, %v175_v50  ;;  %v333_v55 = vmul.f32 %v747_v22, %v175_v50  ;;  %v342_v19 = vmul.f32 %v828_v48, %v747_v22 }
  0xea   :  { %v565_v56 = vpack.c.bf16 %v835_v53, %v835_v53  ;;  %496 = vst.msk [vmem:[%s1042_s4 + $0x14] sm:$0xf] %vm490_vm1, %v558_v49  ;;  %v360_v5 = vsel %vm40_vm0, %v334_v58, 0.0  ;;  %v341_v7 = vmul.f32 %v747_v22, %v835_v53  ;;  %v263_v21 = vsel %vm40_vm0, %v243_v17, 0.0 }
  0xeb   :  { %504 = vst.msk [vmem:[%s1042_s4 + $0x34] sm:$0xf] %vm490_vm1, %v566_v52  ;;  %495 = vst.msk [vmem:[%s1042_s4 + $0x10] sm:$0xf] %vm490_vm1, %v557_v54  ;;  %370 = vadd.xlane.f32.xlu0 %v369_v51  ;;  %v855_v59 = vpop.f32.mrb[6].mxu0  ;;  %v861_v60 = vpop.f32.mrb[6].mxu1  ;;  %v245_v25 = vmul.f32 %v906_v11, %v175_v50  ;;  %v244_v37 = vmul.f32 %v782_v34, %v906_v11  ;;  %v253_v29 = vmul.f32 %v906_v11, %v835_v53 }
  0xec   :  { %503 = vst.msk [vmem:[%s1042_s4 + $0x30] sm:$0xf] %vm490_vm1, %v565_v56  ;;  %355 = vadd.xlane.f32.xlu1 %v354_v57  ;;  %v357_v61 = vsel %vm40_vm0, %v333_v55, 0.0  ;;  %v560_v62 = vpack.c.bf16 %v855_v59, %v855_v59  ;;  %v568_v0 = vpack.c.bf16 %v861_v60, %v861_v60  ;;  %v870_v1 = vpop.f32.mrb[7].mxu0  ;;  %v872_v2 = vpop.f32.mrb[7].mxu1  ;;  %v336_v3 = vmul.f32 %v855_v59, %v747_v22 }
  0xed   :  { %v559_v4 = vpack.c.bf16 %v870_v1, %v870_v1  ;;  %v567_v8 = vpack.c.bf16 %v872_v2, %v872_v2  ;;  %v381_v12 = vsel %vm40_vm0, %v341_v7, 0.0  ;;  %v344_v20 = vmul.f32 %v861_v60, %v747_v22 }
  0xee   :  { %498 = vst.msk [vmem:[%s1042_s4 + $0x1c] sm:$0xf] %vm490_vm1, %v560_v62  ;;  %506 = vst.msk [vmem:[%s1042_s4 + $0x3c] sm:$0xf] %vm490_vm1, %v568_v0  ;;  %v366_v9 = vsel %vm40_vm0, %v336_v3, 0.0  ;;  %v384_v26 = vsel %vm40_vm0, %v342_v19, 0.0  ;;  %v246_v39 = vmul.f32 %v820_v46, %v906_v11  ;;  %v335_v40 = vmul.f32 %v747_v22, %v870_v1 }
  0xef   :  { %358 = vadd.xlane.f32.xlu0 %v357_v61  ;;  %497 = vst.msk [vmem:[%s1042_s4 + $0x18] sm:$0xf] %vm490_vm1, %v559_v4  ;;  %505 = vst.msk [vmem:[%s1042_s4 + $0x38] sm:$0xf] %vm490_vm1, %v567_v8  ;;  %v390_v27 = vsel %vm40_vm0, %v344_v20, 0.0  ;;  %v269_v28 = vsel %vm40_vm0, %v245_v25, 0.0  ;;  %v250_v42 = vmul.f32 %v751_v24, %v906_v11  ;;  %v343_v43 = vmul.f32 %v747_v22, %v872_v2 }
  0xf0   :  { %361 = vadd.xlane.f32.xlu1 %v360_v5  ;;  %v281_v32 = vsel %vm40_vm0, %v249_v30, 0.0  ;;  %v260_v36 = vsel %vm40_vm0, %v242_v31, 0.0  ;;  %v287_v38 = vsel %vm40_vm0, %v251_v33, 0.0  ;;  %v266_v23 = vsel %vm40_vm0, %v244_v37, 0.0 }
  0xf1   :  { %v293_v41 = vsel %vm40_vm0, %v253_v29, 0.0  ;;  %v272_v34 = vsel %vm40_vm0, %v246_v39, 0.0  ;;  %v363_v44 = vsel %vm40_vm0, %v335_v40, 0.0  ;;  %v284_v45 = vsel %vm40_vm0, %v250_v42, 0.0 }
  0xf2   :  { %v252_v46 = vmul.f32 %v788_v35, %v906_v11  ;;  %v387_v47 = vsel %vm40_vm0, %v343_v43, 0.0  ;;  %v247_v49 = vmul.f32 %v906_v11, %v870_v1  ;;  %v254_v22 = vmul.f32 %v828_v48, %v906_v11 }
  0xf3   :  { %376 = vadd.xlane.f32.xlu0 %v375_v6  ;;  %v255_v50 = vmul.f32 %v906_v11, %v872_v2  ;;  %v248_v52 = vmul.f32 %v855_v59, %v906_v11  ;;  %v256_v54 = vmul.f32 %v861_v60, %v906_v11 }
  0xf4   :  { %367 = vadd.xlane.f32.xlu1 %v366_v9  ;;  %v290_v24 = vsel %vm40_vm0, %v252_v46, 0.0  ;;  %v275_v51 = vsel %vm40_vm0, %v247_v49, 0.0  ;;  %v296_v35 = vsel %vm40_vm0, %v254_v22, 0.0 }
  0xf5   :  { %v299_v53 = vsel %vm40_vm0, %v255_v50, 0.0  ;;  %v278_v48 = vsel %vm40_vm0, %v248_v52, 0.0  ;;  %v302_v55 = vsel %vm40_vm0, %v256_v54, 0.0 }
  0xf7   :  { %382 = vadd.xlane.f32.xlu0 %v381_v12 }
  0xf8   :  { %373 = vadd.xlane.f32.xlu1 %v372_v14 }
  0xfb   :  { %258 = vadd.xlane.f32.xlu0 %v257_v16 }
  0xfc   :  { %379 = vadd.xlane.f32.xlu1 %v378_v18 }
  0xff   :  { %264 = vadd.xlane.f32.xlu0 %v263_v21 }
 0x100   :  { %385 = vadd.xlane.f32.xlu1 %v384_v26 }
 0x103   :  { %270 = vadd.xlane.f32.xlu0 %v269_v28 }
 0x104   :  { %391 = vadd.xlane.f32.xlu1 %v390_v27 }
 0x107   :  { %282 = vadd.xlane.f32.xlu0 %v281_v32 }
 0x108   :  { %261 = vadd.xlane.f32.xlu1 %v260_v36 }
 0x10b   :  { %288 = vadd.xlane.f32.xlu0 %v287_v38 }
 0x10c   :  { %267 = vadd.xlane.f32.xlu1 %v266_v23 }
 0x10f   :  { %294 = vadd.xlane.f32.xlu0 %v293_v41 }
 0x110   :  { %273 = vadd.xlane.f32.xlu1 %v272_v34 }
 0x113   :  { %364 = vadd.xlane.f32.xlu0 %v363_v44 }
 0x114   :  { %285 = vadd.xlane.f32.xlu1 %v284_v45 }
 0x117   :  { %388 = vadd.xlane.f32.xlu0 %v387_v47 }
 0x118   :  { %291 = vadd.xlane.f32.xlu1 %v290_v24 }
 0x11b   :  { %276 = vadd.xlane.f32.xlu0 %v275_v51 }
 0x11c   :  { %297 = vadd.xlane.f32.xlu1 %v296_v35 }
 0x11f   :  { %300 = vadd.xlane.f32.xlu0 %v299_v53 }
 0x120   :  { %279 = vadd.xlane.f32.xlu1 %v278_v48 }
 0x124   :  { %303 = vadd.xlane.f32.xlu1 %v302_v55 }
 0x170   :  { %v350_v56 = vpop.xlane.xlu0 %349 }
 0x174   :  { %v347_v57 = vpop.xlane.xlu0 %346 }
 0x175   :  { %v353_v58 = vpop.xlane.xlu1 %352  ;;  %393 = vxpose.xlu0.b32.start [1/16] (narrow) %v347_v57, 8 }
 0x178   :  { %v371_v61 = vpop.xlane.xlu0 %370 }
 0x179   :  { %v356_v62 = vpop.xlane.xlu1 %355  ;;  %394 = vxpose.xlu0.b32.cont [2/16] (narrow) %v350_v56, 8 }
 0x17c   :  { %v359_v59 = vpop.xlane.xlu0 %358 }
 0x17d   :  { %v362_v63 = vpop.xlane.xlu1 %361  ;;  %395 = vxpose.xlu0.b32.cont [3/16] (narrow) %v353_v58, 8 }
 0x180   :  { %v377_v0 = vpop.xlane.xlu0 %376 }
 0x181   :  { %v368_v1 = vpop.xlane.xlu1 %367  ;;  %396 = vxpose.xlu0.b32.cont [4/16] (narrow) %v356_v62, 8 }
 0x184   :  { %v383_v60 = vpop.xlane.xlu0 %382 }
 0x185   :  { %v374_v2 = vpop.xlane.xlu1 %373  ;;  %397 = vxpose.xlu0.b32.cont [5/16] (narrow) %v359_v59, 8 }
 0x188   :  { %v259_v3 = vpop.xlane.xlu0 %258 }
 0x189   :  { %306 = vst.msk [vmem:[%s1044_s5] sm:$0xff] %vm305_vm2, %v259_v3  ;;  %v380_v4 = vpop.xlane.xlu1 %379  ;;  %398 = vxpose.xlu0.b32.cont [6/16] (narrow) %v362_v63, 8 }
 0x18c   :  { %v265_v5 = vpop.xlane.xlu0 %264 }
 0x18d   :  { %308 = vst.msk [vmem:[%s1044_s5 + $0x10] sm:$0xff] %vm305_vm2, %v265_v5  ;;  %v386_v6 = vpop.xlane.xlu1 %385 }
 0x190   :  { %v271_v7 = vpop.xlane.xlu0 %270 }
 0x191   :  { %310 = vst.msk [vmem:[%s1044_s5 + $0x20] sm:$0xff] %vm305_vm2, %v271_v7  ;;  %v392_v8 = vpop.xlane.xlu1 %391 }
 0x194   :  { %v283_v9 = vpop.xlane.xlu0 %282 }
 0x195   :  { %314 = vst.msk [vmem:[%s1044_s5 + $0x40] sm:$0xff] %vm305_vm2, %v283_v9  ;;  %v262_v10 = vpop.xlane.xlu1 %261 }
 0x196   :  { %307 = vst.msk [vmem:[%s1044_s5 + $0x8] sm:$0xff] %vm305_vm2, %v262_v10 }
 0x198   :  { %v289_v11 = vpop.xlane.xlu0 %288 }
 0x199   :  { %316 = vst.msk [vmem:[%s1044_s5 + $0x50] sm:$0xff] %vm305_vm2, %v289_v11  ;;  %v268_v12 = vpop.xlane.xlu1 %267 }
 0x19a   :  { %309 = vst.msk [vmem:[%s1044_s5 + $0x18] sm:$0xff] %vm305_vm2, %v268_v12 }
 0x19c   :  { %v295_v13 = vpop.xlane.xlu0 %294 }
 0x19d   :  { %318 = vst.msk [vmem:[%s1044_s5 + $0x60] sm:$0xff] %vm305_vm2, %v295_v13  ;;  %v274_v14 = vpop.xlane.xlu1 %273 }
 0x19e   :  { %311 = vst.msk [vmem:[%s1044_s5 + $0x28] sm:$0xff] %vm305_vm2, %v274_v14 }
 0x1a0   :  { %v365_v15 = vpop.xlane.xlu0 %364 }
 0x1a1   :  { %v286_v16 = vpop.xlane.xlu1 %285  ;;  %399 = vxpose.xlu0.b32.cont [7/16] (narrow) %v365_v15, 8 }
 0x1a2   :  { %315 = vst.msk [vmem:[%s1044_s5 + $0x48] sm:$0xff] %vm305_vm2, %v286_v16 }
 0x1a4   :  { %v389_v17 = vpop.xlane.xlu0 %388 }
 0x1a5   :  { %v292_v18 = vpop.xlane.xlu1 %291  ;;  %400 = vxpose.xlu0.b32.cont [8/16] (narrow) %v368_v1, 8 }
 0x1a6   :  { %317 = vst.msk [vmem:[%s1044_s5 + $0x58] sm:$0xff] %vm305_vm2, %v292_v18 }
 0x1a8   :  { %v277_v19 = vpop.xlane.xlu0 %276 }
 0x1a9   :  { %312 = vst.msk [vmem:[%s1044_s5 + $0x30] sm:$0xff] %vm305_vm2, %v277_v19  ;;  %v298_v20 = vpop.xlane.xlu1 %297  ;;  %401 = vxpose.xlu0.b32.cont [9/16] (narrow) %v371_v61, 8 }
 0x1aa   :  { %319 = vst.msk [vmem:[%s1044_s5 + $0x68] sm:$0xff] %vm305_vm2, %v298_v20 }
 0x1ac   :  { %v301_v21 = vpop.xlane.xlu0 %300 }
 0x1ad   :  { %v280_v25 = vpop.xlane.xlu1 %279  ;;  %402 = vxpose.xlu0.b32.cont [10/16] (narrow) %v374_v2, 8  ;;  %320 = vst.msk [vmem:[%s1044_s5 + $0x70] sm:$0xff] %vm305_vm2, %v301_v21 }
 0x1ae   :  { %313 = vst.msk [vmem:[%s1044_s5 + $0x38] sm:$0xff] %vm305_vm2, %v280_v25 }
 0x1b1   :  { %403 = vxpose.xlu0.b32.cont [11/16] (narrow) %v377_v0, 8  ;;  %v304_v26 = vpop.xlane.xlu1 %303 }
 0x1b2   :  { %321 = vst.msk [vmem:[%s1044_s5 + $0x78] sm:$0xff] %vm305_vm2, %v304_v26 }
 0x1b5   :  { %404 = vxpose.xlu0.b32.cont [12/16] (narrow) %v380_v4, 8 }
 0x1b9   :  { %405 = vxpose.xlu0.b32.cont [13/16] (narrow) %v383_v60, 8 }
 0x1bd   :  { %406 = vxpose.xlu0.b32.cont [14/16] (narrow) %v386_v6, 8 }
 0x1c1   :  { %407 = vxpose.xlu0.b32.cont [15/16] (narrow) %v389_v17, 8 }
 0x1c5   :  { %408 = vxpose.xlu0.b32.end [16/16] (narrow) %v392_v8, 8 }
 0x209   :  { %v409_v27 = vpop.trf.xlu0 }
 0x20a   :  { %425 = vst [vmem:[%s1045_s6] sm:$0x1] %v409_v27 }

// kernel: gat_forward.6
= control target key start
LH: loop header
LB: loop body
LE: loop exit
PB: predicated region body
PF: predicated region fallthrough
CT: control target
= control target key end

     0   :  { %vm35_vm0 = vcmask 7168   ;;  %vm68_vm1 = vcmask 261120   ;;  %v1917_v0 = vmov -1e+30   ;;  %v1918_v1 = vmov 0.0   ;;  %s2866_s0 = inlined_call_operand.<no memory space> [shape: s32[1,1], index: 0, kind: input, shape index: {}]   ;;  %s2867_s1 = inlined_call_operand.vmem [shape: f32[128,1], index: 1, kind: input, shape index: {}]   ;;  %s2868_s2 = inlined_call_operand.vmem [shape: f32[1,128], index: 2, kind: input, shape index: {}]   ;;  %s2869_s3 = inlined_call_operand.vmem [shape: bf16[128,32], index: 3, kind: input, shape index: {}]   ;;  %s2870_s4 = inlined_call_operand.vmem [shape: s8[128,128], index: 4, kind: input, shape index: {}]   ;;  %s2871_s5 = inlined_call_operand.vmem [shape: f32[1,32], index: 5, kind: input, shape index: {}]   ;;  %s2872_s6 = inlined_call_operand.vmem [shape: f32[1,32], index: 6, kind: input, shape index: {}]   ;;  %s2873_s7 = inlined_call_operand.vmem [shape: f32[1,32], index: 7, kind: input, shape index: {}]   ;;  %s2874_s8 = inlined_call_operand.vmem [shape: f32[128,32], index: 8, kind: output, shape index: {0}]   ;;  %s2875_s9 = inlined_call_operand.vmem [shape: f32[128,1], index: 9, kind: output, shape index: {1}]  }
   0x1   :  { %36 = vst.msk [vmem:[#allocation2] sm:$0xff] %vm35_vm0, %v1917_v0  ;;  %37 = vst.msk [vmem:[#allocation2 + $0x8] sm:$0xff] %vm35_vm0, %v1917_v0  ;;  %p1609_p0 = scmp.le.s32.totalorder %s2866_s0, 0 }
   0x2   :  { %38 = vst.msk [vmem:[#allocation2 + $0x10] sm:$0xff] %vm35_vm0, %v1917_v0  ;;  %39 = vst.msk [vmem:[#allocation2 + $0x18] sm:$0xff] %vm35_vm0, %v1917_v0  ;;  %v101_v2 = vld [vmem:[%s2867_s1 + $0x40] sm:$0xff] (!%p1609_p0)  ;;  %v1919_v4 = vmov (!%p1609_p0), 0   ;;  %v102_v5 = vld [vmem:[%s2867_s1 + $0x48] sm:$0xff] (!%p1609_p0) }
   0x3   :  { %40 = vst.msk [vmem:[#allocation2 + $0x20] sm:$0xff] %vm35_vm0, %v1917_v0  ;;  %41 = vst.msk [vmem:[#allocation2 + $0x28] sm:$0xff] %vm35_vm0, %v1917_v0  ;;  %v93_v3 = vld [vmem:[%s2867_s1] sm:$0xff] (!%p1609_p0)  ;;  %1746 = vset.pattern.permute.xlu1 (!%p1609_p0), %v1919_v4  ;;  %1745 = vset.pattern.permute.xlu0 (!%p1609_p0), %v1919_v4  ;;  %v94_v6 = vld [vmem:[%s2867_s1 + $0x8] sm:$0xff] (!%p1609_p0) }
   0x4   :  { %42 = vst.msk [vmem:[#allocation2 + $0x30] sm:$0xff] %vm35_vm0, %v1917_v0  ;;  %43 = vst.msk [vmem:[#allocation2 + $0x38] sm:$0xff] %vm35_vm0, %v1917_v0  ;;  %152 = vperm.xlu1 (!%p1609_p0), %1746, %v101_v2   ;;  %112 = vperm.xlu0 (!%p1609_p0), %1745, %v93_v3   ;;  %v96_v7 = vld [vmem:[%s2867_s1 + $0x18] sm:$0xff] (!%p1609_p0)  ;;  %v95_v8 = vld [vmem:[%s2867_s1 + $0x10] sm:$0xff] (!%p1609_p0) }
   0x5   :  { %44 = vst.msk [vmem:[#allocation2 + $0x40] sm:$0xff] %vm35_vm0, %v1917_v0  ;;  %45 = vst.msk [vmem:[#allocation2 + $0x48] sm:$0xff] %vm35_vm0, %v1917_v0  ;;  %v104_v9 = vld [vmem:[%s2867_s1 + $0x58] sm:$0xff] (!%p1609_p0)  ;;  %v103_v10 = vld [vmem:[%s2867_s1 + $0x50] sm:$0xff] (!%p1609_p0) }
   0x6   :  { %46 = vst.msk [vmem:[#allocation2 + $0x50] sm:$0xff] %vm35_vm0, %v1917_v0  ;;  %47 = vst.msk [vmem:[#allocation2 + $0x58] sm:$0xff] %vm35_vm0, %v1917_v0  ;;  %v98_v11 = vld [vmem:[%s2867_s1 + $0x28] sm:$0xff] (!%p1609_p0)  ;;  %v97_v12 = vld [vmem:[%s2867_s1 + $0x20] sm:$0xff] (!%p1609_p0) }
   0x7   :  { %48 = vst.msk [vmem:[#allocation2 + $0x60] sm:$0xff] %vm35_vm0, %v1917_v0  ;;  %49 = vst.msk [vmem:[#allocation2 + $0x68] sm:$0xff] %vm35_vm0, %v1917_v0  ;;  %v106_v13 = vld [vmem:[%s2867_s1 + $0x68] sm:$0xff] (!%p1609_p0)  ;;  %v105_v14 = vld [vmem:[%s2867_s1 + $0x60] sm:$0xff] (!%p1609_p0) }
   0x8   :  { %50 = vst.msk [vmem:[#allocation2 + $0x70] sm:$0xff] %vm35_vm0, %v1917_v0  ;;  %51 = vst.msk [vmem:[#allocation2 + $0x78] sm:$0xff] %vm35_vm0, %v1917_v0  ;;  %157 = vperm.xlu1 (!%p1609_p0), %1746, %v102_v5   ;;  %117 = vperm.xlu0 (!%p1609_p0), %1745, %v94_v6   ;;  %v100_v15 = vld [vmem:[%s2867_s1 + $0x38] sm:$0xff] (!%p1609_p0)  ;;  %v99_v16 = vld [vmem:[%s2867_s1 + $0x30] sm:$0xff] (!%p1609_p0) }
   0x9   :  { %52 = vst.msk [vmem:[#allocation3] sm:$0xff] %vm35_vm0, %v1918_v1  ;;  %53 = vst.msk [vmem:[#allocation3 + $0x8] sm:$0xff] %vm35_vm0, %v1918_v1  ;;  %v108_v17 = vld [vmem:[%s2867_s1 + $0x78] sm:$0xff] (!%p1609_p0)  ;;  %v107_v18 = vld [vmem:[%s2867_s1 + $0x70] sm:$0xff] (!%p1609_p0) }
   0xa   :  { %54 = vst.msk [vmem:[#allocation3 + $0x10] sm:$0xff] %vm35_vm0, %v1918_v1  ;;  %55 = vst.msk [vmem:[#allocation3 + $0x18] sm:$0xff] %vm35_vm0, %v1918_v1  ;;  %v1639_v19 = vld [vmem:[%s2870_s4] sm:$0xff] (!%p1609_p0)   ;;  %v1737_v20 = vld [vmem:[%s2870_s4 + $0x10] sm:$0xff] (!%p1609_p0)  }
   0xb   :  { %56 = vst.msk [vmem:[#allocation3 + $0x20] sm:$0xff] %vm35_vm0, %v1918_v1  ;;  %57 = vst.msk [vmem:[#allocation3 + $0x28] sm:$0xff] %vm35_vm0, %v1918_v1  ;;  %v1640_v21 = vunpack.c.0.s8 (!%p1609_p0), %v1639_v19  ;;  %v1641_v22 = vunpack.c.1.s8 (!%p1609_p0), %v1639_v19  ;;  %v1656_v23 = vunpack.c.0.s8 (!%p1609_p0), %v1737_v20  ;;  %v1657_v24 = vunpack.c.1.s8 (!%p1609_p0), %v1737_v20  ;;  %v2079_v32 = vld [vmem:[%s2868_s2] ss:$0 sm:$0xff] (!%p1609_p0)  ;;  %v2084_v37 = vld [vmem:[%s2870_s4 + $0x8] sm:$0xff] (!%p1609_p0)  }
   0xc   :  { %58 = vst.msk [vmem:[#allocation3 + $0x30] sm:$0xff] %vm35_vm0, %v1918_v1  ;;  %59 = vst.msk [vmem:[#allocation3 + $0x38] sm:$0xff] %vm35_vm0, %v1918_v1  ;;  %127 = vperm.xlu1 (!%p1609_p0), %1746, %v96_v7   ;;  %122 = vperm.xlu0 (!%p1609_p0), %1745, %v95_v8   ;;  %v1644_v25 = vunpack.c.2.s8 (!%p1609_p0), %v1639_v19  ;;  %v1645_v28 = vunpack.c.3.s8 (!%p1609_p0), %v1639_v19  ;;  %v1660_v35 = vunpack.c.2.s8 (!%p1609_p0), %v1737_v20  ;;  %v1661_v42 = vunpack.c.3.s8 (!%p1609_p0), %v1737_v20  ;;  %v2095_v62 = vld [vmem:[%s2870_s4 + $0x18] sm:$0xff] (!%p1609_p0)  }
   0xd   :  { %60 = vst.msk [vmem:[#allocation3 + $0x40] sm:$0xff] %vm35_vm0, %v1918_v1  ;;  %61 = vst.msk [vmem:[#allocation3 + $0x48] sm:$0xff] %vm35_vm0, %v1918_v1  ;;  %v292_v26 = vcvt.s32.f32 (!%p1609_p0), %v1640_v21  ;;  %v293_v27 = vcvt.s32.f32 (!%p1609_p0), %v1641_v22  ;;  %v300_v29 = vcvt.s32.f32 (!%p1609_p0), %v1656_v23  ;;  %v301_v30 = vcvt.s32.f32 (!%p1609_p0), %v1657_v24 }
   0xe   :  { %62 = vst.msk [vmem:[#allocation3 + $0x50] sm:$0xff] %vm35_vm0, %v1918_v1  ;;  %63 = vst.msk [vmem:[#allocation3 + $0x58] sm:$0xff] %vm35_vm0, %v1918_v1  ;;  %v294_v31 = vcvt.s32.f32 (!%p1609_p0), %v1644_v25  ;;  %v295_v36 = vcvt.s32.f32 (!%p1609_p0), %v1645_v28  ;;  %v302_v48 = vcvt.s32.f32 (!%p1609_p0), %v1660_v35  ;;  %v1648_v49 = vunpack.c.0.s8 (!%p1609_p0), %v2084_v37 }
   0xf   :  { %64 = vst.msk [vmem:[#allocation3 + $0x60] sm:$0xff] %vm35_vm0, %v1918_v1  ;;  %65 = vst.msk [vmem:[#allocation3 + $0x68] sm:$0xff] %vm35_vm0, %v1918_v1  ;;  %v1611_v33 = vadd.f32 (!%p1609_p0), -1.0, %v292_v26  ;;  %v1612_v34 = vadd.f32 (!%p1609_p0), -1.0, %v293_v27  ;;  %v1619_v40 = vadd.f32 (!%p1609_p0), -1.0, %v300_v29  ;;  %v1620_v41 = vadd.f32 (!%p1609_p0), -1.0, %v301_v30 }
  0x10   :  { %66 = vst.msk [vmem:[#allocation3 + $0x70] sm:$0xff] %vm35_vm0, %v1918_v1  ;;  %67 = vst.msk [vmem:[#allocation3 + $0x78] sm:$0xff] %vm35_vm0, %v1918_v1  ;;  %167 = vperm.xlu1 (!%p1609_p0), %1746, %v104_v9   ;;  %162 = vperm.xlu0 (!%p1609_p0), %1745, %v103_v10   ;;  %v1613_v45 = vadd.f32 (!%p1609_p0), -1.0, %v294_v31  ;;  %v1614_v52 = vadd.f32 (!%p1609_p0), -1.0, %v295_v36  ;;  %v303_v57 = vcvt.s32.f32 (!%p1609_p0), %v1661_v42  ;;  %v1649_v61 = vunpack.c.1.s8 (!%p1609_p0), %v2084_v37 }
  0x11   :  { %69 = vst.msk [vmem:[#allocation4] sm:$0xff] %vm68_vm1, %v1918_v1  ;;  %70 = vst.msk [vmem:[#allocation4 + $0x8] sm:$0xff] %vm68_vm1, %v1918_v1  ;;  %v324_v46 = vmul.f32 (!%p1609_p0), 1e+30, %v1611_v33  ;;  %v325_v47 = vmul.f32 (!%p1609_p0), 1e+30, %v1612_v34  ;;  %v296_v2 = vcvt.s32.f32 (!%p1609_p0), %v1648_v49  ;;  %v1664_v10 = vunpack.c.0.s8 (!%p1609_p0), %v2095_v62 }
  0x12   :  { %71 = vst.msk [vmem:[#allocation4 + $0x10] sm:$0xff] %vm68_vm1, %v1918_v1  ;;  %72 = vst.msk [vmem:[#allocation4 + $0x18] sm:$0xff] %vm68_vm1, %v1918_v1  ;;  %92 = sbr.rel (%p1609_p0) target bundleno = 678 (0x2a6), region = 37  ;;  %v332_v55 = vmul.f32 (!%p1609_p0), 1e+30, %v1619_v40  ;;  %v1622_v9 = vadd.f32 (!%p1609_p0), -1.0, %v303_v57  ;;  %v1665_v26 = vunpack.c.1.s8 (!%p1609_p0), %v2095_v62  ;;  %v1652_v30 = vunpack.c.2.s8 (!%p1609_p0), %v2084_v37 }
  0x13   :  { %73 = vst.msk [vmem:[#allocation4 + $0x20] sm:$0xff] %vm68_vm1, %v1918_v1  ;;  %74 = vst.msk [vmem:[#allocation4 + $0x28] sm:$0xff] %vm68_vm1, %v1918_v1  ;;  %v333_v56 = vmul.f32 (!%p1609_p0), 1e+30, %v1620_v41  ;;  %v326_v0 = vmul.f32 (!%p1609_p0), 1e+30, %v1613_v45  ;;  %v304_v25 = vcvt.s32.f32 (!%p1609_p0), %v1664_v10 }
  0x14   :  { %75 = vst.msk [vmem:[#allocation4 + $0x30] sm:$0xff] %vm68_vm1, %v1918_v1  ;;  %76 = vst.msk [vmem:[#allocation4 + $0x38] sm:$0xff] %vm68_vm1, %v1918_v1  ;;  %137 = vperm.xlu1 (!%p1609_p0), %1746, %v98_v11   ;;  %132 = vperm.xlu0 (!%p1609_p0), %1745, %v97_v12   ;;  %v327_v8 = vmul.f32 (!%p1609_p0), 1e+30, %v1614_v52  ;;  %v335_v24 = vmul.f32 (!%p1609_p0), 1e+30, %v1622_v9  ;;  %v1668_v52 = vunpack.c.2.s8 (!%p1609_p0), %v2095_v62 }
  0x15   :  { %77 = vst.msk [vmem:[#allocation4 + $0x40] sm:$0xff] %vm68_vm1, %v1918_v1  ;;  %78 = vst.msk [vmem:[#allocation4 + $0x48] sm:$0xff] %vm68_vm1, %v1918_v1  ;;  %v1623_v42 = vadd.f32 (!%p1609_p0), -1.0, %v304_v25 }
  0x16   :  { %79 = vst.msk [vmem:[#allocation4 + $0x50] sm:$0xff] %vm68_vm1, %v1918_v1  ;;  %80 = vst.msk [vmem:[#allocation4 + $0x58] sm:$0xff] %vm68_vm1, %v1918_v1 }
  0x17   :  { %81 = vst.msk [vmem:[#allocation4 + $0x60] sm:$0xff] %vm68_vm1, %v1918_v1  ;;  %82 = vst.msk [vmem:[#allocation4 + $0x68] sm:$0xff] %vm68_vm1, %v1918_v1  ;;  %v336_v57 = vmul.f32 (!%p1609_p0), 1e+30, %v1623_v42 }
  0x18   :  { %83 = vst.msk [vmem:[#allocation4 + $0x70] sm:$0xff] %vm68_vm1, %v1918_v1  ;;  %84 = vst.msk [vmem:[#allocation4 + $0x78] sm:$0xff] %vm68_vm1, %v1918_v1  ;;  %177 = vperm.xlu1 (!%p1609_p0), %1746, %v106_v13   ;;  %172 = vperm.xlu0 (!%p1609_p0), %1745, %v105_v14   ;;  %v1621_v1 = vadd.f32 (!%p1609_p0), -1.0, %v302_v48  ;;  %v297_v14 = vcvt.s32.f32 (!%p1609_p0), %v1649_v61  ;;  %v298_v48 = vcvt.s32.f32 (!%p1609_p0), %v1652_v30 }
  0x1a   :  { %v1616_v35 = vadd.f32 -1.0, %v297_v14 }
  0x1c   :  { %147 = vperm.xlu1 %1746, %v100_v15   ;;  %142 = vperm.xlu0 %1745, %v99_v16  }
  0x20   :  { %187 = vperm.xlu1 %1746, %v108_v17   ;;  %182 = vperm.xlu0 %1745, %v107_v18   ;;  %v334_v17 = vmul.f32 1e+30, %v1621_v1  ;;  %v1615_v18 = vadd.f32 -1.0, %v296_v2  ;;  %v1617_v1 = vadd.f32 -1.0, %v298_v48  ;;  %v2166_v48 = vld [vmem:[#allocation2] sm:$0xff] }
  0x22   :  { %v328_v34 = vmul.f32 1e+30, %v1615_v18  ;;  %v330_v18 = vmul.f32 1e+30, %v1617_v1 }
  0x83   :  { %v153_v38 = vpop.permute.xlu1 %152  ;;  %v113_v39 = vpop.permute.xlu0 %112 }
  0x84   :  { %v204_v43 = vadd.f32 %v2079_v32, %v153_v38  ;;  %v196_v44 = vadd.f32 %v2079_v32, %v113_v39 }
  0x86   :  { %v236_v50 = vmul.f32 0.2, %v204_v43  ;;  %v228_v51 = vmul.f32 0.2, %v196_v44  ;;  %vm212_vm2 = vcmp.gt.f32.partialorder %v196_v44, 0.0  ;;  %vm220_vm3 = vcmp.gt.f32.partialorder %v204_v43, 0.0 }
  0x87   :  { %v158_v53 = vpop.permute.xlu1 %157  ;;  %v118_v54 = vpop.permute.xlu0 %117 }
  0x88   :  { %v205_v58 = vadd.f32 %v2079_v32, %v158_v53  ;;  %v197_v59 = vadd.f32 %v2079_v32, %v118_v54  ;;  %v244_v60 = vsel %vm212_vm2, %v196_v44, %v228_v51  ;;  %v252_v5 = vsel %vm220_vm3, %v204_v43, %v236_v50 }
  0x89   :  { %v2097_v63 = vadd.f32 %v324_v46, %v244_v60  ;;  %v2103_v15 = vadd.f32 %v332_v55, %v252_v5  ;;  %v305_v43 = vcvt.s32.f32 %v1665_v26  ;;  %v1653_v44 = vunpack.c.3.s8 %v2084_v37 }
  0x8a   :  { %v237_v3 = vmul.f32 0.2, %v205_v58  ;;  %v229_v4 = vmul.f32 0.2, %v197_v59  ;;  %vm213_vm4 = vcmp.gt.f32.partialorder %v197_v59, 0.0  ;;  %vm221_vm5 = vcmp.gt.f32.partialorder %v205_v58, 0.0 }
  0x8b   :  { %v128_v6 = vpop.permute.xlu1 %127  ;;  %356 = vmax.xlane.f32.xlu0 %v2097_v63  ;;  %v123_v7 = vpop.permute.xlu0 %122  ;;  %v329_v51 = vmul.f32 1e+30, %v1616_v35  ;;  %v1669_v5 = vunpack.c.3.s8 %v2095_v62 }
  0x8c   :  { %v199_v11 = vadd.f32 %v2079_v32, %v128_v6  ;;  %v198_v12 = vadd.f32 %v2079_v32, %v123_v7  ;;  %v245_v13 = vsel %vm213_vm4, %v197_v59, %v229_v4  ;;  %v253_v21 = vsel %vm221_vm5, %v205_v58, %v237_v3 }
  0x8d   :  { %v2105_v16 = vadd.f32 %v325_v47, %v245_v13  ;;  %v2113_v31 = vadd.f32 %v333_v56, %v253_v21  ;;  %v1624_v58 = vadd.f32 -1.0, %v305_v43  ;;  %v299_v59 = vcvt.s32.f32 %v1653_v44 }
  0x8e   :  { %v231_v19 = vmul.f32 0.2, %v199_v11  ;;  %v230_v20 = vmul.f32 0.2, %v198_v12  ;;  %vm214_vm6 = vcmp.gt.f32.partialorder %v198_v12, 0.0  ;;  %vm215_vm7 = vcmp.gt.f32.partialorder %v199_v11, 0.0 }
  0x8f   :  { %v168_v22 = vpop.permute.xlu1 %167  ;;  %372 = vmax.xlane.f32.xlu0 %v2103_v15  ;;  %358 = vmax.xlane.f32.xlu1 %v2105_v16  ;;  %v163_v23 = vpop.permute.xlu0 %162  ;;  %v306_v4 = vcvt.s32.f32 %v1668_v52  ;;  %v307_v21 = vcvt.s32.f32 %v1669_v5 }
  0x90   :  { %v207_v27 = vadd.f32 %v2079_v32, %v168_v22  ;;  %v206_v28 = vadd.f32 %v2079_v32, %v163_v23  ;;  %v246_v29 = vsel %vm214_vm6, %v198_v12, %v230_v20  ;;  %v247_v39 = vsel %vm215_vm7, %v199_v11, %v231_v19 }
  0x91   :  { %v2115_v33 = vadd.f32 %v326_v0, %v246_v29  ;;  %v2122_v49 = vadd.f32 %v327_v8, %v247_v39  ;;  %v337_v11 = vmul.f32 1e+30, %v1624_v58  ;;  %v1618_v12 = vadd.f32 -1.0, %v299_v59  ;;  %v2185_v59 = vld [vmem:[#allocation2 + $0x10] sm:$0xff] }
  0x92   :  { %v239_v36 = vmul.f32 0.2, %v207_v27  ;;  %v238_v38 = vmul.f32 0.2, %v206_v28  ;;  %vm222_vm8 = vcmp.gt.f32.partialorder %v206_v28, 0.0  ;;  %vm223_vm9 = vcmp.gt.f32.partialorder %v207_v27, 0.0 }
  0x93   :  { %v138_v40 = vpop.permute.xlu1 %137  ;;  %374 = vmax.xlane.f32.xlu0 %v2113_v31  ;;  %360 = vmax.xlane.f32.xlu1 %v2115_v33  ;;  %v133_v41 = vpop.permute.xlu0 %132  ;;  %v1625_v20 = vadd.f32 -1.0, %v306_v4  ;;  %v331_v30 = vmul.f32 1e+30, %v1618_v12 }
  0x94   :  { %v201_v45 = vadd.f32 %v2079_v32, %v138_v40  ;;  %v200_v46 = vadd.f32 %v2079_v32, %v133_v41  ;;  %v254_v47 = vsel %vm222_vm8, %v206_v28, %v238_v38  ;;  %v255_v55 = vsel %vm223_vm9, %v207_v27, %v239_v36 }
  0x95   :  { %v2124_v50 = vadd.f32 %v334_v17, %v254_v47  ;;  %v2131_v2 = vadd.f32 %v335_v24, %v255_v55  ;;  %v338_v36 = vmul.f32 1e+30, %v1625_v20  ;;  %v1626_v38 = vadd.f32 -1.0, %v307_v21  ;;  %v1747_v47 = vld [vmem:[%s2869_s3] sm:$0xff]   ;;  %v1748_v55 = vld [vmem:[%s2869_s3 + $0x8] sm:$0xff]  }
  0x96   :  { %v233_v53 = vmul.f32 0.2, %v201_v45  ;;  %v232_v54 = vmul.f32 0.2, %v200_v46  ;;  %vm216_vm10 = vcmp.gt.f32.partialorder %v200_v46, 0.0  ;;  %vm217_vm11 = vcmp.gt.f32.partialorder %v201_v45, 0.0  ;;  %1686 = vmatprep.subr.bf16.mxu0 %v1747_v47  ;;  %1718 = vmatprep.subr.bf16.mxu1 %v1747_v47 }
  0x97   :  { %v178_v56 = vpop.permute.xlu1 %177  ;;  %362 = vmax.xlane.f32.xlu0 %v2122_v49  ;;  %376 = vmax.xlane.f32.xlu1 %v2124_v50  ;;  %v173_v37 = vpop.permute.xlu0 %172  ;;  %v339_v44 = vmul.f32 1e+30, %v1626_v38 }
  0x98   :  { %v209_v60 = vadd.f32 %v2079_v32, %v178_v56  ;;  %v208_v61 = vadd.f32 %v2079_v32, %v173_v37  ;;  %v248_v0 = vsel %vm216_vm10, %v200_v46, %v232_v54  ;;  %v249_v8 = vsel %vm217_vm11, %v201_v45, %v233_v53  ;;  %1687 = vmatpush3.bf16.msra.mxu0 %v1747_v47  ;;  %v2171_v53 = vld [vmem:[#allocation2 + $0x8] sm:$0xff]  ;;  %v2173_v54 = vld [vmem:[#allocation2 + $0x40] sm:$0xff] }
  0x99   :  { %v2133_v3 = vadd.f32 %v328_v34, %v248_v0  ;;  %v2140_v62 = vadd.f32 %v329_v51, %v249_v8  ;;  %1726 = vmatpush3.bf16.msra.mxu1 %v1747_v47  ;;  %1688 = vmatprep.subr.bf16.mxu0 %v1748_v55  ;;  %v1750_v8 = vld [vmem:[%s2869_s3 + $0x18] sm:$0xff]  }
  0x9a   :  { %v241_v6 = vmul.f32 0.2, %v209_v60  ;;  %v240_v7 = vmul.f32 0.2, %v208_v61  ;;  %vm224_vm12 = vcmp.gt.f32.partialorder %v208_v61, 0.0  ;;  %vm225_vm13 = vcmp.gt.f32.partialorder %v209_v60, 0.0  ;;  %1719 = vmatprep.subr.bf16.mxu1 %v1748_v55 }
  0x9b   :  { %v148_v9 = vpop.permute.xlu1 %147  ;;  %378 = vmax.xlane.f32.xlu0 %v2131_v2  ;;  %364 = vmax.xlane.f32.xlu1 %v2133_v3  ;;  %v143_v10 = vpop.permute.xlu0 %142 }
  0x9c   :  { %v203_v13 = vadd.f32 %v2079_v32, %v148_v9  ;;  %v202_v14 = vadd.f32 %v2079_v32, %v143_v10  ;;  %v256_v17 = vsel %vm224_vm12, %v208_v61, %v240_v7  ;;  %v257_v24 = vsel %vm225_vm13, %v209_v60, %v241_v6  ;;  %v2187_v60 = vld [vmem:[#allocation2 + $0x48] sm:$0xff]  ;;  %1689 = vmatpush3.bf16.msra.mxu0 %v1748_v55  ;;  %v1749_v61 = vld [vmem:[%s2869_s3 + $0x10] sm:$0xff]   ;;  %v2204_v7 = vld [vmem:[#allocation2 + $0x18] sm:$0xff] }
  0x9d   :  { %v2142_v19 = vadd.f32 %v336_v57, %v256_v17  ;;  %v2148_v34 = vadd.f32 %v337_v11, %v257_v24  ;;  %1727 = vmatpush3.bf16.msra.mxu1 %v1748_v55  ;;  %1690 = vmatprep.subr.bf16.mxu0 %v1749_v61  ;;  %v2202_v6 = vld [vmem:[#allocation2 + $0x50] sm:$0xff]  ;;  %v1751_v17 = vld [vmem:[%s2869_s3 + $0x20] sm:$0xff]  }
  0x9e   :  { %v235_v22 = vmul.f32 0.2, %v203_v13  ;;  %v234_v23 = vmul.f32 0.2, %v202_v14  ;;  %vm218_vm14 = vcmp.gt.f32.partialorder %v202_v14, 0.0  ;;  %vm219_vm15 = vcmp.gt.f32.partialorder %v203_v13, 0.0  ;;  %1720 = vmatprep.subr.bf16.mxu1 %v1749_v61 }
  0x9f   :  { %v188_v25 = vpop.permute.xlu1 %187  ;;  %366 = vmax.xlane.f32.xlu0 %v2140_v62  ;;  %380 = vmax.xlane.f32.xlu1 %v2142_v19  ;;  %v183_v26 = vpop.permute.xlu0 %182  ;;  %v2236_v24 = vld [vmem:[#allocation2 + $0x60] sm:$0xff]  ;;  %v2271_v55 = vld [vmem:[#allocation2 + $0x70] sm:$0xff] }
  0xa0   :  { %v211_v27 = vadd.f32 %v2079_v32, %v188_v25  ;;  %v210_v28 = vadd.f32 %v2079_v32, %v183_v26  ;;  %v250_v29 = vsel %vm218_vm14, %v202_v14, %v234_v23  ;;  %v251_v41 = vsel %vm219_vm15, %v203_v13, %v235_v22  ;;  %1691 = vmatpush3.bf16.msra.mxu0 %v1749_v61  ;;  %v392_v13 = vld [vmem:[#allocation2 + $0x20] sm:$0xff]  ;;  %v2221_v14 = vld [vmem:[#allocation2 + $0x58] sm:$0xff]  ;;  %v2238_v25 = vld [vmem:[#allocation2 + $0x28] sm:$0xff] }
  0xa1   :  { %v2150_v35 = vadd.f32 %v330_v18, %v250_v29  ;;  %v2154_v43 = vadd.f32 %v331_v30, %v251_v41  ;;  %1728 = vmatpush3.bf16.msra.mxu1 %v1749_v61  ;;  %1692 = vmatprep.subr.bf16.mxu0 %v1750_v8  ;;  %v2255_v41 = vld [vmem:[#allocation2 + $0x68] sm:$0xff] }
  0xa2   :  { %v243_v39 = vmul.f32 0.2, %v211_v27  ;;  %v242_v40 = vmul.f32 0.2, %v210_v28  ;;  %vm226_vm2 = vcmp.gt.f32.partialorder %v210_v28, 0.0  ;;  %vm227_vm3 = vcmp.gt.f32.partialorder %v211_v27, 0.0  ;;  %1721 = vmatprep.subr.bf16.mxu1 %v1750_v8 }
  0xa3   :  { %382 = vmax.xlane.f32.xlu0 %v2148_v34  ;;  %368 = vmax.xlane.f32.xlu1 %v2150_v35 }
  0xa4   :  { %v258_v42 = vsel %vm226_vm2, %v210_v28, %v242_v40  ;;  %v259_v45 = vsel %vm227_vm3, %v211_v27, %v243_v39  ;;  %1693 = vmatpush3.bf16.msra.mxu0 %v1750_v8  ;;  %v1752_v27 = vld [vmem:[%s2869_s3 + $0x28] sm:$0xff]   ;;  %v394_v40 = vld [vmem:[#allocation2 + $0x30] sm:$0xff] }
  0xa5   :  { %v2156_v32 = vadd.f32 %v338_v36, %v258_v42  ;;  %v2160_v46 = vadd.f32 %v339_v44, %v259_v45  ;;  %1729 = vmatpush3.bf16.msra.mxu1 %v1750_v8  ;;  %1694 = vmatprep.subr.bf16.mxu0 %v1751_v17  ;;  %v1753_v44 = vld [vmem:[%s2869_s3 + $0x30] sm:$0xff]  }
  0xa6   :  { %1722 = vmatprep.subr.bf16.mxu1 %v1751_v17 }
  0xa7   :  { %370 = vmax.xlane.f32.xlu0 %v2154_v43  ;;  %384 = vmax.xlane.f32.xlu1 %v2156_v32 }
  0xa8   :  { %1695 = vmatpush3.bf16.msra.mxu0 %v1751_v17 }
  0xa9   :  { %1730 = vmatpush3.bf16.msra.mxu1 %v1751_v17  ;;  %1696 = vmatprep.subr.bf16.mxu0 %v1752_v27 }
  0xaa   :  { %1723 = vmatprep.subr.bf16.mxu1 %v1752_v27 }
  0xab   :  { %386 = vmax.xlane.f32.xlu0 %v2160_v46 }
  0xac   :  { %1697 = vmatpush3.bf16.msra.mxu0 %v1752_v27 }
  0xad   :  { %1731 = vmatpush3.bf16.msra.mxu1 %v1752_v27  ;;  %1698 = vmatprep.subr.bf16.mxu0 %v1753_v44 }
  0xae   :  { %1724 = vmatprep.subr.bf16.mxu1 %v1753_v44 }
  0xb0   :  { %1699 = vmatpush3.bf16.msra.mxu0 %v1753_v44 }
  0xb1   :  { %1732 = vmatpush3.bf16.msra.mxu1 %v1753_v44 }
 0x118   :  { %v357_v51 = vpop.xlane.xlu0 %356 }
 0x119   :  { %v2169_v52 = vmax.f32 %v2166_v48, %v357_v51 }
 0x11b   :  { %1012 = vst.msk [vmem:[#allocation2] sm:$0xff] %vm35_vm0, %v2169_v52  ;;  %470 = vperm.xlu1 %1746, %v2169_v52   ;;  %v420_v26 = vsub.f32 %v2166_v48, %v2169_v52 }
 0x11c   :  { %v359_v56 = vpop.xlane.xlu1 %358  ;;  %v373_v37 = vpop.xlane.xlu0 %372 }
 0x11d   :  { %v405_v57 = vmax.f32 %v2171_v53, %v359_v56  ;;  %v2183_v58 = vmax.f32 %v2173_v54, %v373_v37  ;;  %v436_v42 = vmul.f32 1.442695, %v420_v26  ;;  %v395_v56 = vld [vmem:[#allocation2 + $0x38] sm:$0xff] }
 0x11f   :  { %1013 = vst.msk [vmem:[#allocation2 + $0x8] sm:$0xff] %vm35_vm0, %v405_v57  ;;  %1020 = vst.msk [vmem:[#allocation2 + $0x40] sm:$0xff] %vm35_vm0, %v2183_v58  ;;  %475 = vperm.xlu0 %1745, %v405_v57   ;;  %510 = vperm.xlu1 %1746, %v2183_v58   ;;  %v421_v18 = vsub.f32 %v2171_v53, %v405_v57  ;;  %v428_v37 = vsub.f32 %v2173_v54, %v2183_v58 }
 0x120   :  { %v361_v0 = vpop.xlane.xlu1 %360  ;;  %v375_v1 = vpop.xlane.xlu0 %374 }
 0x121   :  { %v2197_v4 = vmax.f32 %v2185_v59, %v361_v0  ;;  %v2200_v5 = vmax.f32 %v2187_v60, %v375_v1  ;;  %v438_v28 = vmul.f32 1.442695, %v421_v18 }
 0x123   :  { %1014 = vst.msk [vmem:[#allocation2 + $0x10] sm:$0xff] %vm35_vm0, %v2197_v4  ;;  %1021 = vst.msk [vmem:[#allocation2 + $0x48] sm:$0xff] %vm35_vm0, %v2200_v5  ;;  %480 = vperm.xlu0 %1745, %v2197_v4   ;;  %515 = vperm.xlu1 %1746, %v2200_v5   ;;  %1755 = vpow2.f32 %v438_v28  ;;  %v422_v45 = vsub.f32 %v2185_v59, %v2197_v4  ;;  %v1754_v59 = vld [vmem:[%s2869_s3 + $0x38] sm:$0xff]  }
 0x124   :  { %v377_v9 = vpop.xlane.xlu1 %376  ;;  %v363_v10 = vpop.xlane.xlu0 %362  ;;  %1757 = vpow2.f32 %v436_v42  ;;  %1700 = vmatprep.subr.bf16.mxu0 %v1754_v59  ;;  %1725 = vmatprep.subr.bf16.mxu1 %v1754_v59 }
 0x125   :  { %v2216_v11 = vmax.f32 %v2202_v6, %v377_v9  ;;  %v2219_v12 = vmax.f32 %v2204_v7, %v363_v10  ;;  %v440_v61 = vmul.f32 1.442695, %v422_v45  ;;  %v2287_v9 = vld [vmem:[#allocation2 + $0x78] sm:$0xff]  ;;  %1701 = vmatpush3.bf16.msra.mxu0 %v1754_v59  ;;  %1733 = vmatpush3.bf16.msra.mxu1 %v1754_v59  ;;  %v452_v10 = vmul.f32 1.442695, %v428_v37 }
 0x127   :  { %1022 = vst.msk [vmem:[#allocation2 + $0x50] sm:$0xff] %vm35_vm0, %v2216_v11  ;;  %1015 = vst.msk [vmem:[#allocation2 + $0x18] sm:$0xff] %vm35_vm0, %v2219_v12  ;;  %520 = vperm.xlu0 %1745, %v2216_v11   ;;  %485 = vperm.xlu1 %1746, %v2219_v12   ;;  %v423_v0 = vsub.f32 %v2204_v7, %v2219_v12 }
 0x128   :  { %v365_v20 = vpop.xlane.xlu1 %364  ;;  %v379_v21 = vpop.xlane.xlu0 %378 }
 0x129   :  { %v408_v22 = vmax.f32 %v392_v13, %v365_v20  ;;  %v2234_v23 = vmax.f32 %v2221_v14, %v379_v21  ;;  %v442_v12 = vmul.f32 1.442695, %v423_v0 }
 0x12b   :  { %1016 = vst.msk [vmem:[#allocation2 + $0x20] sm:$0xff] %vm35_vm0, %v408_v22  ;;  %1023 = vst.msk [vmem:[#allocation2 + $0x58] sm:$0xff] %vm35_vm0, %v2234_v23  ;;  %490 = vperm.xlu0 %1745, %v408_v22   ;;  %525 = vperm.xlu1 %1746, %v2234_v23   ;;  %v424_v29 = vsub.f32 %v392_v13, %v408_v22  ;;  %v430_v13 = vsub.f32 %v2202_v6, %v2216_v11 }
 0x12c   :  { %v381_v30 = vpop.xlane.xlu1 %380  ;;  %v367_v36 = vpop.xlane.xlu0 %366 }
 0x12d   :  { %v2250_v38 = vmax.f32 %v2236_v24, %v381_v30  ;;  %v2253_v39 = vmax.f32 %v2238_v25, %v367_v36  ;;  %v444_v47 = vmul.f32 1.442695, %v424_v29  ;;  %v2302_v11 = vpop.eup %1755  ;;  %v456_v20 = vmul.f32 1.442695, %v430_v13 }
 0x12e   :  { %v2312_v27 = vpop.eup %1757 }
 0x12f   :  { %1024 = vst.msk [vmem:[#allocation2 + $0x60] sm:$0xff] %vm35_vm0, %v2250_v38  ;;  %1017 = vst.msk [vmem:[#allocation2 + $0x28] sm:$0xff] %vm35_vm0, %v2253_v39  ;;  %530 = vperm.xlu0 %1745, %v2250_v38   ;;  %495 = vperm.xlu1 %1746, %v2253_v39   ;;  %1759 = vpow2.f32 %v444_v47  ;;  %v425_v17 = vsub.f32 %v2238_v25, %v2253_v39  ;;  %v432_v21 = vsub.f32 %v2236_v24, %v2250_v38 }
 0x130   :  { %v369_v48 = vpop.xlane.xlu1 %368  ;;  %v383_v51 = vpop.xlane.xlu0 %382  ;;  %v429_v24 = vsub.f32 %v2187_v60, %v2200_v5 }
 0x131   :  { %v410_v52 = vmax.f32 %v394_v40, %v369_v48  ;;  %v2269_v53 = vmax.f32 %v2255_v41, %v383_v51  ;;  %v446_v25 = vmul.f32 1.442695, %v425_v17  ;;  %v460_v29 = vmul.f32 1.442695, %v432_v21 }
 0x132   :  { %v454_v39 = vmul.f32 1.442695, %v429_v24 }
 0x133   :  { %v426_v57 = vsub.f32 %v394_v40, %v410_v52  ;;  %1018 = vst.msk [vmem:[#allocation2 + $0x30] sm:$0xff] %vm35_vm0, %v410_v52  ;;  %1025 = vst.msk [vmem:[#allocation2 + $0x68] sm:$0xff] %vm35_vm0, %v2269_v53  ;;  %500 = vperm.xlu0 %1745, %v410_v52   ;;  %535 = vperm.xlu1 %1746, %v2269_v53   ;;  %v431_v40 = vsub.f32 %v2221_v14, %v2234_v23 }
 0x134   :  { %v385_v1 = vpop.xlane.xlu1 %384  ;;  %v371_v54 = vpop.xlane.xlu0 %370  ;;  %v433_v5 = vsub.f32 %v2255_v41, %v2269_v53 }
 0x135   :  { %v448_v58 = vmul.f32 1.442695, %v426_v57  ;;  %v2285_v4 = vmax.f32 %v2271_v55, %v385_v1  ;;  %v411_v8 = vmax.f32 %v395_v56, %v371_v54  ;;  %v458_v60 = vmul.f32 1.442695, %v431_v40 }
 0x136   :  { %v462_v14 = vmul.f32 1.442695, %v433_v5 }
 0x137   :  { %1761 = vpow2.f32 %v448_v58  ;;  %v434_v7 = vsub.f32 %v2271_v55, %v2285_v4  ;;  %1026 = vst.msk [vmem:[#allocation2 + $0x70] sm:$0xff] %vm35_vm0, %v2285_v4  ;;  %1019 = vst.msk [vmem:[#allocation2 + $0x38] sm:$0xff] %vm35_vm0, %v411_v8  ;;  %540 = vperm.xlu0 %1745, %v2285_v4   ;;  %505 = vperm.xlu1 %1746, %v411_v8   ;;  %v427_v26 = vsub.f32 %v395_v56, %v411_v8 }
 0x138   :  { %1763 = vpow2.f32 %v440_v61  ;;  %v387_v18 = vpop.xlane.xlu0 %386 }
 0x139   :  { %v2300_v6 = vmax.f32 %v2287_v9, %v387_v18  ;;  %1765 = vpow2.f32 %v452_v10  ;;  %v2314_v28 = vpop.eup %1759  ;;  %v450_v30 = vmul.f32 1.442695, %v427_v26 }
 0x13a   :  { %1767 = vpow2.f32 %v442_v12 }
 0x13b   :  { %v435_v22 = vsub.f32 %v2287_v9, %v2300_v6  ;;  %1027 = vst.msk [vmem:[#allocation2 + $0x78] sm:$0xff] %vm35_vm0, %v2300_v6  ;;  %737 = vperm.xlu0 %1745, %v2302_v11   ;;  %545 = vperm.xlu1 %1746, %v2300_v6   ;;  %1769 = vpow2.f32 %v456_v20 }
 0x13c   :  { %1771 = vpow2.f32 %v446_v25 }
 0x13d   :  { %1773 = vpow2.f32 %v460_v29 }
 0x13e   :  { %1775 = vpow2.f32 %v450_v30 }
 0x13f   :  { %752 = vperm.xlu0 %1745, %v2314_v28   ;;  %732 = vperm.xlu1 %1746, %v2312_v27   ;;  %1777 = vpow2.f32 %v454_v39 }
 0x140   :  { %1779 = vpow2.f32 %v458_v60 }
 0x141   :  { %v2320_v36 = vpop.eup %1761  ;;  %1781 = vpow2.f32 %v462_v14 }
 0x142   :  { %v2322_v38 = vpop.eup %1763 }
 0x143   :  { %762 = vperm.xlu0 %1745, %v2320_v36   ;;  %742 = vperm.xlu1 %1746, %v2322_v38   ;;  %v2328_v42 = vpop.eup %1765 }
 0x144   :  { %v2330_v44 = vpop.eup %1767 }
 0x145   :  { %v2336_v45 = vpop.eup %1769 }
 0x146   :  { %v2338_v47 = vpop.eup %1771 }
 0x147   :  { %772 = vperm.xlu0 %1745, %v2328_v42   ;;  %747 = vperm.xlu1 %1746, %v2330_v44   ;;  %v2342_v23 = vpop.eup %1773 }
 0x148   :  { %v2344_v48 = vpop.eup %1775 }
 0x149   :  { %v2348_v41 = vpop.eup %1777 }
 0x14a   :  { %v2351_v51 = vpop.eup %1779 }
 0x14b   :  { %782 = vperm.xlu0 %1745, %v2336_v45   ;;  %757 = vperm.xlu1 %1746, %v2338_v47   ;;  %v2354_v52 = vpop.eup %1781 }
 0x14f   :  { %792 = vperm.xlu0 %1745, %v2342_v23   ;;  %767 = vperm.xlu1 %1746, %v2344_v48  }
 0x153   :  { %777 = vperm.xlu1 %1746, %v2348_v41  }
 0x157   :  { %787 = vperm.xlu1 %1746, %v2351_v51  }
 0x15b   :  { %797 = vperm.xlu1 %1746, %v2354_v52  }
 0x19a   :  { %v471_v53 = vpop.permute.xlu1 %470 }
 0x19b   :  { %v548_v56 = vsub.f32 %v2097_v63, %v471_v53 }
 0x19d   :  { %v564_v37 = vmul.f32 1.442695, %v548_v56 }
 0x19e   :  { %v511_v57 = vpop.permute.xlu1 %510  ;;  %v476_v59 = vpop.permute.xlu0 %475 }
 0x19f   :  { %1783 = vpow2.f32 %v564_v37  ;;  %v556_v61 = vsub.f32 %v2103_v15, %v511_v57  ;;  %v549_v0 = vsub.f32 %v2105_v16, %v476_v59 }
 0x1a1   :  { %v566_v1 = vmul.f32 1.442695, %v549_v0  ;;  %v580_v54 = vmul.f32 1.442695, %v556_v61 }
 0x1a2   :  { %v516_v58 = vpop.permute.xlu1 %515  ;;  %v481_v8 = vpop.permute.xlu0 %480 }
 0x1a3   :  { %v557_v10 = vsub.f32 %v2113_v31, %v516_v58  ;;  %v550_v13 = vsub.f32 %v2115_v33, %v481_v8  ;;  %1785 = vpow2.f32 %v566_v1 }
 0x1a4   :  { %1787 = vpow2.f32 %v580_v54 }
 0x1a5   :  { %v582_v12 = vmul.f32 1.442695, %v557_v10  ;;  %v568_v17 = vmul.f32 1.442695, %v550_v13 }
 0x1a6   :  { %v486_v63 = vpop.permute.xlu1 %485  ;;  %v521_v18 = vpop.permute.xlu0 %520 }
 0x1a7   :  { %1789 = vpow2.f32 %v582_v12  ;;  %v551_v20 = vsub.f32 %v2122_v49, %v486_v63  ;;  %v558_v15 = vsub.f32 %v2124_v50, %v521_v18 }
 0x1a8   :  { %1791 = vpow2.f32 %v568_v17 }
 0x1a9   :  { %v1784_v16 = vpop.eup %1783  ;;  %v570_v21 = vmul.f32 1.442695, %v551_v20  ;;  %v584_v25 = vmul.f32 1.442695, %v558_v15 }
 0x1aa   :  { %628 = vadd.xlane.f32.xlu0 %v1784_v16  ;;  %v526_v26 = vpop.permute.xlu1 %525  ;;  %v491_v31 = vpop.permute.xlu0 %490 }
 0x1ab   :  { %1793 = vpow2.f32 %v570_v21  ;;  %v559_v33 = vsub.f32 %v2131_v2, %v526_v26  ;;  %v552_v29 = vsub.f32 %v2133_v3, %v491_v31 }
 0x1ac   :  { %1795 = vpow2.f32 %v584_v25 }
 0x1ad   :  { %v586_v24 = vmul.f32 1.442695, %v559_v33  ;;  %v572_v30 = vmul.f32 1.442695, %v552_v29  ;;  %v1786_v39 = vpop.eup %1785 }
 0x1ae   :  { %v496_v40 = vpop.permute.xlu1 %495  ;;  %v531_v49 = vpop.permute.xlu0 %530  ;;  %630 = vadd.xlane.f32.xlu1 %v1786_v39  ;;  %v826_v5 = vpack.c.bf16 %v1786_v39, %v1784_v16  ;;  %v466_v39 = vmul.f32 1.442695, %v435_v22 }
 0x1af   :  { %1797 = vpow2.f32 %v586_v24  ;;  %v553_v50 = vsub.f32 %v2140_v62, %v496_v40  ;;  %v560_v60 = vsub.f32 %v2142_v19, %v531_v49  ;;  %v1788_v14 = vpop.eup %1787  ;;  %v464_v40 = vmul.f32 1.442695, %v434_v7 }
 0x1b0   :  { %1799 = vpow2.f32 %v572_v30  ;;  %1702 = vmatprep.mubr.bf16.mxu0 %v826_v5 }
 0x1b1   :  { %v1790_v53 = vpop.eup %1789  ;;  %v574_v56 = vmul.f32 1.442695, %v553_v50  ;;  %v588_v3 = vmul.f32 1.442695, %v560_v60 }
 0x1b2   :  { %v1792_v2 = vpop.eup %1791  ;;  %v536_v37 = vpop.permute.xlu1 %535  ;;  %v830_v59 = vpack.c.bf16 %v1790_v53, %v1788_v14 }
 0x1b3   :  { %v501_v57 = vpop.permute.xlu0 %500  ;;  %1801 = vpow2.f32 %v574_v56  ;;  %v561_v61 = vsub.f32 %v2148_v34, %v536_v37  ;;  %632 = vadd.xlane.f32.xlu0 %v1792_v2  ;;  %v596_v37 = vld [vmem:[#allocation3] sm:$0xff] }
 0x1b4   :  { %v554_v62 = vsub.f32 %v2150_v35, %v501_v57  ;;  %1710 = vmatprep.mubr.bf16.mxu1 %v830_v59  ;;  %1803 = vpow2.f32 %v588_v3  ;;  %v612_v57 = vmul.f32 %v2312_v27, %v596_v37 }
 0x1b5   :  { %v1794_v0 = vpop.eup %1793  ;;  %v590_v19 = vmul.f32 1.442695, %v561_v61 }
 0x1b6   :  { %v576_v1 = vmul.f32 1.442695, %v554_v62  ;;  %v506_v54 = vpop.permute.xlu1 %505  ;;  %v827_v8 = vpack.c.bf16 %v1794_v0, %v1792_v2  ;;  %v1796_v12 = vpop.eup %1795 }
 0x1b7   :  { %v541_v58 = vpop.permute.xlu0 %540  ;;  %1805 = vpow2.f32 %v590_v19  ;;  %v555_v10 = vsub.f32 %v2154_v43, %v506_v54  ;;  %634 = vadd.xlane.f32.xlu0 %v1794_v0  ;;  %v597_v0 = vld [vmem:[#allocation3 + $0x8] sm:$0xff]  ;;  %v598_v54 = vld [vmem:[#allocation3 + $0x10] sm:$0xff] }
 0x1b8   :  { %v562_v13 = vsub.f32 %v2156_v32, %v541_v58  ;;  %1807 = vpow2.f32 %v576_v1  ;;  %1703 = vmatmul.mubr.bf16.vlgmr.msra.gmra.mrb[0].mxu0 %v827_v8  ;;  %v613_v19 = vmul.f32 %v2302_v11, %v597_v0  ;;  %v614_v8 = vmul.f32 %v2322_v38, %v598_v54 }
 0x1b9   :  { %v1798_v34 = vpop.eup %1797  ;;  %v578_v17 = vmul.f32 1.442695, %v555_v10 }
 0x1ba   :  { %v1800_v35 = vpop.eup %1799  ;;  %v592_v63 = vmul.f32 1.442695, %v562_v13  ;;  %v546_v18 = vpop.permute.xlu1 %545  ;;  %v831_v20 = vpack.c.bf16 %v1798_v34, %v1796_v12  ;;  %v599_v13 = vld [vmem:[#allocation3 + $0x18] sm:$0xff] }
 0x1bb   :  { %1809 = vpow2.f32 %v578_v17  ;;  %v563_v15 = vsub.f32 %v2160_v46, %v546_v18  ;;  %636 = vadd.xlane.f32.xlu1 %v1800_v35  ;;  %v2389_v9 = vpop.permute.xlu0 %737  ;;  %v615_v27 = vmul.f32 %v2330_v44, %v599_v13  ;;  %v600_v17 = vld [vmem:[#allocation3 + $0x20] sm:$0xff] }
 0x1bc   :  { %1711 = vmatmul.mubr.bf16.vlgmr.msra.gmra.mrb[0].mxu1 %v831_v20  ;;  %1811 = vpow2.f32 %v592_v63  ;;  %v616_v11 = vmul.f32 %v2314_v28, %v600_v17  ;;  %v601_v63 = vld [vmem:[#allocation3 + $0x28] sm:$0xff] }
 0x1bd   :  { %v1802_v16 = vpop.eup %1801  ;;  %v594_v21 = vmul.f32 1.442695, %v563_v15  ;;  %v617_v15 = vmul.f32 %v2338_v47, %v601_v63  ;;  %v717_v63 = vld [vmem:[#allocation4 + $0x18] sm:$0xff] }
 0x1be   :  { %638 = vadd.xlane.f32.xlu0 %v1802_v16  ;;  %v828_v43 = vpack.c.bf16 %v1802_v16, %v1800_v35  ;;  %v1804_v32 = vpop.eup %1803  ;;  %v2385_v60 = vpop.permute.xlu1 %732 }
 0x1bf   :  { %1813 = vpow2.f32 %v594_v21  ;;  %v2393_v22 = vpop.permute.xlu0 %752  ;;  %v602_v21 = vld [vmem:[#allocation3 + $0x30] sm:$0xff] }
 0x1c0   :  { %1706 = vmatprep.mubr.bf16.mxu0 %v828_v43  ;;  %1815 = vpow2.f32 %v466_v39  ;;  %v618_v44 = vmul.f32 %v2320_v36, %v602_v21  ;;  %v603_v43 = vld [vmem:[#allocation3 + $0x38] sm:$0xff]  ;;  %v722_v21 = vld [vmem:[#allocation4 + $0x40] sm:$0xff] }
 0x1c1   :  { %v1806_v25 = vpop.eup %1805  ;;  %1817 = vpow2.f32 %v464_v40  ;;  %v619_v28 = vmul.f32 %v2344_v48, %v603_v43  ;;  %v607_v48 = vld [vmem:[#allocation3 + $0x58] sm:$0xff] }
 0x1c2   :  { %v1808_v26 = vpop.eup %1807  ;;  %v832_v31 = vpack.c.bf16 %v1806_v25, %v1804_v32  ;;  %v2387_v5 = vpop.permute.xlu1 %742 }
 0x1c3   :  { %640 = vadd.xlane.f32.xlu1 %v1808_v26  ;;  %v2397_v4 = vpop.permute.xlu0 %762 }
 0x1c4   :  { %1714 = vmatprep.mubr.bf16.mxu1 %v832_v31 }
 0x1c5   :  { %v1810_v33 = vpop.eup %1809 }
 0x1c6   :  { %642 = vadd.xlane.f32.xlu0 %v1810_v33  ;;  %v829_v29 = vpack.c.bf16 %v1810_v33, %v1808_v26  ;;  %v1812_v46 = vpop.eup %1811  ;;  %v2391_v6 = vpop.permute.xlu1 %747  ;;  %v605_v33 = vld [vmem:[#allocation3 + $0x48] sm:$0xff] }
 0x1c7   :  { %644 = vadd.xlane.f32.xlu1 %v1788_v14  ;;  %v2401_v14 = vpop.permute.xlu0 %772  ;;  %v621_v36 = vmul.f32 %v2348_v41, %v605_v33  ;;  %v609_v41 = vld [vmem:[#allocation3 + $0x68] sm:$0xff] }
 0x1c8   :  { %1707 = vmatmul.mubr.bf16.gmra.mrb[4].mxu0 %v829_v29 }
 0x1c9   :  { %v1814_v24 = vpop.eup %1813 }
 0x1ca   :  { %646 = vadd.xlane.f32.xlu0 %v1790_v53  ;;  %v833_v30 = vpack.c.bf16 %v1814_v24, %v1812_v46  ;;  %v2379_v49 = vpop.eup %1815  ;;  %v2395_v55 = vpop.permute.xlu1 %757 }
 0x1cb   :  { %648 = vadd.xlane.f32.xlu1 %v1796_v12  ;;  %v2382_v50 = vpop.eup %1817  ;;  %v2405_v56 = vpop.permute.xlu0 %782 }
 0x1cc   :  { %1715 = vmatmul.mubr.bf16.gmra.mrb[4].mxu1 %v833_v30 }
 0x1ce   :  { %650 = vadd.xlane.f32.xlu0 %v1798_v34  ;;  %v2399_v7 = vpop.permute.xlu1 %767 }
 0x1cf   :  { %652 = vadd.xlane.f32.xlu1 %v1804_v32  ;;  %v2409_v3 = vpop.permute.xlu0 %792 }
 0x1d2   :  { %654 = vadd.xlane.f32.xlu0 %v1806_v25  ;;  %v2403_v53 = vpop.permute.xlu1 %777  ;;  %v604_v25 = vld [vmem:[#allocation3 + $0x40] sm:$0xff] }
 0x1d3   :  { %656 = vadd.xlane.f32.xlu1 %v1812_v46  ;;  %v620_v31 = vmul.f32 %v2328_v42, %v604_v25 }
 0x1d6   :  { %658 = vadd.xlane.f32.xlu0 %v1814_v24  ;;  %v2407_v2 = vpop.permute.xlu1 %787  ;;  %v606_v24 = vld [vmem:[#allocation3 + $0x50] sm:$0xff] }
 0x1d7   :  { %v622_v39 = vmul.f32 %v2336_v45, %v606_v24 }
 0x1da   :  { %v2412_v61 = vpop.permute.xlu1 %797 }
 0x1e4   :  { %807 = vperm.xlu1 %1746, %v2379_v49  }
 0x1ec   :  { %802 = vperm.xlu0 %1745, %v2382_v50  }
 0x237   :  { %v629_v59 = vpop.xlane.xlu0 %628 }
 0x238   :  { %v660_v62 = vadd.f32 %v629_v59, %v612_v57  ;;  %v608_v59 = vld [vmem:[#allocation3 + $0x60] sm:$0xff] }
 0x239   :  { %v624_v0 = vmul.f32 %v2342_v23, %v608_v59  ;;  %v728_v59 = vld [vmem:[#allocation4 + $0x70] sm:$0xff] }
 0x23a   :  { %677 = vst.msk [vmem:[#allocation3] sm:$0xff] %vm35_vm0, %v660_v62  ;;  %v623_v62 = vmul.f32 %v2351_v51, %v607_v48  ;;  %v611_v51 = vld [vmem:[#allocation3 + $0x78] sm:$0xff] }
 0x23b   :  { %v631_v1 = vpop.xlane.xlu1 %630  ;;  %v627_v23 = vmul.f32 %v2379_v49, %v611_v51  ;;  %v721_v48 = vld [vmem:[#allocation4 + $0x38] sm:$0xff] }
 0x23c   :  { %v661_v58 = vadd.f32 %v631_v1, %v613_v19 }
 0x23e   :  { %678 = vst.msk [vmem:[#allocation3 + $0x8] sm:$0xff] %vm35_vm0, %v661_v58  ;;  %v610_v58 = vld [vmem:[#allocation3 + $0x70] sm:$0xff] }
 0x240   :  { %v633_v10 = vpop.xlane.xlu0 %632 }
 0x241   :  { %v662_v12 = vadd.f32 %v633_v10, %v614_v8  ;;  %v625_v8 = vmul.f32 %v2354_v52, %v609_v41  ;;  %v626_v10 = vmul.f32 %v2382_v50, %v610_v58  ;;  %v716_v52 = vld [vmem:[#allocation4 + $0x10] sm:$0xff]  ;;  %v729_v58 = vld [vmem:[#allocation4 + $0x78] sm:$0xff] }
 0x242   :  { %v812_v50 = vmul.f32 %v2387_v5, %v716_v52 }
 0x243   :  { %679 = vst.msk [vmem:[#allocation3 + $0x10] sm:$0xff] %vm35_vm0, %v662_v12 }
 0x244   :  { %v635_v34 = vpop.xlane.xlu0 %634 }
 0x245   :  { %v663_v35 = vadd.f32 %v635_v34, %v615_v27 }
 0x247   :  { %680 = vst.msk [vmem:[#allocation3 + $0x18] sm:$0xff] %vm35_vm0, %v663_v35 }
 0x248   :  { %v637_v18 = vpop.xlane.xlu1 %636 }
 0x249   :  { %v664_v20 = vadd.f32 %v637_v18, %v616_v11  ;;  %v714_v11 = vld [vmem:[#allocation4] sm:$0xff]  ;;  %v715_v18 = vld [vmem:[#allocation4 + $0x8] sm:$0xff] }
 0x24a   :  { %v811_v43 = vmul.f32 %v2389_v9, %v715_v18 }
 0x24b   :  { %681 = vst.msk [vmem:[#allocation3 + $0x20] sm:$0xff] %vm35_vm0, %v664_v20  ;;  %v639_v38 = vpop.xlane.xlu0 %638  ;;  %v810_v20 = vmul.f32 %v2385_v60, %v714_v11  ;;  %v818_v60 = vmul.f32 %v2401_v14, %v722_v21 }
 0x24c   :  { %v665_v16 = vadd.f32 %v639_v38, %v617_v15  ;;  %v724_v15 = vld [vmem:[#allocation4 + $0x50] sm:$0xff] }
 0x24e   :  { %682 = vst.msk [vmem:[#allocation3 + $0x28] sm:$0xff] %vm35_vm0, %v665_v16  ;;  %v813_v16 = vmul.f32 %v2391_v6, %v717_v63 }
 0x250   :  { %v641_v32 = vpop.xlane.xlu1 %640 }
 0x251   :  { %v666_v26 = vadd.f32 %v641_v32, %v618_v44  ;;  %v725_v32 = vld [vmem:[#allocation4 + $0x58] sm:$0xff] }
 0x253   :  { %683 = vst.msk [vmem:[#allocation3 + $0x30] sm:$0xff] %vm35_vm0, %v666_v26  ;;  %v643_v47 = vpop.xlane.xlu0 %642 }
 0x254   :  { %v645_v29 = vpop.xlane.xlu1 %644  ;;  %v667_v46 = vadd.f32 %v643_v47, %v619_v28  ;;  %v820_v28 = vmul.f32 %v2405_v56, %v724_v15 }
 0x255   :  { %v668_v30 = vadd.f32 %v645_v29, %v620_v31  ;;  %v723_v31 = vld [vmem:[#allocation4 + $0x48] sm:$0xff]  ;;  %v821_v29 = vmul.f32 %v2407_v2, %v725_v32  ;;  %v720_v2 = vld [vmem:[#allocation4 + $0x30] sm:$0xff] }
 0x256   :  { %684 = vst.msk [vmem:[#allocation3 + $0x38] sm:$0xff] %vm35_vm0, %v667_v46  ;;  %v819_v24 = vmul.f32 %v2403_v53, %v723_v31  ;;  %v816_v53 = vmul.f32 %v2397_v4, %v720_v2 }
 0x257   :  { %685 = vst.msk [vmem:[#allocation3 + $0x40] sm:$0xff] %vm35_vm0, %v668_v30  ;;  %v647_v40 = vpop.xlane.xlu0 %646 }
 0x258   :  { %v649_v37 = vpop.xlane.xlu1 %648  ;;  %v669_v57 = vadd.f32 %v647_v40, %v621_v36  ;;  %v718_v40 = vld [vmem:[#allocation4 + $0x20] sm:$0xff] }
 0x259   :  { %v670_v42 = vadd.f32 %v649_v37, %v622_v39  ;;  %v719_v37 = vld [vmem:[#allocation4 + $0x28] sm:$0xff] }
 0x25a   :  { %686 = vst.msk [vmem:[#allocation3 + $0x48] sm:$0xff] %vm35_vm0, %v669_v57  ;;  %v814_v57 = vmul.f32 %v2393_v22, %v718_v40 }
 0x25b   :  { %687 = vst.msk [vmem:[#allocation3 + $0x50] sm:$0xff] %vm35_vm0, %v670_v42  ;;  %v651_v19 = vpop.xlane.xlu0 %650 }
 0x25c   :  { %v653_v1 = vpop.xlane.xlu1 %652  ;;  %v671_v54 = vadd.f32 %v651_v19, %v623_v62  ;;  %v726_v19 = vld [vmem:[#allocation4 + $0x60] sm:$0xff] }
 0x25d   :  { %v672_v45 = vadd.f32 %v653_v1, %v624_v0  ;;  %v817_v0 = vmul.f32 %v2399_v7, %v721_v48 }
 0x25e   :  { %688 = vst.msk [vmem:[#allocation3 + $0x58] sm:$0xff] %vm35_vm0, %v671_v54  ;;  %v815_v54 = vmul.f32 %v2395_v55, %v719_v37 }
 0x25f   :  { %689 = vst.msk [vmem:[#allocation3 + $0x60] sm:$0xff] %vm35_vm0, %v672_v45  ;;  %v655_v13 = vpop.xlane.xlu0 %654 }
 0x260   :  { %v657_v12 = vpop.xlane.xlu1 %656  ;;  %v673_v27 = vadd.f32 %v655_v13, %v625_v8  ;;  %v727_v13 = vld [vmem:[#allocation4 + $0x68] sm:$0xff] }
 0x261   :  { %v674_v34 = vadd.f32 %v657_v12, %v626_v10  ;;  %v822_v12 = vmul.f32 %v2409_v3, %v726_v19 }
 0x262   :  { %690 = vst.msk [vmem:[#allocation3 + $0x68] sm:$0xff] %vm35_vm0, %v673_v27 }
 0x263   :  { %691 = vst.msk [vmem:[#allocation3 + $0x70] sm:$0xff] %vm35_vm0, %v674_v34  ;;  %v659_v17 = vpop.xlane.xlu0 %658 }
 0x264   :  { %v675_v35 = vadd.f32 %v659_v17, %v627_v23  ;;  %v808_v45 = vpop.permute.xlu1 %807  ;;  %v823_v17 = vmul.f32 %v2412_v61, %v727_v13 }
 0x265   :  { %v825_v34 = vmul.f32 %v808_v45, %v729_v58 }
 0x266   :  { %692 = vst.msk [vmem:[#allocation3 + $0x78] sm:$0xff] %vm35_vm0, %v675_v35 }
 0x26b   :  { %v803_v42 = vpop.permute.xlu0 %802 }
 0x26c   :  { %v824_v51 = vmul.f32 %v803_v42, %v728_v59 }
 0x28b   :  { %v1704_v38 = vpop.f32.mrb[0].mxu0 }
 0x28c   :  { %v981_v49 = vadd.f32 %v1704_v38, %v812_v50  ;;  %v916_v44 = vpop.f32.mrb[1].mxu0 }
 0x28d   :  { %v979_v25 = vadd.f32 %v916_v44, %v810_v20  ;;  %v1705_v26 = vpop.f32.mrb[2].mxu0 }
 0x28e   :  { %998 = vst.msk [vmem:[#allocation4 + $0x10] sm:$0xff] %vm68_vm1, %v981_v49  ;;  %v982_v5 = vadd.f32 %v1705_v26, %v813_v16  ;;  %v919_v47 = vpop.f32.mrb[3].mxu0 }
 0x28f   :  { %996 = vst.msk [vmem:[#allocation4] sm:$0xff] %vm68_vm1, %v979_v25  ;;  %v980_v6 = vadd.f32 %v919_v47, %v811_v43  ;;  %v1712_v33 = vpop.f32.mrb[0].mxu1 }
 0x290   :  { %999 = vst.msk [vmem:[#allocation4 + $0x18] sm:$0xff] %vm68_vm1, %v982_v5  ;;  %v989_v9 = vadd.f32 %v1712_v33, %v820_v28  ;;  %v948_v46 = vpop.f32.mrb[1].mxu1 }
 0x291   :  { %997 = vst.msk [vmem:[#allocation4 + $0x8] sm:$0xff] %vm68_vm1, %v980_v6  ;;  %v987_v56 = vadd.f32 %v948_v46, %v818_v60  ;;  %v1713_v30 = vpop.f32.mrb[2].mxu1 }
 0x292   :  { %1006 = vst.msk [vmem:[#allocation4 + $0x50] sm:$0xff] %vm68_vm1, %v989_v9  ;;  %v990_v36 = vadd.f32 %v1713_v30, %v821_v29  ;;  %v951_v14 = vpop.f32.mrb[3].mxu1 }
 0x293   :  { %1004 = vst.msk [vmem:[#allocation4 + $0x40] sm:$0xff] %vm68_vm1, %v987_v56  ;;  %v988_v39 = vadd.f32 %v951_v14, %v819_v24 }
 0x294   :  { %1007 = vst.msk [vmem:[#allocation4 + $0x58] sm:$0xff] %vm68_vm1, %v990_v36 }
 0x295   :  { %1005 = vst.msk [vmem:[#allocation4 + $0x48] sm:$0xff] %vm68_vm1, %v988_v39 }
 0x29b   :  { %v1708_v62 = vpop.f32.mrb[4].mxu0 }
 0x29c   :  { %v985_v41 = vadd.f32 %v1708_v62, %v816_v53  ;;  %v932_v1 = vpop.f32.mrb[5].mxu0 }
 0x29d   :  { %v983_v8 = vadd.f32 %v932_v1, %v814_v57  ;;  %v1709_v10 = vpop.f32.mrb[6].mxu0 }
 0x29e   :  { %1002 = vst.msk [vmem:[#allocation4 + $0x30] sm:$0xff] %vm68_vm1, %v985_v41  ;;  %v986_v4 = vadd.f32 %v1709_v10, %v817_v0  ;;  %v935_v22 = vpop.f32.mrb[7].mxu0 }
 0x29f   :  { %1000 = vst.msk [vmem:[#allocation4 + $0x20] sm:$0xff] %vm68_vm1, %v983_v8  ;;  %v984_v7 = vadd.f32 %v935_v22, %v815_v54  ;;  %v1716_v27 = vpop.f32.mrb[4].mxu1 }
 0x2a0   :  { %1003 = vst.msk [vmem:[#allocation4 + $0x38] sm:$0xff] %vm68_vm1, %v986_v4  ;;  %v993_v55 = vadd.f32 %v1716_v27, %v824_v51  ;;  %v964_v23 = vpop.f32.mrb[5].mxu1 }
 0x2a1   :  { %1001 = vst.msk [vmem:[#allocation4 + $0x28] sm:$0xff] %vm68_vm1, %v984_v7  ;;  %v991_v35 = vadd.f32 %v964_v23, %v822_v12  ;;  %v1717_v52 = vpop.f32.mrb[6].mxu1 }
 0x2a2   :  { %1010 = vst.msk [vmem:[#allocation4 + $0x70] sm:$0xff] %vm68_vm1, %v993_v55  ;;  %v994_v11 = vadd.f32 %v1717_v52, %v825_v34  ;;  %v967_v63 = vpop.f32.mrb[7].mxu1 }
 0x2a3   :  { %1008 = vst.msk [vmem:[#allocation4 + $0x60] sm:$0xff] %vm68_vm1, %v991_v35  ;;  %v992_v3 = vadd.f32 %v967_v63, %v823_v17 }
 0x2a4   :  { %1011 = vst.msk [vmem:[#allocation4 + $0x78] sm:$0xff] %vm68_vm1, %v994_v11 }
 0x2a5   :  { %1009 = vst.msk [vmem:[#allocation4 + $0x68] sm:$0xff] %vm68_vm1, %v992_v3 }
 0x2a6 PF:  { %v1033_v18 = vld [vmem:[#allocation3 + $0x10] sm:$0xff]  ;;  %v1031_v50 = vld [vmem:[#allocation3] sm:$0xff]  ;;  %v1920_v20 = vmov 0   ;;  %v1034_v61 = vld [vmem:[#allocation3 + $0x18] sm:$0xff] }
 0x2a7   :  { %1820 = vset.pattern.permute.xlu1 %v1920_v20  ;;  %1819 = vset.pattern.permute.xlu0 %v1920_v20  ;;  %1821 = vlog2.f32 %v1033_v18  ;;  %v1032_v15 = vld [vmem:[#allocation3 + $0x8] sm:$0xff]  ;;  %v1035_v16 = vld [vmem:[#allocation3 + $0x20] sm:$0xff]  ;;  %v1038_v21 = vld [vmem:[#allocation3 + $0x38] sm:$0xff] }
 0x2a8   :  { %1075 = vperm.xlu1 %1820, %v1033_v18   ;;  %1065 = vperm.xlu0 %1819, %v1031_v50   ;;  %1823 = vlog2.f32 %v1031_v50  ;;  %v1036_v38 = vld [vmem:[#allocation3 + $0x28] sm:$0xff]  ;;  %v1037_v49 = vld [vmem:[#allocation3 + $0x30] sm:$0xff]  ;;  %v1039_v43 = vld [vmem:[#allocation3 + $0x40] sm:$0xff] }
 0x2a9   :  { %1825 = vlog2.f32 %v1034_v61  ;;  %v1040_v44 = vld [vmem:[#allocation3 + $0x48] sm:$0xff]  ;;  %v2475_v32 = vld [vmem:[#allocation3 + $0x58] sm:$0xff]  ;;  %v1520_v26 = vld [vmem:[#allocation2 + $0x10] sm:$0xff] }
 0x2aa   :  { %1827 = vlog2.f32 %v1032_v15  ;;  %v2478_v28 = vld [vmem:[#allocation3 + $0x50] sm:$0xff]  ;;  %v1518_v47 = vld [vmem:[#allocation2] sm:$0xff]  ;;  %v2481_v60 = vld [vmem:[#allocation3 + $0x68] sm:$0xff] }
 0x2ab   :  { %1829 = vlog2.f32 %v1036_v38  ;;  %v1521_v29 = vld [vmem:[#allocation2 + $0x18] sm:$0xff]  ;;  %v2484_v9 = vld [vmem:[#allocation3 + $0x60] sm:$0xff]  ;;  %v1519_v30 = vld [vmem:[#allocation2 + $0x8] sm:$0xff] }
 0x2ac   :  { %1080 = vperm.xlu1 %1820, %v1034_v61   ;;  %1070 = vperm.xlu0 %1819, %v1032_v15   ;;  %1831 = vlog2.f32 %v1035_v16  ;;  %v2487_v36 = vld [vmem:[#allocation3 + $0x78] sm:$0xff]  ;;  %v1523_v40 = vld [vmem:[#allocation2 + $0x28] sm:$0xff]  ;;  %v2490_v48 = vld [vmem:[#allocation3 + $0x70] sm:$0xff] }
 0x2ad   :  { %1833 = vlog2.f32 %v1038_v21  ;;  %v1522_v59 = vld [vmem:[#allocation2 + $0x20] sm:$0xff]  ;;  %v1525_v19 = vld [vmem:[#allocation2 + $0x38] sm:$0xff]  ;;  %v1524_v58 = vld [vmem:[#allocation2 + $0x30] sm:$0xff] }
 0x2ae   :  { %1835 = vlog2.f32 %v1037_v49  ;;  %v1527_v13 = vld [vmem:[#allocation2 + $0x48] sm:$0xff]  ;;  %v1526_v12 = vld [vmem:[#allocation2 + $0x40] sm:$0xff]  ;;  %v1529_v55 = vld [vmem:[#allocation2 + $0x58] sm:$0xff] }
 0x2af   :  { %1837 = vlog2.f32 %v1040_v44  ;;  %v1528_v52 = vld [vmem:[#allocation2 + $0x50] sm:$0xff]  ;;  %v1531_v18 = vld [vmem:[#allocation2 + $0x68] sm:$0xff]  ;;  %v1530_v15 = vld [vmem:[#allocation2 + $0x60] sm:$0xff] }
 0x2b0   :  { %1090 = vperm.xlu1 %1820, %v1036_v38   ;;  %1085 = vperm.xlu0 %1819, %v1035_v16   ;;  %1839 = vlog2.f32 %v1039_v43 }
 0x2b1   :  { %v1822_v25 = vpop.eup %1821  ;;  %1841 = vlog2.f32 %v2475_v32 }
 0x2b2   :  { %v1824_v31 = vpop.eup %1823  ;;  %v1539_v5 = vmul.f32 0.6931472, %v1822_v25  ;;  %1843 = vlog2.f32 %v2478_v28  ;;  %v1532_v25 = vld [vmem:[#allocation2 + $0x70] sm:$0xff] }
 0x2b3   :  { %v1826_v6 = vpop.eup %1825  ;;  %v1535_v33 = vmul.f32 0.6931472, %v1824_v31  ;;  %1845 = vlog2.f32 %v2481_v60 }
 0x2b4   :  { %v1828_v46 = vpop.eup %1827  ;;  %v1568_v24 = vadd.f32 %v1539_v5, %v1520_v26  ;;  %v1541_v56 = vmul.f32 0.6931472, %v1826_v6  ;;  %1100 = vperm.xlu1 %1820, %v1038_v21   ;;  %1095 = vperm.xlu0 %1819, %v1037_v49   ;;  %1847 = vlog2.f32 %v2484_v9  ;;  %v1533_v49 = vld [vmem:[#allocation2 + $0x78] sm:$0xff] }
 0x2b5   :  { %v1830_v14 = vpop.eup %1829  ;;  %v1566_v39 = vadd.f32 %v1535_v33, %v1518_v47  ;;  %v1537_v2 = vmul.f32 0.6931472, %v1828_v46  ;;  %1849 = vlog2.f32 %v2487_v36  ;;  %v1049_v46 = vld [vmem:[#allocation4 + $0x10] sm:$0xff] }
 0x2b6   :  { %v1832_v53 = vpop.eup %1831  ;;  %1585 = vst.msk [vmem:[%s2875_s9 + $0x10] sm:$0xff] %vm35_vm0, %v1568_v24  ;;  %v1569_v37 = vadd.f32 %v1541_v56, %v1521_v29  ;;  %v1545_v57 = vmul.f32 0.6931472, %v1830_v14  ;;  %1851 = vlog2.f32 %v2490_v48  ;;  %v1047_v24 = vld [vmem:[#allocation4] sm:$0xff] }
 0x2b7   :  { %v1834_v42 = vpop.eup %1833  ;;  %1583 = vst.msk [vmem:[%s2875_s9] sm:$0xff] %vm35_vm0, %v1566_v39  ;;  %v1567_v62 = vadd.f32 %v1537_v2, %v1519_v30  ;;  %v1543_v0 = vmul.f32 0.6931472, %v1832_v53  ;;  %v2566_v39 = vld [vmem:[%s2871_s5] ss:$0 sm:$0xff]  ;;  %v1050_v53 = vld [vmem:[#allocation4 + $0x18] sm:$0xff] }
 0x2b8   :  { %v1836_v41 = vpop.eup %1835  ;;  %1586 = vst.msk [vmem:[%s2875_s9 + $0x18] sm:$0xff] %vm35_vm0, %v1569_v37  ;;  %v1571_v1 = vadd.f32 %v1545_v57, %v1523_v40  ;;  %v1549_v54 = vmul.f32 0.6931472, %v1834_v42  ;;  %1110 = vperm.xlu1 %1820, %v1040_v44   ;;  %1105 = vperm.xlu0 %1819, %v1039_v43  }
 0x2b9   :  { %v1838_v45 = vpop.eup %1837  ;;  %1584 = vst.msk [vmem:[%s2875_s9 + $0x8] sm:$0xff] %vm35_vm0, %v1567_v62  ;;  %v1570_v8 = vadd.f32 %v1543_v0, %v1522_v59  ;;  %v1547_v10 = vmul.f32 0.6931472, %v1836_v41 }
 0x2ba   :  { %v1840_v51 = vpop.eup %1839  ;;  %1588 = vst.msk [vmem:[%s2875_s9 + $0x28] sm:$0xff] %vm35_vm0, %v1571_v1  ;;  %v1573_v4 = vadd.f32 %v1549_v54, %v1525_v19  ;;  %v1553_v22 = vmul.f32 0.6931472, %v1838_v45  ;;  %v1052_v54 = vld [vmem:[#allocation4 + $0x28] sm:$0xff] }
 0x2bb   :  { %v1842_v7 = vpop.eup %1841  ;;  %1587 = vst.msk [vmem:[%s2875_s9 + $0x20] sm:$0xff] %vm35_vm0, %v1570_v8  ;;  %v1572_v27 = vadd.f32 %v1547_v10, %v1524_v58  ;;  %v1551_v34 = vmul.f32 0.6931472, %v1840_v51  ;;  %v1051_v58 = vld [vmem:[#allocation4 + $0x20] sm:$0xff] }
 0x2bc   :  { %v1844_v23 = vpop.eup %1843  ;;  %1590 = vst.msk [vmem:[%s2875_s9 + $0x38] sm:$0xff] %vm35_vm0, %v1573_v4  ;;  %v1575_v17 = vadd.f32 %v1553_v22, %v1527_v13  ;;  %v1557_v35 = vmul.f32 0.6931472, %v1842_v7  ;;  %1120 = vperm.xlu1 %1820, %v2475_v32   ;;  %1115 = vperm.xlu0 %1819, %v2478_v28  }
 0x2bd   :  { %v1846_v11 = vpop.eup %1845  ;;  %1589 = vst.msk [vmem:[%s2875_s9 + $0x30] sm:$0xff] %vm35_vm0, %v1572_v27  ;;  %v1574_v63 = vadd.f32 %v1551_v34, %v1526_v12  ;;  %v1555_v3 = vmul.f32 0.6931472, %v1844_v23  ;;  %v1054_v34 = vld [vmem:[#allocation4 + $0x38] sm:$0xff] }
 0x2be   :  { %v1848_v50 = vpop.eup %1847  ;;  %1592 = vst.msk [vmem:[%s2875_s9 + $0x48] sm:$0xff] %vm35_vm0, %v1575_v17  ;;  %v1577_v20 = vadd.f32 %v1557_v35, %v1529_v55  ;;  %v1561_v61 = vmul.f32 0.6931472, %v1846_v11  ;;  %v1053_v55 = vld [vmem:[#allocation4 + $0x30] sm:$0xff] }
 0x2bf   :  { %v1850_v38 = vpop.eup %1849  ;;  %1591 = vst.msk [vmem:[%s2875_s9 + $0x40] sm:$0xff] %vm35_vm0, %v1574_v63  ;;  %v1576_v16 = vadd.f32 %v1555_v3, %v1528_v52  ;;  %v1559_v21 = vmul.f32 0.6931472, %v1848_v50 }
 0x2c0   :  { %v1852_v44 = vpop.eup %1851  ;;  %1594 = vst.msk [vmem:[%s2875_s9 + $0x58] sm:$0xff] %vm35_vm0, %v1577_v20  ;;  %v1579_v43 = vadd.f32 %v1561_v61, %v1531_v18  ;;  %1130 = vperm.xlu1 %1820, %v2481_v60   ;;  %1125 = vperm.xlu0 %1819, %v2484_v9   ;;  %v1565_v32 = vmul.f32 0.6931472, %v1850_v38  ;;  %v1055_v61 = vld [vmem:[#allocation4 + $0x40] sm:$0xff] }
 0x2c1   :  { %1593 = vst.msk [vmem:[%s2875_s9 + $0x50] sm:$0xff] %vm35_vm0, %v1576_v16  ;;  %v1578_v26 = vadd.f32 %v1559_v21, %v1530_v15  ;;  %v1563_v28 = vmul.f32 0.6931472, %v1852_v44  ;;  %v1056_v15 = vld [vmem:[#allocation4 + $0x48] sm:$0xff] }
 0x2c2   :  { %1596 = vst.msk [vmem:[%s2875_s9 + $0x68] sm:$0xff] %vm35_vm0, %v1579_v43  ;;  %v1581_v31 = vadd.f32 %v1565_v32, %v1533_v49 }
 0x2c3   :  { %1595 = vst.msk [vmem:[%s2875_s9 + $0x60] sm:$0xff] %vm35_vm0, %v1578_v26  ;;  %v1580_v5 = vadd.f32 %v1563_v28, %v1532_v25 }
 0x2c4   :  { %1598 = vst.msk [vmem:[%s2875_s9 + $0x78] sm:$0xff] %vm35_vm0, %v1581_v31  ;;  %1140 = vperm.xlu1 %1820, %v2487_v36   ;;  %1135 = vperm.xlu0 %1819, %v2490_v48   ;;  %v1048_v48 = vld [vmem:[#allocation4 + $0x8] sm:$0xff]  ;;  %v1058_v31 = vld [vmem:[#allocation4 + $0x58] sm:$0xff] }
 0x2c5   :  { %1597 = vst.msk [vmem:[%s2875_s9 + $0x70] sm:$0xff] %vm35_vm0, %v1580_v5  ;;  %v1057_v5 = vld [vmem:[#allocation4 + $0x50] sm:$0xff] }
 0x327   :  { %v1076_v47 = vpop.permute.xlu1 %1075  ;;  %v1066_v60 = vpop.permute.xlu0 %1065 }
 0x328   :  { %1853 = vrcp.f32 %v1076_v47 }
 0x329   :  { %1855 = vrcp.f32 %v1066_v60 }
 0x32b   :  { %v1081_v6 = vpop.permute.xlu1 %1080  ;;  %v1071_v33 = vpop.permute.xlu0 %1070 }
 0x32c   :  { %1857 = vrcp.f32 %v1081_v6 }
 0x32d   :  { %1859 = vrcp.f32 %v1071_v33 }
 0x32f   :  { %v1091_v29 = vpop.permute.xlu1 %1090  ;;  %v1086_v9 = vpop.permute.xlu0 %1085 }
 0x330   :  { %1861 = vrcp.f32 %v1091_v29 }
 0x331   :  { %1863 = vrcp.f32 %v1086_v9 }
 0x332   :  { %v1854_v56 = vpop.eup %1853 }
 0x333   :  { %v1856_v30 = vpop.eup %1855  ;;  %v1101_v36 = vpop.permute.xlu1 %1100  ;;  %v1148_v2 = vmul.f32 %v1854_v56, %v1049_v46  ;;  %v1059_v56 = vld [vmem:[#allocation4 + $0x60] sm:$0xff] }
 0x334   :  { %v1096_v14 = vpop.permute.xlu0 %1095  ;;  %1865 = vrcp.f32 %v1101_v36  ;;  %v1144_v40 = vmul.f32 %v1856_v30, %v1047_v24  ;;  %v1060_v30 = vld [vmem:[#allocation4 + $0x68] sm:$0xff] }
 0x335   :  { %1867 = vrcp.f32 %v1096_v14  ;;  %v2572_v59 = vadd.f32 %v2566_v39, %v1148_v2 }
 0x336   :  { %v1858_v37 = vpop.eup %1857  ;;  %v2569_v57 = vadd.f32 %v2566_v39, %v1144_v40 }
 0x337   :  { %v1860_v42 = vpop.eup %1859  ;;  %v1111_v62 = vpop.permute.xlu1 %1110  ;;  %v1150_v1 = vmul.f32 %v1858_v37, %v1050_v53  ;;  %v1205_v8 = vsel %vm68_vm1, %v2572_v59, 0.0 }
 0x338   :  { %v1106_v0 = vpop.permute.xlu0 %1105  ;;  %1869 = vrcp.f32 %v1111_v62  ;;  %v1199_v19 = vsel %vm68_vm1, %v2569_v57, 0.0  ;;  %v1146_v41 = vmul.f32 %v1860_v42, %v1048_v48  ;;  %v1061_v62 = vld [vmem:[#allocation4 + $0x70] sm:$0xff] }
 0x339   :  { %1871 = vrcp.f32 %v1106_v0  ;;  %1200 = vadd.xlane.f32.xlu0 %v1199_v19  ;;  %v2584_v7 = vadd.f32 %v2566_v39, %v1150_v1  ;;  %v1062_v0 = vld [vmem:[#allocation4 + $0x78] sm:$0xff] }
 0x33a   :  { %v1862_v45 = vpop.eup %1861  ;;  %v2579_v10 = vadd.f32 %v2566_v39, %v1146_v41 }
 0x33b   :  { %v1864_v13 = vpop.eup %1863  ;;  %v1121_v51 = vpop.permute.xlu1 %1120  ;;  %v1154_v22 = vmul.f32 %v1862_v45, %v1052_v54  ;;  %v1208_v18 = vsel %vm68_vm1, %v2584_v7, 0.0 }
 0x33c   :  { %v1116_v4 = vpop.permute.xlu0 %1115  ;;  %1873 = vrcp.f32 %v1121_v51  ;;  %v1202_v12 = vsel %vm68_vm1, %v2579_v10, 0.0  ;;  %v1152_v27 = vmul.f32 %v1864_v13, %v1051_v58 }
 0x33d   :  { %1875 = vrcp.f32 %v1116_v4  ;;  %1206 = vadd.xlane.f32.xlu0 %v1205_v8  ;;  %1203 = vadd.xlane.f32.xlu1 %v1202_v12  ;;  %v2590_v63 = vadd.f32 %v2566_v39, %v1154_v22 }
 0x33e   :  { %v1866_v23 = vpop.eup %1865  ;;  %v2587_v17 = vadd.f32 %v2566_v39, %v1152_v27 }
 0x33f   :  { %v1868_v35 = vpop.eup %1867  ;;  %v1131_v52 = vpop.permute.xlu1 %1130  ;;  %v1158_v3 = vmul.f32 %v1866_v23, %v1054_v34  ;;  %v1214_v43 = vsel %vm68_vm1, %v2590_v63, 0.0 }
 0x340   :  { %v1126_v11 = vpop.permute.xlu0 %1125  ;;  %1877 = vrcp.f32 %v1131_v52  ;;  %v1211_v50 = vsel %vm68_vm1, %v2587_v17, 0.0  ;;  %v1156_v20 = vmul.f32 %v1868_v35, %v1053_v55 }
 0x341   :  { %1879 = vrcp.f32 %v1126_v11  ;;  %1209 = vadd.xlane.f32.xlu0 %v1208_v18  ;;  %1212 = vadd.xlane.f32.xlu1 %v1211_v50  ;;  %v2602_v32 = vadd.f32 %v2566_v39, %v1158_v3 }
 0x342   :  { %v1870_v38 = vpop.eup %1869  ;;  %v2597_v16 = vadd.f32 %v2566_v39, %v1156_v20 }
 0x343   :  { %v1872_v21 = vpop.eup %1871  ;;  %v1141_v49 = vpop.permute.xlu1 %1140  ;;  %v1162_v28 = vmul.f32 %v1870_v38, %v1056_v15  ;;  %v1220_v29 = vsel %vm68_vm1, %v2602_v32, 0.0 }
 0x344   :  { %v1136_v44 = vpop.permute.xlu0 %1135  ;;  %1881 = vrcp.f32 %v1141_v49  ;;  %v1217_v25 = vsel %vm68_vm1, %v2597_v16, 0.0  ;;  %v1160_v26 = vmul.f32 %v1872_v21, %v1055_v61 }
 0x345   :  { %1883 = vrcp.f32 %v1136_v44  ;;  %1215 = vadd.xlane.f32.xlu0 %v1214_v43  ;;  %1218 = vadd.xlane.f32.xlu1 %v1217_v25  ;;  %v2614_v46 = vadd.f32 %v2566_v39, %v1162_v28 }
 0x346   :  { %v1874_v47 = vpop.eup %1873  ;;  %v2607_v60 = vadd.f32 %v2566_v39, %v1160_v26 }
 0x347   :  { %v1876_v6 = vpop.eup %1875  ;;  %v1166_v33 = vmul.f32 %v1874_v47, %v1058_v31  ;;  %v1226_v48 = vsel %vm68_vm1, %v2614_v46, 0.0 }
 0x348   :  { %v1223_v9 = vsel %vm68_vm1, %v2607_v60, 0.0  ;;  %v1164_v24 = vmul.f32 %v1876_v6, %v1057_v5 }
 0x349   :  { %1221 = vadd.xlane.f32.xlu0 %v1220_v29  ;;  %1224 = vadd.xlane.f32.xlu1 %v1223_v9  ;;  %v2620_v40 = vadd.f32 %v2566_v39, %v1166_v33 }
 0x34a   :  { %v1878_v36 = vpop.eup %1877  ;;  %v2617_v14 = vadd.f32 %v2566_v39, %v1164_v24 }
 0x34b   :  { %v1880_v2 = vpop.eup %1879  ;;  %v1170_v42 = vmul.f32 %v1878_v36, %v1060_v30  ;;  %v1232_v54 = vsel %vm68_vm1, %v2620_v40, 0.0 }
 0x34c   :  { %v1229_v53 = vsel %vm68_vm1, %v2617_v14, 0.0  ;;  %v1168_v37 = vmul.f32 %v1880_v2, %v1059_v56 }
 0x34d   :  { %1227 = vadd.xlane.f32.xlu0 %v1226_v48  ;;  %1230 = vadd.xlane.f32.xlu1 %v1229_v53  ;;  %v2634_v45 = vadd.f32 %v2566_v39, %v1170_v42 }
 0x34e   :  { %v1882_v19 = vpop.eup %1881  ;;  %v2627_v41 = vadd.f32 %v2566_v39, %v1168_v37 }
 0x34f   :  { %v1884_v1 = vpop.eup %1883  ;;  %v1174_v13 = vmul.f32 %v1882_v19, %v1062_v0  ;;  %v1238_v4 = vsel %vm68_vm1, %v2634_v45, 0.0 }
 0x350   :  { %v1235_v58 = vsel %vm68_vm1, %v2627_v41, 0.0  ;;  %v1172_v8 = vmul.f32 %v1884_v1, %v1061_v62 }
 0x351   :  { %1233 = vadd.xlane.f32.xlu0 %v1232_v54  ;;  %1236 = vadd.xlane.f32.xlu1 %v1235_v58  ;;  %v2644_v12 = vadd.f32 %v2566_v39, %v1174_v13 }
 0x352   :  { %v2637_v51 = vadd.f32 %v2566_v39, %v1172_v8 }
 0x353   :  { %v1244_v27 = vsel %vm68_vm1, %v2644_v12, 0.0 }
 0x354   :  { %v1241_v22 = vsel %vm68_vm1, %v2637_v51, 0.0 }
 0x355   :  { %1239 = vadd.xlane.f32.xlu0 %v1238_v4  ;;  %1242 = vadd.xlane.f32.xlu1 %v1241_v22 }
 0x359   :  { %1245 = vadd.xlane.f32.xlu0 %v1244_v27 }
 0x3c6   :  { %v1201_v34 = vpop.xlane.xlu0 %1200 }
 0x3c7   :  { %v1248_v55 = vmul.f32 0.03125, %v1201_v34 }
 0x3c9   :  { %v2649_v23 = vsub.f32 %v2569_v57, %v1248_v55 }
 0x3ca   :  { %v1204_v35 = vpop.xlane.xlu1 %1203  ;;  %v1207_v52 = vpop.xlane.xlu0 %1206 }
 0x3cb   :  { %v1249_v11 = vmul.f32 0.03125, %v1204_v35  ;;  %v1250_v3 = vmul.f32 0.03125, %v1207_v52  ;;  %v1280_v18 = vmul.f32 %v2649_v23, %v2649_v23 }
 0x3cd   :  { %v2654_v39 = vsub.f32 %v2579_v10, %v1249_v11  ;;  %v2657_v50 = vsub.f32 %v2572_v59, %v1250_v3  ;;  %v1296_v20 = vsel %vm68_vm1, %v1280_v18, 0.0 }
 0x3ce   :  { %v1213_v61 = vpop.xlane.xlu1 %1212  ;;  %1297 = vadd.xlane.f32.xlu1 %v1296_v20  ;;  %v1210_v15 = vpop.xlane.xlu0 %1209 }
 0x3cf   :  { %v1252_v57 = vmul.f32 0.03125, %v1213_v61  ;;  %v1251_v38 = vmul.f32 0.03125, %v1210_v15  ;;  %v1281_v21 = vmul.f32 %v2654_v39, %v2654_v39  ;;  %v1282_v49 = vmul.f32 %v2657_v50, %v2657_v50 }
 0x3d1   :  { %v2665_v44 = vsub.f32 %v2587_v17, %v1252_v57  ;;  %v2668_v10 = vsub.f32 %v2584_v7, %v1251_v38  ;;  %v1299_v59 = vsel %vm68_vm1, %v1281_v21, 0.0  ;;  %v1302_v43 = vsel %vm68_vm1, %v1282_v49, 0.0 }
 0x3d2   :  { %1300 = vadd.xlane.f32.xlu0 %v1299_v59  ;;  %v1219_v25 = vpop.xlane.xlu1 %1218  ;;  %1303 = vadd.xlane.f32.xlu1 %v1302_v43  ;;  %v1216_v26 = vpop.xlane.xlu0 %1215 }
 0x3d3   :  { %v1254_v28 = vmul.f32 0.03125, %v1219_v25  ;;  %v1253_v31 = vmul.f32 0.03125, %v1216_v26  ;;  %v1284_v5 = vmul.f32 %v2665_v44, %v2665_v44  ;;  %v1283_v17 = vmul.f32 %v2668_v10, %v2668_v10 }
 0x3d5   :  { %v2677_v47 = vsub.f32 %v2597_v16, %v1254_v28  ;;  %v2680_v7 = vsub.f32 %v2590_v63, %v1253_v31  ;;  %v1308_v6 = vsel %vm68_vm1, %v1284_v5, 0.0  ;;  %v1305_v33 = vsel %vm68_vm1, %v1283_v17, 0.0 }
 0x3d6   :  { %v1225_v29 = vpop.xlane.xlu1 %1224  ;;  %1309 = vadd.xlane.f32.xlu1 %v1308_v6  ;;  %1306 = vadd.xlane.f32.xlu0 %v1305_v33  ;;  %v1222_v9 = vpop.xlane.xlu0 %1221 }
 0x3d7   :  { %v1256_v24 = vmul.f32 0.03125, %v1225_v29  ;;  %v1255_v56 = vmul.f32 0.03125, %v1222_v9  ;;  %v1286_v30 = vmul.f32 %v2677_v47, %v2677_v47  ;;  %v1285_v16 = vmul.f32 %v2680_v7, %v2680_v7 }
 0x3d9   :  { %v2689_v36 = vsub.f32 %v2607_v60, %v1256_v24  ;;  %v2692_v63 = vsub.f32 %v2602_v32, %v1255_v56  ;;  %v1314_v2 = vsel %vm68_vm1, %v1286_v30, 0.0  ;;  %v1311_v48 = vsel %vm68_vm1, %v1285_v16, 0.0 }
 0x3da   :  { %v1231_v53 = vpop.xlane.xlu1 %1230  ;;  %1315 = vadd.xlane.f32.xlu1 %v1314_v2  ;;  %1312 = vadd.xlane.f32.xlu0 %v1311_v48  ;;  %v1228_v37 = vpop.xlane.xlu0 %1227 }
 0x3db   :  { %v1258_v42 = vmul.f32 0.03125, %v1231_v53  ;;  %v1257_v62 = vmul.f32 0.03125, %v1228_v37  ;;  %v1288_v0 = vmul.f32 %v2689_v36, %v2689_v36  ;;  %v1287_v60 = vmul.f32 %v2692_v63, %v2692_v63 }
 0x3dd   :  { %v2701_v19 = vsub.f32 %v2617_v14, %v1258_v42  ;;  %v2704_v32 = vsub.f32 %v2614_v46, %v1257_v62  ;;  %v1320_v1 = vsel %vm68_vm1, %v1288_v0, 0.0  ;;  %v1317_v54 = vsel %vm68_vm1, %v1287_v60, 0.0  ;;  %v2747_v0 = vld [vmem:[%s2872_s6] ss:$0 sm:$0xff] }
 0x3de   :  { %v1237_v58 = vpop.xlane.xlu1 %1236  ;;  %1321 = vadd.xlane.f32.xlu1 %v1320_v1  ;;  %1318 = vadd.xlane.f32.xlu0 %v1317_v54  ;;  %v1234_v8 = vpop.xlane.xlu0 %1233 }
 0x3df   :  { %v1260_v13 = vmul.f32 0.03125, %v1237_v58  ;;  %v1259_v4 = vmul.f32 0.03125, %v1234_v8  ;;  %v1290_v22 = vmul.f32 %v2701_v19, %v2701_v19  ;;  %v1289_v14 = vmul.f32 %v2704_v32, %v2704_v32 }
 0x3e1   :  { %v2713_v27 = vsub.f32 %v2627_v41, %v1260_v13  ;;  %v2716_v46 = vsub.f32 %v2620_v40, %v1259_v4  ;;  %v1326_v34 = vsel %vm68_vm1, %v1290_v22, 0.0  ;;  %v1323_v55 = vsel %vm68_vm1, %v1289_v14, 0.0  ;;  %v2753_v13 = vld [vmem:[%s2873_s7] ss:$0 sm:$0xff] }
 0x3e2   :  { %v1243_v35 = vpop.xlane.xlu1 %1242  ;;  %1327 = vadd.xlane.f32.xlu1 %v1326_v34  ;;  %1324 = vadd.xlane.f32.xlu0 %v1323_v55  ;;  %v1240_v52 = vpop.xlane.xlu0 %1239 }
 0x3e3   :  { %v1262_v11 = vmul.f32 0.03125, %v1243_v35  ;;  %v1261_v3 = vmul.f32 0.03125, %v1240_v52  ;;  %v1292_v18 = vmul.f32 %v2713_v27, %v2713_v27  ;;  %v1291_v41 = vmul.f32 %v2716_v46, %v2716_v46 }
 0x3e5   :  { %v2725_v20 = vsub.f32 %v2637_v51, %v1262_v11  ;;  %v2728_v40 = vsub.f32 %v2634_v45, %v1261_v3  ;;  %v1332_v61 = vsel %vm68_vm1, %v1292_v18, 0.0  ;;  %v1329_v15 = vsel %vm68_vm1, %v1291_v41, 0.0 }
 0x3e6   :  { %1333 = vadd.xlane.f32.xlu1 %v1332_v61  ;;  %1330 = vadd.xlane.f32.xlu0 %v1329_v15  ;;  %v1246_v57 = vpop.xlane.xlu0 %1245 }
 0x3e7   :  { %v1263_v38 = vmul.f32 0.03125, %v1246_v57  ;;  %v1294_v21 = vmul.f32 %v2725_v20, %v2725_v20  ;;  %v1293_v49 = vmul.f32 %v2728_v40, %v2728_v40 }
 0x3e9   :  { %v2737_v51 = vsub.f32 %v2644_v12, %v1263_v38  ;;  %v1338_v45 = vsel %vm68_vm1, %v1294_v21, 0.0  ;;  %v1335_v59 = vsel %vm68_vm1, %v1293_v49, 0.0 }
 0x3ea   :  { %1339 = vadd.xlane.f32.xlu1 %v1338_v45  ;;  %1336 = vadd.xlane.f32.xlu0 %v1335_v59 }
 0x3eb   :  { %v1295_v43 = vmul.f32 %v2737_v51, %v2737_v51 }
 0x3ed   :  { %v1341_v25 = vsel %vm68_vm1, %v1295_v43, 0.0 }
 0x3ee   :  { %1342 = vadd.xlane.f32.xlu0 %v1341_v25 }
 0x45b   :  { %v1298_v26 = vpop.xlane.xlu1 %1297 }
 0x45c   :  { %v1344_v28 = vmul.f32 0.03125, %v1298_v26 }
 0x45e   :  { %v1360_v31 = vadd.f32 1e-05, %v1344_v28 }
 0x45f   :  { %v1304_v5 = vpop.xlane.xlu1 %1303  ;;  %v1301_v17 = vpop.xlane.xlu0 %1300 }
 0x460   :  { %1885 = vrsqrt.f32 %v1360_v31  ;;  %v1346_v12 = vmul.f32 0.03125, %v1304_v5  ;;  %v1345_v6 = vmul.f32 0.03125, %v1301_v17 }
 0x462   :  { %v1362_v33 = vadd.f32 1e-05, %v1346_v12  ;;  %v1361_v29 = vadd.f32 1e-05, %v1345_v6 }
 0x463   :  { %v1310_v9 = vpop.xlane.xlu1 %1309  ;;  %v1307_v24 = vpop.xlane.xlu0 %1306 }
 0x464   :  { %1887 = vrsqrt.f32 %v1362_v33  ;;  %v1348_v56 = vmul.f32 0.03125, %v1310_v9  ;;  %v1347_v30 = vmul.f32 0.03125, %v1307_v24 }
 0x465   :  { %1889 = vrsqrt.f32 %v1361_v29 }
 0x466   :  { %v1364_v16 = vadd.f32 1e-05, %v1348_v56  ;;  %v1363_v2 = vadd.f32 1e-05, %v1347_v30 }
 0x467   :  { %v1316_v48 = vpop.xlane.xlu1 %1315  ;;  %v1313_v53 = vpop.xlane.xlu0 %1312 }
 0x468   :  { %1891 = vrsqrt.f32 %v1364_v16  ;;  %v1350_v37 = vmul.f32 0.03125, %v1316_v48  ;;  %v1349_v42 = vmul.f32 0.03125, %v1313_v53 }
 0x469   :  { %1893 = vrsqrt.f32 %v1363_v2 }
 0x46a   :  { %v1886_v62 = vpop.eup %1885  ;;  %v1366_v60 = vadd.f32 1e-05, %v1350_v37  ;;  %v1365_v1 = vadd.f32 1e-05, %v1349_v42 }
 0x46b   :  { %v1392_v54 = vmul.f32 %v1886_v62, %v2649_v23  ;;  %v1322_v58 = vpop.xlane.xlu1 %1321  ;;  %v1319_v8 = vpop.xlane.xlu0 %1318 }
 0x46c   :  { %1895 = vrsqrt.f32 %v1366_v60  ;;  %v1352_v4 = vmul.f32 0.03125, %v1322_v58  ;;  %v1351_v22 = vmul.f32 0.03125, %v1319_v8 }
 0x46d   :  { %v1415_v14 = vmul.f32 %v2747_v0, %v1392_v54  ;;  %1897 = vrsqrt.f32 %v1365_v1 }
 0x46e   :  { %v1888_v34 = vpop.eup %1887  ;;  %v1368_v55 = vadd.f32 1e-05, %v1352_v4  ;;  %v1367_v35 = vadd.f32 1e-05, %v1351_v22 }
 0x46f   :  { %v1890_v52 = vpop.eup %1889  ;;  %v1438_v11 = vadd.f32 %v2753_v13, %v1415_v14  ;;  %v1394_v23 = vmul.f32 %v1888_v34, %v2657_v50  ;;  %v1328_v3 = vpop.xlane.xlu1 %1327 }
 0x470   :  { %v1325_v18 = vpop.xlane.xlu0 %1324  ;;  %v1393_v41 = vmul.f32 %v1890_v52, %v2654_v39  ;;  %1899 = vrsqrt.f32 %v1368_v55  ;;  %v1354_v61 = vmul.f32 0.03125, %v1328_v3 }
 0x471   :  { %v1353_v15 = vmul.f32 0.03125, %v1325_v18  ;;  %vm1454_vm0 = vcmp.gt.f32.partialorder %v1438_v11, 0.0  ;;  %v1470_v57 = vmul.f32 0.1, %v1438_v11  ;;  %v1417_v38 = vmul.f32 %v2747_v0, %v1394_v23 }
 0x472   :  { %1901 = vrsqrt.f32 %v1367_v35  ;;  %v1892_v21 = vpop.eup %1891  ;;  %v1416_v49 = vmul.f32 %v2747_v0, %v1393_v41  ;;  %v1370_v45 = vadd.f32 1e-05, %v1354_v61 }
 0x473   :  { %v1369_v59 = vadd.f32 1e-05, %v1353_v15  ;;  %v1894_v43 = vpop.eup %1893  ;;  %v1486_v25 = vsel %vm1454_vm0, %v1438_v11, %v1470_v57  ;;  %v1440_v50 = vadd.f32 %v2753_v13, %v1417_v38  ;;  %v1396_v26 = vmul.f32 %v1892_v21, %v2665_v44  ;;  %v1334_v39 = vpop.xlane.xlu1 %1333 }
 0x474   :  { %v1331_v28 = vpop.xlane.xlu0 %1330  ;;  %1502 = vst.msk [vmem:[%s2874_s8] sm:$0xff] %vm68_vm1, %v1486_v25  ;;  %v1439_v31 = vadd.f32 %v2753_v13, %v1416_v49  ;;  %v1395_v5 = vmul.f32 %v1894_v43, %v2668_v10  ;;  %1903 = vrsqrt.f32 %v1370_v45  ;;  %v1356_v17 = vmul.f32 0.03125, %v1334_v39 }
 0x475   :  { %vm1456_vm4 = vcmp.gt.f32.partialorder %v1440_v50, 0.0  ;;  %v1472_v12 = vmul.f32 0.1, %v1440_v50  ;;  %v1419_v6 = vmul.f32 %v2747_v0, %v1396_v26  ;;  %1905 = vrsqrt.f32 %v1369_v59 }
 0x476   :  { %v1896_v33 = vpop.eup %1895  ;;  %vm1455_vm5 = vcmp.gt.f32.partialorder %v1439_v31, 0.0  ;;  %v1471_v44 = vmul.f32 0.1, %v1439_v31  ;;  %v1418_v29 = vmul.f32 %v2747_v0, %v1395_v5  ;;  %v1372_v9 = vadd.f32 1e-05, %v1356_v17 }
 0x477   :  { %v1898_v24 = vpop.eup %1897  ;;  %v1488_v56 = vsel %vm1456_vm4, %v1440_v50, %v1472_v12  ;;  %v1442_v30 = vadd.f32 %v2753_v13, %v1419_v6  ;;  %v1398_v16 = vmul.f32 %v1896_v33, %v2677_v47  ;;  %v1355_v10 = vmul.f32 0.03125, %v1331_v28  ;;  %v1340_v2 = vpop.xlane.xlu1 %1339 }
 0x478   :  { %v1337_v48 = vpop.xlane.xlu0 %1336  ;;  %1504 = vst.msk [vmem:[%s2874_s8 + $0x10] sm:$0xff] %vm68_vm1, %v1488_v56  ;;  %v1487_v53 = vsel %vm1455_vm5, %v1439_v31, %v1471_v44  ;;  %v1441_v37 = vadd.f32 %v2753_v13, %v1418_v29  ;;  %v1397_v42 = vmul.f32 %v1898_v24, %v2680_v7  ;;  %1907 = vrsqrt.f32 %v1372_v9 }
 0x479   :  { %1503 = vst.msk [vmem:[%s2874_s8 + $0x8] sm:$0xff] %vm68_vm1, %v1487_v53  ;;  %vm1458_vm6 = vcmp.gt.f32.partialorder %v1442_v30, 0.0  ;;  %v1474_v47 = vmul.f32 0.1, %v1442_v30  ;;  %v1421_v62 = vmul.f32 %v2747_v0, %v1398_v16  ;;  %v1371_v60 = vadd.f32 1e-05, %v1355_v10 }
 0x47a   :  { %v1900_v1 = vpop.eup %1899  ;;  %vm1457_vm7 = vcmp.gt.f32.partialorder %v1441_v37, 0.0  ;;  %v1473_v54 = vmul.f32 0.1, %v1441_v37  ;;  %v1420_v58 = vmul.f32 %v2747_v0, %v1397_v42  ;;  %v1358_v8 = vmul.f32 0.03125, %v1340_v2 }
 0x47b   :  { %v1490_v22 = vsel %vm1458_vm6, %v1442_v30, %v1474_v47  ;;  %v1444_v7 = vadd.f32 %v2753_v13, %v1421_v62  ;;  %v1400_v14 = vmul.f32 %v1900_v1, %v2689_v36  ;;  %1909 = vrsqrt.f32 %v1371_v60 }
 0x47c   :  { %v1902_v4 = vpop.eup %1901  ;;  %1506 = vst.msk [vmem:[%s2874_s8 + $0x20] sm:$0xff] %vm68_vm1, %v1490_v22  ;;  %v1489_v34 = vsel %vm1457_vm7, %v1441_v37, %v1473_v54  ;;  %v1443_v55 = vadd.f32 %v2753_v13, %v1420_v58  ;;  %v1374_v52 = vadd.f32 1e-05, %v1358_v8  ;;  %v1357_v23 = vmul.f32 0.03125, %v1337_v48  ;;  %v1343_v3 = vpop.xlane.xlu0 %1342 }
 0x47d   :  { %v1399_v35 = vmul.f32 %v1902_v4, %v2692_v63  ;;  %1505 = vst.msk [vmem:[%s2874_s8 + $0x18] sm:$0xff] %vm68_vm1, %v1489_v34  ;;  %vm1460_vm8 = vcmp.gt.f32.partialorder %v1444_v7, 0.0  ;;  %v1476_v11 = vmul.f32 0.1, %v1444_v7  ;;  %v1423_v36 = vmul.f32 %v2747_v0, %v1400_v14 }
 0x47e   :  { %v1904_v18 = vpop.eup %1903  ;;  %vm1459_vm9 = vcmp.gt.f32.partialorder %v1443_v55, 0.0  ;;  %v1475_v41 = vmul.f32 0.1, %v1443_v55  ;;  %1911 = vrsqrt.f32 %v1374_v52  ;;  %v1373_v21 = vadd.f32 1e-05, %v1357_v23 }
 0x47f   :  { %v1422_v61 = vmul.f32 %v2747_v0, %v1399_v35  ;;  %v1906_v15 = vpop.eup %1905  ;;  %v1492_v63 = vsel %vm1460_vm8, %v1444_v7, %v1476_v11  ;;  %v1446_v57 = vadd.f32 %v2753_v13, %v1423_v36  ;;  %v1402_v38 = vmul.f32 %v1904_v18, %v2701_v19 }
 0x480   :  { %1508 = vst.msk [vmem:[%s2874_s8 + $0x30] sm:$0xff] %vm68_vm1, %v1492_v63  ;;  %v1491_v49 = vsel %vm1459_vm9, %v1443_v55, %v1475_v41  ;;  %v1401_v59 = vmul.f32 %v1906_v15, %v2704_v32  ;;  %v1359_v43 = vmul.f32 0.03125, %v1343_v3  ;;  %1913 = vrsqrt.f32 %v1373_v21 }
 0x481   :  { %v1445_v45 = vadd.f32 %v2753_v13, %v1422_v61  ;;  %1507 = vst.msk [vmem:[%s2874_s8 + $0x28] sm:$0xff] %vm68_vm1, %v1491_v49  ;;  %vm1462_vm10 = vcmp.gt.f32.partialorder %v1446_v57, 0.0  ;;  %v1478_v25 = vmul.f32 0.1, %v1446_v57  ;;  %v1425_v19 = vmul.f32 %v2747_v0, %v1402_v38 }
 0x482   :  { %v1908_v50 = vpop.eup %1907  ;;  %v1424_v39 = vmul.f32 %v2747_v0, %v1401_v59  ;;  %v1375_v28 = vadd.f32 1e-05, %v1359_v43 }
 0x483   :  { %vm1461_vm11 = vcmp.gt.f32.partialorder %v1445_v45, 0.0  ;;  %v1477_v26 = vmul.f32 0.1, %v1445_v45  ;;  %v1494_v31 = vsel %vm1462_vm10, %v1446_v57, %v1478_v25  ;;  %v1448_v32 = vadd.f32 %v2753_v13, %v1425_v19 }
 0x484   :  { %v1404_v5 = vmul.f32 %v1908_v50, %v2713_v27  ;;  %1510 = vst.msk [vmem:[%s2874_s8 + $0x40] sm:$0xff] %vm68_vm1, %v1494_v31  ;;  %v1447_v12 = vadd.f32 %v2753_v13, %v1424_v39  ;;  %1915 = vrsqrt.f32 %v1375_v28 }
 0x485   :  { %v1493_v17 = vsel %vm1461_vm11, %v1445_v45, %v1477_v26  ;;  %v1910_v6 = vpop.eup %1909  ;;  %vm1464_vm12 = vcmp.gt.f32.partialorder %v1448_v32, 0.0  ;;  %v1480_v33 = vmul.f32 0.1, %v1448_v32 }
 0x486   :  { %1509 = vst.msk [vmem:[%s2874_s8 + $0x38] sm:$0xff] %vm68_vm1, %v1493_v17  ;;  %v1427_v44 = vmul.f32 %v2747_v0, %v1404_v5  ;;  %vm1463_vm13 = vcmp.gt.f32.partialorder %v1447_v12, 0.0  ;;  %v1479_v27 = vmul.f32 0.1, %v1447_v12  ;;  %v1403_v29 = vmul.f32 %v1910_v6, %v2716_v46 }
 0x487   :  { %v1496_v9 = vsel %vm1464_vm12, %v1448_v32, %v1480_v33 }
 0x488   :  { %v1450_v24 = vadd.f32 %v2753_v13, %v1427_v44  ;;  %v1912_v56 = vpop.eup %1911  ;;  %1512 = vst.msk [vmem:[%s2874_s8 + $0x50] sm:$0xff] %vm68_vm1, %v1496_v9  ;;  %v1495_v30 = vsel %vm1463_vm13, %v1447_v12, %v1479_v27  ;;  %v1426_v16 = vmul.f32 %v2747_v0, %v1403_v29 }
 0x489   :  { %1511 = vst.msk [vmem:[%s2874_s8 + $0x48] sm:$0xff] %vm68_vm1, %v1495_v30  ;;  %v1406_v46 = vmul.f32 %v1912_v56, %v2725_v20 }
 0x48a   :  { %vm1466_vm14 = vcmp.gt.f32.partialorder %v1450_v24, 0.0  ;;  %v1482_v10 = vmul.f32 0.1, %v1450_v24  ;;  %v1449_v2 = vadd.f32 %v2753_v13, %v1426_v16  ;;  %v1914_v48 = vpop.eup %1913 }
 0x48b   :  { %v1429_v37 = vmul.f32 %v2747_v0, %v1406_v46  ;;  %v1405_v47 = vmul.f32 %v1914_v48, %v2728_v40 }
 0x48c   :  { %v1498_v53 = vsel %vm1466_vm14, %v1450_v24, %v1482_v10  ;;  %vm1465_vm15 = vcmp.gt.f32.partialorder %v1449_v2, 0.0  ;;  %v1481_v42 = vmul.f32 0.1, %v1449_v2 }
 0x48d   :  { %1514 = vst.msk [vmem:[%s2874_s8 + $0x60] sm:$0xff] %vm68_vm1, %v1498_v53  ;;  %v1452_v62 = vadd.f32 %v2753_v13, %v1429_v37  ;;  %v1428_v20 = vmul.f32 %v2747_v0, %v1405_v47 }
 0x48e   :  { %v1916_v60 = vpop.eup %1915  ;;  %v1497_v1 = vsel %vm1465_vm15, %v1449_v2, %v1481_v42 }
 0x48f   :  { %1513 = vst.msk [vmem:[%s2874_s8 + $0x58] sm:$0xff] %vm68_vm1, %v1497_v1  ;;  %vm1468_vm2 = vcmp.gt.f32.partialorder %v1452_v62, 0.0  ;;  %v1484_v54 = vmul.f32 0.1, %v1452_v62  ;;  %v1407_v58 = vmul.f32 %v1916_v60, %v2737_v51  ;;  %v1451_v8 = vadd.f32 %v2753_v13, %v1428_v20 }
 0x491   :  { %v1500_v4 = vsel %vm1468_vm2, %v1452_v62, %v1484_v54  ;;  %v1430_v40 = vmul.f32 %v2747_v0, %v1407_v58  ;;  %vm1467_vm3 = vcmp.gt.f32.partialorder %v1451_v8, 0.0  ;;  %v1483_v22 = vmul.f32 0.1, %v1451_v8 }
 0x492   :  { %1516 = vst.msk [vmem:[%s2874_s8 + $0x70] sm:$0xff] %vm68_vm1, %v1500_v4 }
 0x493   :  { %v1453_v7 = vadd.f32 %v2753_v13, %v1430_v40  ;;  %v1499_v14 = vsel %vm1467_vm3, %v1451_v8, %v1483_v22 }
 0x494   :  { %1515 = vst.msk [vmem:[%s2874_s8 + $0x68] sm:$0xff] %vm68_vm1, %v1499_v14 }
 0x495   :  { %vm1469_vm0 = vcmp.gt.f32.partialorder %v1453_v7, 0.0  ;;  %v1485_v51 = vmul.f32 0.1, %v1453_v7 }
 0x497   :  { %v1501_v34 = vsel %vm1469_vm0, %v1453_v7, %v1485_v51 }
 0x498   :  { %1517 = vst.msk [vmem:[%s2874_s8 + $0x78] sm:$0xff] %vm68_vm1, %v1501_v34 }

</bundles_post_ra>
